<compile_context>
chip_gen: v5e
topology: v5e:2x2
jax: 0.10.0
libtpu: 0.0.40
codegen_flags: <defaults>
</compile_context>

<pallas_src>
import functools

import jax
import jax.numpy as jnp
from jax.experimental import pallas as pl
from jax.experimental.pallas import tpu as pltpu

EPS = 1e-6  # SAM uses LayerNorm eps=1e-6


def _layernorm(x, g, b):
    x = x.astype(jnp.float32)
    mu = jnp.mean(x, axis=-1, keepdims=True)
    var = jnp.mean((x - mu) ** 2, axis=-1, keepdims=True)
    return (x - mu) * jax.lax.rsqrt(var + EPS) * g + b


@functools.lru_cache(maxsize=None)
def _vmem_limit_bytes():
    # ~75% of physical VMEM: ~96 MiB on v5e/v6e (128 MiB), ~48 MiB on v7x (64 MiB).
    cap = 64 * 1024 * 1024
    try:
        cap = int(getattr(pltpu.get_tpu_info(), "vmem_capacity_bytes", cap))
    except Exception:
        pass
    return max(32 * 1024 * 1024, (cap * 3) // 4)


def _cparams(sem):
    # TODO(synk): on v7x, CORE_PARALLEL on the leading grid axis would shard the
    # two TensorCores explicitly; "parallel" kept here for portability.
    return pltpu.CompilerParams(dimension_semantics=sem,
                                vmem_limit_bytes=_vmem_limit_bytes())


def _row_tile(m, target=512):
    """Largest divisor of m that is <= target and a multiple of 8 (else m)."""
    t_max = min(target, m)
    for t in range(t_max, 0, -1):
        if m % t == 0 and t % 8 == 0:
            return t
    return m


def _col_tile(m, target=512):
    """Largest divisor of m that is <= target and a multiple of 128 (else m)."""
    t_max = min(target, m)
    for t in range(t_max, 0, -1):
        if m % t == 0 and t % 128 == 0:
            return t
    return m


# ----------------------------- Pallas kernels -----------------------------

def matmul_bias_kernel(x_ref, w_ref, b_ref, o_ref):
    # patch-embed conv expressed as (rows, C*p*p) @ (C*p*p, D) + bias
    o_ref[...] = (jnp.dot(x_ref[...].astype(jnp.bfloat16), w_ref[...],
                          preferred_element_type=jnp.float32)
                  + b_ref[...]).astype(o_ref.dtype)


def ln_matmul_bias_kernel(x_ref, g_ref, bg_ref, w_ref, b_ref, o_ref):
    # pre-LN + QKV projection (softmax scale is pre-folded into the Q columns)
    h = _layernorm(x_ref[...], g_ref[...], bg_ref[...])
    o_ref[...] = (jnp.dot(h.astype(jnp.bfloat16), w_ref[...],
                          preferred_element_type=jnp.float32)
                  + b_ref[...]).astype(o_ref.dtype)


def residual_matmul_bias_kernel(res_ref, x_ref, w_ref, b_ref, o_ref):
    # attention output projection fused with residual add
    o_ref[...] = (res_ref[...].astype(jnp.float32)
                  + jnp.dot(x_ref[...].astype(jnp.bfloat16), w_ref[...],
                            preferred_element_type=jnp.float32)
                  + b_ref[...]).astype(o_ref.dtype)


def matmul_ln_kernel(x_ref, w_ref, g_ref, b_ref, o_ref):
    # neck 1x1 conv (no bias) fused with LayerNorm2d (channel-dim == last dim)
    y = jnp.dot(x_ref[...].astype(jnp.bfloat16), w_ref[...],
                preferred_element_type=jnp.float32)
    o_ref[...] = _layernorm(y, g_ref[...], b_ref[...]).astype(o_ref.dtype)


def mlp_residual_kernel(x_ref, g_ref, bg_ref, w1_ref, b1_ref, w2_ref, b2_ref,
                        o_ref, acc_ref, hln_ref):
    # pre-LN MLP (fc1 -> GELU -> fc2) + residual; hidden dim tiled on grid axis 1
    c = pl.program_id(1)

    @pl.when(c == 0)
    def _():
        x = x_ref[...]
        acc_ref[...] = x.astype(jnp.float32) + b2_ref[...]
        hln_ref[...] = _layernorm(x, g_ref[...], bg_ref[...]).astype(jnp.bfloat16)

    # TODO(synk): PyTorch nn.GELU default is exact erf; tanh approximation used.
    a = jax.nn.gelu(
        jnp.dot(hln_ref[...], w1_ref[...], preferred_element_type=jnp.float32)
        + b1_ref[...], approximate=True)
    acc_ref[...] += jnp.dot(a.astype(jnp.bfloat16), w2_ref[...],
                            preferred_element_type=jnp.float32)

    @pl.when(c == pl.num_programs(1) - 1)
    def _():
        o_ref[...] = acc_ref[...].astype(o_ref.dtype)


def _online_softmax_step(qh, kh, vh, m_prev, l_prev, acc_prev):
    # one kv-tile update for a single head (all values 2-D)
    s = jax.lax.dot_general(qh, kh, (((1,), (1,)), ((), ())),
                            preferred_element_type=jnp.float32)   # (tq, tk)
    m_new = jnp.maximum(m_prev, jnp.max(s, axis=-1, keepdims=True))
    alpha = jnp.exp(m_prev - m_new)
    p = jnp.exp(s - m_new)
    l_new = alpha * l_prev + jnp.sum(p, axis=-1, keepdims=True)
    acc_new = alpha * acc_prev + jnp.dot(p.astype(jnp.bfloat16), vh,
                                         preferred_element_type=jnp.float32)
    return m_new, l_new, acc_new


def _flash_fused_kernel(q_ref, k_ref, v_ref, o_ref, m_sc, l_sc, acc_sc):
    # all heads handled in-kernel; output written as one lane-dense (tq, D) slab
    kv = pl.program_id(2)
    num_heads = q_ref.shape[1]

    @pl.when(kv == 0)
    def _():
        m_sc[...] = jnp.full(m_sc.shape, -jnp.inf, jnp.float32)
        l_sc[...] = jnp.zeros(l_sc.shape, jnp.float32)
        acc_sc[...] = jnp.zeros(acc_sc.shape, jnp.float32)

    q = q_ref[...]   # (tq, H, dh) bf16 (softmax scale folded into wqkv)
    k = k_ref[...]   # (tk, H, dh)
    v = v_ref[...]
    for h in range(num_heads):
        qh = jax.lax.index_in_dim(q, h, axis=1, keepdims=False)
        kh = jax.lax.index_in_dim(k, h, axis=1, keepdims=False)
        vh = jax.lax.index_in_dim(v, h, axis=1, keepdims=False)
        m_new, l_new, acc_new = _online_softmax_step(
            qh, kh, vh, m_sc[h], l_sc[h], acc_sc[h])
        m_sc[h] = m_new
        l_sc[h] = l_new
        acc_sc[h] = acc_new

    @pl.when(kv == pl.num_programs(2) - 1)
    def _():
        pieces = [(acc_sc[h] * pl.reciprocal(l_sc[h], approx=True)
                   ).astype(o_ref.dtype) for h in range(num_heads)]
        o_ref[...] = pieces[0] if num_heads == 1 else jnp.concatenate(pieces, axis=-1)


def _flash_head_kernel(q_ref, k_ref, v_ref, o_ref, m_sc, l_sc, acc_sc):
    # fallback: one (batch*head, q-tile) block per grid point
    kv = pl.program_id(2)

    @pl.when(kv == 0)
    def _():
        m_sc[...] = jnp.full(m_sc.shape, -jnp.inf, jnp.float32)
        l_sc[...] = jnp.zeros(l_sc.shape, jnp.float32)
        acc_sc[...] = jnp.zeros(acc_sc.shape, jnp.float32)

    m_new, l_new, acc_new = _online_softmax_step(
        q_ref[0], k_ref[0], v_ref[0], m_sc[...], l_sc[...], acc_sc[...])
    m_sc[...] = m_new
    l_sc[...] = l_new
    acc_sc[...] = acc_new

    @pl.when(kv == pl.num_programs(2) - 1)
    def _():
        o_ref[0] = (acc_sc[...] * pl.reciprocal(l_sc[...], approx=True)
                    ).astype(o_ref.dtype)


def conv3x3_ln_kernel(rows_ref, w_ref, g_ref, b_ref, o_ref, acc_ref, *, pitch):
    # 3x3 conv (pad=1) as 9 shifted-row matmuls accumulated into a VMEM scratch
    # ref, then LayerNorm2d.  rows_ref: (1, (Hp+4)*pitch, Co) flattened padded
    # spatial rows (one batch); pitch is 8-aligned so the row-shift taps start
    # on sublane boundaries.
    # TODO(synk): the +/-1 column taps remain 1-sublane-shifted slices; a
    #             pltpu.roll on the sublane axis would keep them off the ld/st slots.
    r_out = o_ref.shape[1]
    rows = rows_ref[0]                                   # (Rtot, Co) bf16
    first = True
    for di in range(3):
        for dj in range(3):
            off = (1 + di) * pitch + (dj - 1)
            tap = jax.lax.slice_in_dim(rows, off, off + r_out, axis=0)
            contrib = jnp.dot(tap, w_ref[di * 3 + dj],
                              preferred_element_type=jnp.float32)
            if first:
                acc_ref[...] = contrib
                first = False
            else:
                acc_ref[...] += contrib
    o_ref[0] = _layernorm(acc_ref[...], g_ref[...], b_ref[...]).astype(o_ref.dtype)


# ----------------------------- pallas_call wrappers -----------------------------

def _row_call(kernel, args, row_args, n_cols, out_dtype=jnp.bfloat16,
              tm_target=512):
    """Row-tiled pallas_call: args at indices `row_args` are tiled over rows."""
    M = args[row_args[0]].shape[0]
    tm = _row_tile(M, tm_target)
    in_specs = []
    for idx, a in enumerate(args):
        if idx in row_args:
            in_specs.append(pl.BlockSpec(
                (tm,) + a.shape[1:],
                lambda i, _n=a.ndim: (i,) + (0,) * (_n - 1)))
        else:
            in_specs.append(pl.BlockSpec(
                a.shape, lambda i, _n=a.ndim: (0,) * _n))
    return pl.pallas_call(
        kernel,
        out_shape=jax.ShapeDtypeStruct((M, n_cols), out_dtype),
        grid=(M // tm,),
        in_specs=in_specs,
        out_specs=pl.BlockSpec((tm, n_cols), lambda i: (i, 0)),
        compiler_params=_cparams(("parallel",)),
    )(*args)


def matmul_bias(x, w, b):
    return _row_call(matmul_bias_kernel, [x, w, b], (0,), w.shape[1])


def ln_matmul_bias(x, g, bg, w, b):
    return _row_call(ln_matmul_bias_kernel, [x, g, bg, w, b], (0,), w.shape[1])


def residual_matmul_bias(res, x, w, b):
    return _row_call(residual_matmul_bias_kernel, [res, x, w, b], (0, 1),
                     w.shape[1])


def matmul_ln(x, w, g, b):
    return _row_call(matmul_ln_kernel, [x, w, g, b], (0,), w.shape[1])


def mlp_residual(x, g, bg, w1, b1, w2, b2):
    rows, D = x.shape
    hidden = w1.shape[1]
    tm = _row_tile(rows, 512)
    tc = _col_tile(hidden, 512)
    return pl.pallas_call(
        mlp_residual_kernel,
        out_shape=jax.ShapeDtypeStruct((rows, D), jnp.bfloat16),
        grid=(rows // tm, hidden // tc),
        in_specs=[
            pl.BlockSpec((tm, D), lambda i, c: (i, 0)),
            pl.BlockSpec((1, D), lambda i, c: (0, 0)),
            pl.BlockSpec((1, D), lambda i, c: (0, 0)),
            pl.BlockSpec((D, tc), lambda i, c: (0, c)),
            pl.BlockSpec((1, tc), lambda i, c: (0, c)),
            pl.BlockSpec((tc, D), lambda i, c: (c, 0)),
            pl.BlockSpec((1, D), lambda i, c: (0, 0)),
        ],
        out_specs=pl.BlockSpec((tm, D), lambda i, c: (i, 0)),
        scratch_shapes=[pltpu.VMEM((tm, D), jnp.float32),
                        pltpu.VMEM((tm, D), jnp.bfloat16)],
        compiler_params=_cparams(("parallel", "arbitrary")),
    )(x, g, bg, w1, b1, w2, b2)


def _flash_fused(qkv):
    B, N, _, H, dh = qkv.shape
    D = H * dh
    tq = _row_tile(N, 256)
    tk = _row_tile(N, 512)
    return pl.pallas_call(
        _flash_fused_kernel,
        out_shape=jax.ShapeDtypeStruct((B, N, D), jnp.bfloat16),
        grid=(B, N // tq, N // tk),
        in_specs=[
            pl.BlockSpec((None, tq, None, H, dh), lambda b, qi, ki: (b, qi, 0, 0, 0)),
            pl.BlockSpec((None, tk, None, H, dh), lambda b, qi, ki: (b, ki, 1, 0, 0)),
            pl.BlockSpec((None, tk, None, H, dh), lambda b, qi, ki: (b, ki, 2, 0, 0)),
        ],
        out_specs=pl.BlockSpec((None, tq, D), lambda b, qi, ki: (b, qi, 0)),
        scratch_shapes=[pltpu.VMEM((H, tq, 1), jnp.float32),
                        pltpu.VMEM((H, tq, 1), jnp.float32),
                        pltpu.VMEM((H, tq, dh), jnp.float32)],
        compiler_params=_cparams(("parallel", "parallel", "arbitrary")),
    )(qkv, qkv, qkv)


def _flash_per_head(qkv):
    # fallback path (XLA head-split/merge, bf16): only used if the fused kernel
    # does not lower on the local Mosaic build.
    B, N, _, H, dh = qkv.shape
    D = H * dh
    q = qkv[:, :, 0].transpose(0, 2, 1, 3).reshape(B * H, N, dh)
    k = qkv[:, :, 1].transpose(0, 2, 1, 3).reshape(B * H, N, dh)
    v = qkv[:, :, 2].transpose(0, 2, 1, 3).reshape(B * H, N, dh)
    tq = _row_tile(N, 256)
    tk = _row_tile(N, 512)
    out = pl.pallas_call(
        _flash_head_kernel,
        out_shape=jax.ShapeDtypeStruct((B * H, N, dh), jnp.bfloat16),
        grid=(B * H, N // tq, N // tk),
        in_specs=[pl.BlockSpec((1, tq, dh), lambda b, qi, ki: (b, qi, 0)),
                  pl.BlockSpec((1, tk, dh), lambda b, qi, ki: (b, ki, 0)),
                  pl.BlockSpec((1, tk, dh), lambda b, qi, ki: (b, ki, 0))],
        out_specs=pl.BlockSpec((1, tq, dh), lambda b, qi, ki: (b, qi, 0)),
        scratch_shapes=[pltpu.VMEM((tq, 1), jnp.float32),
                        pltpu.VMEM((tq, 1), jnp.float32),
                        pltpu.VMEM((tq, dh), jnp.float32)],
        compiler_params=_cparams(("parallel", "parallel", "arbitrary")),
    )(q, k, v)
    return out.reshape(B, H, N, dh).transpose(0, 2, 1, 3).reshape(B, N, D)


@functools.lru_cache(maxsize=None)
def _fused_attention_ok(num_heads, dh):
    # compile+run the fused kernel once on a tiny dummy; select fallback if the
    # local Mosaic build rejects in-kernel head slicing / concatenation.
    try:
        dummy = jnp.zeros((1, 8, 3, num_heads, dh), jnp.bfloat16)
        jax.block_until_ready(_flash_fused(dummy))
        return True
    except Exception:
        return False


def flash_attention(qkv):
    _, _, _, H, dh = qkv.shape
    if _fused_attention_ok(H, dh):
        return _flash_fused(qkv)
    return _flash_per_head(qkv)


def conv3x3_ln(y1, w9, g, b):
    # y1: (B, Hp, Wp, Co) bf16.  Single pad gives both the conv halo and an
    # 8-aligned row pitch; 9 taps are fused in-kernel.
    B, Hp, Wp, Co = y1.shape
    pitch = ((Wp + 2 + 7) // 8) * 8
    yp = jnp.pad(y1, ((0, 0), (2, 2), (1, pitch - Wp - 1), (0, 0)))
    rows = yp.reshape(B, (Hp + 4) * pitch, Co)
    r_out = Hp * pitch
    # TODO(synk): at very large spatial sizes the per-batch block should be
    #             row-tiled with a halo (manual DMA) instead of fully resident.
    out = pl.pallas_call(
        functools.partial(conv3x3_ln_kernel, pitch=pitch),
        out_shape=jax.ShapeDtypeStruct((B, r_out, Co), jnp.float32),
        grid=(B,),
        in_specs=[pl.BlockSpec((1, (Hp + 4) * pitch, Co), lambda i: (i, 0, 0)),
                  pl.BlockSpec((9, Co, Co), lambda i: (0, 0, 0)),
                  pl.BlockSpec((1, Co), lambda i: (0, 0)),
                  pl.BlockSpec((1, Co), lambda i: (0, 0))],
        out_specs=pl.BlockSpec((1, r_out, Co), lambda i: (i, 0, 0)),
        scratch_shapes=[pltpu.VMEM((r_out, Co), jnp.float32)],
        compiler_params=_cparams(("parallel",)),
    )(rows, w9, g, b)
    # keep only the real (non-padded) columns
    return out.reshape(B, Hp, pitch, Co)[:, :, 1:1 + Wp, :]


# ----------------------------- model glue -----------------------------

def vit_block(x, lp, num_heads):
    B, N, D = x.shape
    dh = D // num_heads
    x2 = x.reshape(B * N, D)

    qkv = ln_matmul_bias(x2, lp["g1"], lp["b1"], lp["wqkv"], lp["bqkv"])
    # free reshape: the 3*D output columns are laid out as (3, heads, dh)
    qkv = qkv.reshape(B, N, 3, num_heads, dh)
    ctx = flash_attention(qkv)                        # (B, N, D) bf16

    x2 = residual_matmul_bias(x2, ctx.reshape(B * N, D), lp["wproj"], lp["bproj"])
    x2 = mlp_residual(x2, lp["g2"], lp["b2"],
                      lp["w1"], lp["bm1"], lp["w2"], lp["bm2"])
    return x2.reshape(B, N, D)


def init_params(key, cfg):
    C, p, D = cfg["in_ch"], cfg["patch"], cfg["hidden"]
    Co, L, M = cfg["out_ch"], cfg["layers"], cfg["mlp_dim"]
    Hp, Wp = cfg["hp"], cfg["wp"]
    dh = D // cfg["heads"]
    q_scale = dh ** -0.5
    keys = iter(jax.random.split(key, 8 + 8 * L))

    def nrm(shape, scale=0.02):          # MXU weights stored in bf16
        return (scale * jax.random.normal(next(keys), shape, jnp.float32)
                ).astype(jnp.bfloat16)

    def nrm32(shape, scale=0.02):
        return scale * jax.random.normal(next(keys), shape, jnp.float32)

    params = dict(
        w_pe=nrm((C * p * p, D)),                 # flattened conv(patch,patch) weight
        b_pe=jnp.zeros((1, D), jnp.float32),
        pos=nrm32((Hp, Wp, D)).astype(jnp.bfloat16),   # absolute positional embedding
        wn1=nrm((D, Co)),                         # neck 1x1 conv (no bias)
        gn1=jnp.ones((1, Co), jnp.float32), bn1=jnp.zeros((1, Co), jnp.float32),
        wn2=nrm((9, Co, Co)),                     # neck 3x3 conv (no bias), per-tap
        gn2=jnp.ones((1, Co), jnp.float32), bn2=jnp.zeros((1, Co), jnp.float32),
        layers=[])
    for _ in range(L):
        # fold the attention softmax scale (dh**-0.5) into the Q projection;
        # when importing PyTorch weights, pre-scale the q rows/bias the same way.
        wqkv = 0.02 * jax.random.normal(next(keys), (D, 3 * D), jnp.float32)
        wqkv = wqkv.at[:, :D].multiply(q_scale)
        params["layers"].append(dict(
            g1=jnp.ones((1, D), jnp.float32), b1=jnp.zeros((1, D), jnp.float32),
            wqkv=wqkv.astype(jnp.bfloat16), bqkv=jnp.zeros((1, 3 * D), jnp.float32),
            wproj=nrm((D, D)), bproj=jnp.zeros((1, D), jnp.float32),
            g2=jnp.ones((1, D), jnp.float32), b2=jnp.zeros((1, D), jnp.float32),
            w1=nrm((D, M)), bm1=jnp.zeros((1, M), jnp.float32),
            w2=nrm((M, D)), bm2=jnp.zeros((1, D), jnp.float32)))
    return params


def ft_sam_forward(image_nchw, params, cfg):
    B, C, H, W = image_nchw.shape
    p, D, Co = cfg["patch"], cfg["hidden"], cfg["out_ch"]
    Hp, Wp = H // p, W // p
    Np = Hp * Wp

    # Patch embedding: conv(kernel=p, stride=p) as matmul over extracted patches.
    # TODO(synk): patch extraction is an XLA reshape/transpose; folding the gather
    # into the patch-embed kernel's DMA would save one HBM round trip.
    patches = image_nchw.reshape(B, C, Hp, p, Wp, p).transpose(0, 2, 4, 1, 3, 5)
    patches = patches.reshape(B * Np, C * p * p).astype(jnp.bfloat16)
    x = matmul_bias(patches, params["w_pe"], params["b_pe"])       # (B*Np, D) bf16
    x = x.reshape(B, Np, D) + params["pos"].reshape(1, Np, D)

    # Transformer encoder (global attention per block).
    # TODO(synk): SAM's windowed / relative-position attention variant omitted.
    for lp in params["layers"]:
        x = vit_block(x, lp, cfg["heads"])

    # Neck: 1x1 conv + LayerNorm2d, then 3x3 conv (pad=1) + LayerNorm2d.
    feat = x.reshape(B * Np, D)
    y1 = matmul_ln(feat, params["wn1"], params["gn1"], params["bn1"])
    y1 = y1.reshape(B, Hp, Wp, Co)
    y2 = conv3x3_ln(y1, params["wn2"], params["gn2"], params["bn2"])   # fp32
    return y2.transpose(0, 3, 1, 2)                                    # NCHW


if __name__ == "__main__":
    cfg = dict(in_ch=3, patch=8, hidden=32, heads=2, layers=2, mlp_dim=128,
               out_ch=16, hp=4, wp=4)
    key = jax.random.PRNGKey(0)
    pkey, xkey = jax.random.split(key)
    params = init_params(pkey, cfg)
    image = jax.random.normal(xkey, (2, 3, 32, 32), jnp.float32)  # NCHW like PyTorch
    fwd = jax.jit(functools.partial(ft_sam_forward, cfg=cfg))
    out = fwd(image, params)
    out = jax.block_until_ready(out)
    assert out.shape == (2, cfg["out_ch"], 4, 4) and out.dtype == jnp.float32
    print("KERNEL_OK")
</pallas_src>

<mosaic_0001>
module attributes {stable_mosaic.version = 11 : i64} {
  func.func @matmul_bias_kernel(%arg0: i32, %arg1: memref<32x192xbf16, #tpu.memory_space<vmem>>, %arg2: memref<192x32xbf16, #tpu.memory_space<vmem>>, %arg3: memref<1x32xf32, #tpu.memory_space<vmem>>, %arg4: memref<32x32xbf16, #tpu.memory_space<vmem>>) attributes {dimension_semantics = [#tpu.dimension_semantics<parallel>], iteration_bounds = array<i64: 1>, scalar_prefetch = 0 : i64, scratch_operands = 0 : i64, tpu.core_type = #tpu.core_type<tc>, window_params = [{transform_indices = @transform_0, window_bounds = array<i64: 32, 192>}, {pipeline_mode = #tpu.pipeline_mode<synchronous>, transform_indices = @transform_1, window_bounds = array<i64: 192, 32>}, {pipeline_mode = #tpu.pipeline_mode<synchronous>, transform_indices = @transform_2, window_bounds = array<i64: 1, 32>}, {transform_indices = @transform_3, window_bounds = array<i64: 32, 32>}]} {
    %c0 = arith.constant 0 : index
    %c0_0 = arith.constant 0 : index
    %0 = vector.load %arg1[%c0, %c0_0] : memref<32x192xbf16, #tpu.memory_space<vmem>>, vector<32x192xbf16>
    %c0_1 = arith.constant 0 : index
    %c0_2 = arith.constant 0 : index
    %1 = vector.load %arg2[%c0_1, %c0_2] : memref<192x32xbf16, #tpu.memory_space<vmem>>, vector<192x32xbf16>
    %cst = arith.constant dense<0.000000e+00> : vector<32x32xf32>
    %2 = tpu.matmul %0, %1, %cst {dimension_numbers = #tpu.dot_dimension_numbers<[1], [0], [0], [1], [0, 0, 1, 1], [], []>} : vector<32x192xbf16>, vector<192x32xbf16>, vector<32x32xf32> -> vector<32x32xf32>
    %c0_3 = arith.constant 0 : index
    %c0_4 = arith.constant 0 : index
    %3 = vector.load %arg3[%c0_3, %c0_4] : memref<1x32xf32, #tpu.memory_space<vmem>>, vector<1x32xf32>
    %4 = vector.broadcast %3 : vector<1x32xf32> to vector<32x32xf32>
    %5 = arith.addf %2, %4 : vector<32x32xf32>
    %6 = arith.truncf %5 : vector<32x32xf32> to vector<32x32xbf16>
    %c0_5 = arith.constant 0 : index
    %c0_6 = arith.constant 0 : index
    %7 = vector.load %arg4[%c0_5, %c0_6] : memref<32x32xbf16, #tpu.memory_space<vmem>>, vector<32x32xbf16>
    tpu.vector_store %arg4[%c0_5, %c0_6], %6 {strides = array<i32>} : memref<32x32xbf16, #tpu.memory_space<vmem>>, vector<32x32xbf16>,
    return
  }
  func.func @transform_0(%arg0: i32) -> (i32, i32) {
    %c0_i32 = arith.constant 0 : i32
    %c0_i32_0 = arith.constant 0 : i32
    return %arg0, %c0_i32 : i32, i32
  }
  func.func @transform_1(%arg0: i32) -> (i32, i32) {
    %c0_i32 = arith.constant 0 : i32
    %c0_i32_0 = arith.constant 0 : i32
    %c0_i32_1 = arith.constant 0 : i32
    return %c0_i32, %c0_i32_0 : i32, i32
  }
  func.func @transform_2(%arg0: i32) -> (i32, i32) {
    %c0_i32 = arith.constant 0 : i32
    %c0_i32_0 = arith.constant 0 : i32
    %c0_i32_1 = arith.constant 0 : i32
    return %c0_i32, %c0_i32_0 : i32, i32
  }
  func.func @transform_3(%arg0: i32) -> (i32, i32) {
    %c0_i32 = arith.constant 0 : i32
    %c0_i32_0 = arith.constant 0 : i32
    return %arg0, %c0_i32 : i32, i32
  }
}

module attributes {stable_mosaic.version = 11 : i64} {
  func.func @ln_matmul_bias_kernel(%arg0: i32, %arg1: memref<32x32xbf16, #tpu.memory_space<vmem>>, %arg2: memref<1x32xf32, #tpu.memory_space<vmem>>, %arg3: memref<1x32xf32, #tpu.memory_space<vmem>>, %arg4: memref<32x96xbf16, #tpu.memory_space<vmem>>, %arg5: memref<1x96xf32, #tpu.memory_space<vmem>>, %arg6: memref<32x96xbf16, #tpu.memory_space<vmem>>) attributes {dimension_semantics = [#tpu.dimension_semantics<parallel>], iteration_bounds = array<i64: 1>, scalar_prefetch = 0 : i64, scratch_operands = 0 : i64, tpu.core_type = #tpu.core_type<tc>, window_params = [{transform_indices = @transform_0, window_bounds = array<i64: 32, 32>}, {pipeline_mode = #tpu.pipeline_mode<synchronous>, transform_indices = @transform_1, window_bounds = array<i64: 1, 32>}, {pipeline_mode = #tpu.pipeline_mode<synchronous>, transform_indices = @transform_2, window_bounds = array<i64: 1, 32>}, {pipeline_mode = #tpu.pipeline_mode<synchronous>, transform_indices = @transform_3, window_bounds = array<i64: 32, 96>}, {pipeline_mode = #tpu.pipeline_mode<synchronous>, transform_indices = @transform_4, window_bounds = array<i64: 1, 96>}, {transform_indices = @transform_5, window_bounds = array<i64: 32, 96>}]} {
    %c0 = arith.constant 0 : index
    %c0_0 = arith.constant 0 : index
    %0 = vector.load %arg1[%c0, %c0_0] : memref<32x32xbf16, #tpu.memory_space<vmem>>, vector<32x32xbf16>
    %c0_1 = arith.constant 0 : index
    %c0_2 = arith.constant 0 : index
    %1 = vector.load %arg2[%c0_1, %c0_2] : memref<1x32xf32, #tpu.memory_space<vmem>>, vector<1x32xf32>
    %c0_3 = arith.constant 0 : index
    %c0_4 = arith.constant 0 : index
    %2 = vector.load %arg3[%c0_3, %c0_4] : memref<1x32xf32, #tpu.memory_space<vmem>>, vector<1x32xf32>
    %3 = arith.extf %0 : vector<32x32xbf16> to vector<32x32xf32>
    %cst = arith.constant dense<0.000000e+00> : vector<32xf32>
    %4 = vector.multi_reduction <add>, %3, %cst [1] : vector<32x32xf32> to vector<32xf32>
    %5 = vector.shape_cast %4 : vector<32xf32> to vector<32x1xf32>
    %cst_5 = arith.constant 3.200000e+01 : f32
    %6 = vector.broadcast %cst_5 : f32 to vector<32x1xf32>
    %7 = arith.divf %5, %6 : vector<32x1xf32>
    %8 = vector.broadcast %7 : vector<32x1xf32> to vector<32x32xf32>
    %9 = arith.subf %3, %8 : vector<32x32xf32>
    %10 = arith.mulf %9, %9 : vector<32x32xf32>
    %cst_6 = arith.constant dense<0.000000e+00> : vector<32xf32>
    %11 = vector.multi_reduction <add>, %10, %cst_6 [1] : vector<32x32xf32> to vector<32xf32>
    %12 = vector.shape_cast %11 : vector<32xf32> to vector<32x1xf32>
    %cst_7 = arith.constant 3.200000e+01 : f32
    %13 = vector.broadcast %cst_7 : f32 to vector<32x1xf32>
    %14 = arith.divf %12, %13 : vector<32x1xf32>
    %15 = vector.broadcast %7 : vector<32x1xf32> to vector<32x32xf32>
    %16 = arith.subf %3, %15 : vector<32x32xf32>
    %cst_8 = arith.constant 9.99999997E-7 : f32
    %17 = vector.broadcast %cst_8 : f32 to vector<32x1xf32>
    %18 = arith.addf %14, %17 : vector<32x1xf32>
    %19 = math.rsqrt %18 : vector<32x1xf32>
    %20 = vector.broadcast %19 : vector<32x1xf32> to vector<32x32xf32>
    %21 = arith.mulf %16, %20 : vector<32x32xf32>
    %22 = vector.broadcast %1 : vector<1x32xf32> to vector<32x32xf32>
    %23 = arith.mulf %21, %22 : vector<32x32xf32>
    %24 = vector.broadcast %2 : vector<1x32xf32> to vector<32x32xf32>
    %25 = arith.addf %23, %24 : vector<32x32xf32>
    %26 = arith.truncf %25 : vector<32x32xf32> to vector<32x32xbf16>
    %c0_9 = arith.constant 0 : index
    %c0_10 = arith.constant 0 : index
    %27 = vector.load %arg4[%c0_9, %c0_10] : memref<32x96xbf16, #tpu.memory_space<vmem>>, vector<32x96xbf16>
    %cst_11 = arith.constant dense<0.000000e+00> : vector<32x96xf32>
    %28 = tpu.matmul %26, %27, %cst_11 {dimension_numbers = #tpu.dot_dimension_numbers<[1], [0], [0], [1], [0, 0, 1, 1], [], []>} : vector<32x32xbf16>, vector<32x96xbf16>, vector<32x96xf32> -> vector<32x96xf32>
    %c0_12 = arith.constant 0 : index
    %c0_13 = arith.constant 0 : index
    %29 = vector.load %arg5[%c0_12, %c0_13] : memref<1x96xf32, #tpu.memory_space<vmem>>, vector<1x96xf32>
    %30 = vector.broadcast %29 : vector<1x96xf32> to vector<32x96xf32>
    %31 = arith.addf %28, %30 : vector<32x96xf32>
    %32 = arith.truncf %31 : vector<32x96xf32> to vector<32x96xbf16>
    %c0_14 = arith.constant 0 : index
    %c0_15 = arith.constant 0 : index
    %33 = vector.load %arg6[%c0_14, %c0_15] : memref<32x96xbf16, #tpu.memory_space<vmem>>, vector<32x96xbf16>
    tpu.vector_store %arg6[%c0_14, %c0_15], %32 {strides = array<i32>} : memref<32x96xbf16, #tpu.memory_space<vmem>>, vector<32x96xbf16>,
    return
  }
  func.func @transform_0(%arg0: i32) -> (i32, i32) {
    %c0_i32 = arith.constant 0 : i32
    %c0_i32_0 = arith.constant 0 : i32
    return %arg0, %c0_i32 : i32, i32
  }
  func.func @transform_1(%arg0: i32) -> (i32, i32) {
    %c0_i32 = arith.constant 0 : i32
    %c0_i32_0 = arith.constant 0 : i32
    %c0_i32_1 = arith.constant 0 : i32
    return %c0_i32, %c0_i32_0 : i32, i32
  }
  func.func @transform_2(%arg0: i32) -> (i32, i32) {
    %c0_i32 = arith.constant 0 : i32
    %c0_i32_0 = arith.constant 0 : i32
    %c0_i32_1 = arith.constant 0 : i32
    return %c0_i32, %c0_i32_0 : i32, i32
  }
  func.func @transform_3(%arg0: i32) -> (i32, i32) {
    %c0_i32 = arith.constant 0 : i32
    %c0_i32_0 = arith.constant 0 : i32
    %c0_i32_1 = arith.constant 0 : i32
    return %c0_i32, %c0_i32_0 : i32, i32
  }
  func.func @transform_4(%arg0: i32) -> (i32, i32) {
    %c0_i32 = arith.constant 0 : i32
    %c0_i32_0 = arith.constant 0 : i32
    %c0_i32_1 = arith.constant 0 : i32
    return %c0_i32, %c0_i32_0 : i32, i32
  }
  func.func @transform_5(%arg0: i32) -> (i32, i32) {
    %c0_i32 = arith.constant 0 : i32
    %c0_i32_0 = arith.constant 0 : i32
    return %arg0, %c0_i32 : i32, i32
  }
}

module attributes {stable_mosaic.version = 11 : i64} {
  func.func @_flash_fused_kernel(%arg0: i32, %arg1: i32, %arg2: i32, %arg3: memref<1x16x1x2x16xbf16, #tpu.memory_space<vmem>>, %arg4: memref<1x16x1x2x16xbf16, #tpu.memory_space<vmem>>, %arg5: memref<1x16x1x2x16xbf16, #tpu.memory_space<vmem>>, %arg6: memref<1x16x32xbf16, #tpu.memory_space<vmem>>, %arg7: memref<2x16x1xf32, #tpu.memory_space<vmem>>, %arg8: memref<2x16x1xf32, #tpu.memory_space<vmem>>, %arg9: memref<2x16x16xf32, #tpu.memory_space<vmem>>) attributes {dimension_semantics = [#tpu.dimension_semantics<parallel>, #tpu.dimension_semantics<parallel>, #tpu.dimension_semantics<arbitrary>], iteration_bounds = array<i64: 2, 1, 1>, scalar_prefetch = 0 : i64, scratch_operands = 3 : i64, tpu.core_type = #tpu.core_type<tc>, window_params = [{transform_indices = @transform_0, window_bounds = array<i64: 1, 16, 1, 2, 16>}, {transform_indices = @transform_1, window_bounds = array<i64: 1, 16, 1, 2, 16>}, {transform_indices = @transform_2, window_bounds = array<i64: 1, 16, 1, 2, 16>}, {transform_indices = @transform_3, window_bounds = array<i64: 1, 16, 32>}]} {
    %c0_i32 = arith.constant 0 : i32
    %0 = arith.cmpi eq, %arg2, %c0_i32 : i32
    %1 = arith.extui %0 : i1 to i32
    %c0_i32_0 = arith.constant 0 : i32
    %2 = arith.cmpi ne, %1, %c0_i32_0 : i32
    scf.if %2 {
      %cst_59 = arith.constant 0xFF800000 : f32
      %90 = vector.broadcast %cst_59 : f32 to vector<2x16x1xf32>
      %c0_60 = arith.constant 0 : index
      %c0_61 = arith.constant 0 : index
      %c0_62 = arith.constant 0 : index
      %91 = vector.load %arg7[%c0_60, %c0_61, %c0_62] : memref<2x16x1xf32, #tpu.memory_space<vmem>>, vector<2x16x1xf32>
      tpu.vector_store %arg7[%c0_60, %c0_61, %c0_62], %90 {strides = array<i32>} : memref<2x16x1xf32, #tpu.memory_space<vmem>>, vector<2x16x1xf32>,
      %cst_63 = arith.constant 0.000000e+00 : f32
      %92 = vector.broadcast %cst_63 : f32 to vector<2x16x1xf32>
      %c0_64 = arith.constant 0 : index
      %c0_65 = arith.constant 0 : index
      %c0_66 = arith.constant 0 : index
      %93 = vector.load %arg8[%c0_64, %c0_65, %c0_66] : memref<2x16x1xf32, #tpu.memory_space<vmem>>, vector<2x16x1xf32>
      tpu.vector_store %arg8[%c0_64, %c0_65, %c0_66], %92 {strides = array<i32>} : memref<2x16x1xf32, #tpu.memory_space<vmem>>, vector<2x16x1xf32>,
      %cst_67 = arith.constant 0.000000e+00 : f32
      %94 = vector.broadcast %cst_67 : f32 to vector<2x16x16xf32>
      %c0_68 = arith.constant 0 : index
      %c0_69 = arith.constant 0 : index
      %c0_70 = arith.constant 0 : index
      %95 = vector.load %arg9[%c0_68, %c0_69, %c0_70] : memref<2x16x16xf32, #tpu.memory_space<vmem>>, vector<2x16x16xf32>
      tpu.vector_store %arg9[%c0_68, %c0_69, %c0_70], %94 {strides = array<i32>} : memref<2x16x16xf32, #tpu.memory_space<vmem>>, vector<2x16x16xf32>,
    } else {
    }
    %c0 = arith.constant 0 : index
    %c0_1 = arith.constant 0 : index
    %c0_2 = arith.constant 0 : index
    %c0_3 = arith.constant 0 : index
    %c0_4 = arith.constant 0 : index
    %3 = vector.load %arg3[%c0, %c0_1, %c0_2, %c0_3, %c0_4] : memref<1x16x1x2x16xbf16, #tpu.memory_space<vmem>>, vector<1x16x1x2x16xbf16>
    %4 = vector.shape_cast %3 : vector<1x16x1x2x16xbf16> to vector<16x2x16xbf16>
    %c0_5 = arith.constant 0 : index
    %c0_6 = arith.constant 0 : index
    %c0_7 = arith.constant 0 : index
    %c0_8 = arith.constant 0 : index
    %c0_9 = arith.constant 0 : index
    %5 = vector.load %arg4[%c0_5, %c0_6, %c0_7, %c0_8, %c0_9] : memref<1x16x1x2x16xbf16, #tpu.memory_space<vmem>>, vector<1x16x1x2x16xbf16>
    %6 = vector.shape_cast %5 : vector<1x16x1x2x16xbf16> to vector<16x2x16xbf16>
    %c0_10 = arith.constant 0 : index
    %c0_11 = arith.constant 0 : index
    %c0_12 = arith.constant 0 : index
    %c0_13 = arith.constant 0 : index
    %c0_14 = arith.constant 0 : index
    %7 = vector.load %arg5[%c0_10, %c0_11, %c0_12, %c0_13, %c0_14] : memref<1x16x1x2x16xbf16, #tpu.memory_space<vmem>>, vector<1x16x1x2x16xbf16>
    %8 = vector.shape_cast %7 : vector<1x16x1x2x16xbf16> to vector<16x2x16xbf16>
    %9 = vector.extract_strided_slice %4 {offsets = [0, 0, 0], sizes = [16, 1, 16], strides = [1, 1, 1]} : vector<16x2x16xbf16> to vector<16x1x16xbf16>
    %10 = vector.shape_cast %9 : vector<16x1x16xbf16> to vector<16x16xbf16>
    %11 = vector.extract_strided_slice %6 {offsets = [0, 0, 0], sizes = [16, 1, 16], strides = [1, 1, 1]} : vector<16x2x16xbf16> to vector<16x1x16xbf16>
    %12 = vector.shape_cast %11 : vector<16x1x16xbf16> to vector<16x16xbf16>
    %13 = vector.extract_strided_slice %8 {offsets = [0, 0, 0], sizes = [16, 1, 16], strides = [1, 1, 1]} : vector<16x2x16xbf16> to vector<16x1x16xbf16>
    %14 = vector.shape_cast %13 : vector<16x1x16xbf16> to vector<16x16xbf16>
    %c0_15 = arith.constant 0 : index
    %c0_16 = arith.constant 0 : index
    %c0_17 = arith.constant 0 : index
    %15 = vector.load %arg7[%c0_15, %c0_16, %c0_17] : memref<2x16x1xf32, #tpu.memory_space<vmem>>, vector<1x16x1xf32>
    %16 = vector.shape_cast %15 : vector<1x16x1xf32> to vector<16x1xf32>
    %c0_18 = arith.constant 0 : index
    %c0_19 = arith.constant 0 : index
    %c0_20 = arith.constant 0 : index
    %17 = vector.load %arg8[%c0_18, %c0_19, %c0_20] : memref<2x16x1xf32, #tpu.memory_space<vmem>>, vector<1x16x1xf32>
    %18 = vector.shape_cast %17 : vector<1x16x1xf32> to vector<16x1xf32>
    %c0_21 = arith.constant 0 : index
    %c0_22 = arith.constant 0 : index
    %c0_23 = arith.constant 0 : index
    %19 = vector.load %arg9[%c0_21, %c0_22, %c0_23] : memref<2x16x16xf32, #tpu.memory_space<vmem>>, vector<1x16x16xf32>
    %20 = vector.shape_cast %19 : vector<1x16x16xf32> to vector<16x16xf32>
    %cst = arith.constant dense<0.000000e+00> : vector<16x16xf32>
    %21 = tpu.matmul %10, %12, %cst {dimension_numbers = #tpu.dot_dimension_numbers<[1], [1], [0], [0], [0, 0, 1, 0], [], []>} : vector<16x16xbf16>, vector<16x16xbf16>, vector<16x16xf32> -> vector<16x16xf32>
    %cst_24 = arith.constant dense<0xFF800000> : vector<16xf32>
    %22 = vector.multi_reduction <maximumf>, %21, %cst_24 [1] : vector<16x16xf32> to vector<16xf32>
    %23 = vector.shape_cast %22 : vector<16xf32> to vector<16x1xf32>
    %24 = arith.maximumf %16, %23 : vector<16x1xf32>
    %25 = arith.subf %16, %24 : vector<16x1xf32>
    %26 = math.exp %25 : vector<16x1xf32>
    %27 = vector.broadcast %24 : vector<16x1xf32> to vector<16x16xf32>
    %28 = arith.subf %21, %27 : vector<16x16xf32>
    %29 = math.exp %28 : vector<16x16xf32>
    %30 = arith.mulf %26, %18 : vector<16x1xf32>
    %cst_25 = arith.constant dense<0.000000e+00> : vector<16xf32>
    %31 = vector.multi_reduction <add>, %29, %cst_25 [1] : vector<16x16xf32> to vector<16xf32>
    %32 = vector.shape_cast %31 : vector<16xf32> to vector<16x1xf32>
    %33 = arith.addf %30, %32 : vector<16x1xf32>
    %34 = vector.broadcast %26 : vector<16x1xf32> to vector<16x16xf32>
    %35 = arith.mulf %34, %20 : vector<16x16xf32>
    %36 = arith.truncf %29 : vector<16x16xf32> to vector<16x16xbf16>
    %cst_26 = arith.constant dense<0.000000e+00> : vector<16x16xf32>
    %37 = tpu.matmul %36, %14, %cst_26 {dimension_numbers = #tpu.dot_dimension_numbers<[1], [0], [0], [1], [0, 0, 1, 1], [], []>} : vector<16x16xbf16>, vector<16x16xbf16>, vector<16x16xf32> -> vector<16x16xf32>
    %38 = arith.addf %35, %37 : vector<16x16xf32>
    %c0_27 = arith.constant 0 : index
    %c0_28 = arith.constant 0 : index
    %c0_29 = arith.constant 0 : index
    %39 = vector.load %arg7[%c0_27, %c0_28, %c0_29] : memref<2x16x1xf32, #tpu.memory_space<vmem>>, vector<1x16x1xf32>
    %40 = vector.shape_cast %39 : vector<1x16x1xf32> to vector<16x1xf32>
    %41 = vector.shape_cast %24 : vector<16x1xf32> to vector<1x16x1xf32>
    tpu.vector_store %arg7[%c0_27, %c0_28, %c0_29], %41 {strides = array<i32>} : memref<2x16x1xf32, #tpu.memory_space<vmem>>, vector<1x16x1xf32>,
    %c0_30 = arith.constant 0 : index
    %c0_31 = arith.constant 0 : index
    %c0_32 = arith.constant 0 : index
    %42 = vector.load %arg8[%c0_30, %c0_31, %c0_32] : memref<2x16x1xf32, #tpu.memory_space<vmem>>, vector<1x16x1xf32>
    %43 = vector.shape_cast %42 : vector<1x16x1xf32> to vector<16x1xf32>
    %44 = vector.shape_cast %33 : vector<16x1xf32> to vector<1x16x1xf32>
    tpu.vector_store %arg8[%c0_30, %c0_31, %c0_32], %44 {strides = array<i32>} : memref<2x16x1xf32, #tpu.memory_space<vmem>>, vector<1x16x1xf32>,
    %c0_33 = arith.constant 0 : index
    %c0_34 = arith.constant 0 : index
    %c0_35 = arith.constant 0 : index
    %45 = vector.load %arg9[%c0_33, %c0_34, %c0_35] : memref<2x16x16xf32, #tpu.memory_space<vmem>>, vector<1x16x16xf32>
    %46 = vector.shape_cast %45 : vector<1x16x16xf32> to vector<16x16xf32>
    %47 = vector.shape_cast %38 : vector<16x16xf32> to vector<1x16x16xf32>
    tpu.vector_store %arg9[%c0_33, %c0_34, %c0_35], %47 {strides = array<i32>} : memref<2x16x16xf32, #tpu.memory_space<vmem>>, vector<1x16x16xf32>,
    %48 = vector.extract_strided_slice %4 {offsets = [0, 1, 0], sizes = [16, 1, 16], strides = [1, 1, 1]} : vector<16x2x16xbf16> to vector<16x1x16xbf16>
    %49 = vector.shape_cast %48 : vector<16x1x16xbf16> to vector<16x16xbf16>
    %50 = vector.extract_strided_slice %6 {offsets = [0, 1, 0], sizes = [16, 1, 16], strides = [1, 1, 1]} : vector<16x2x16xbf16> to vector<16x1x16xbf16>
    %51 = vector.shape_cast %50 : vector<16x1x16xbf16> to vector<16x16xbf16>
    %52 = vector.extract_strided_slice %8 {offsets = [0, 1, 0], sizes = [16, 1, 16], strides = [1, 1, 1]} : vector<16x2x16xbf16> to vector<16x1x16xbf16>
    %53 = vector.shape_cast %52 : vector<16x1x16xbf16> to vector<16x16xbf16>
    %c1 = arith.constant 1 : index
    %c0_36 = arith.constant 0 : index
    %c0_37 = arith.constant 0 : index
    %54 = vector.load %arg7[%c1, %c0_36, %c0_37] : memref<2x16x1xf32, #tpu.memory_space<vmem>>, vector<1x16x1xf32>
    %55 = vector.shape_cast %54 : vector<1x16x1xf32> to vector<16x1xf32>
    %c1_38 = arith.constant 1 : index
    %c0_39 = arith.constant 0 : index
    %c0_40 = arith.constant 0 : index
    %56 = vector.load %arg8[%c1_38, %c0_39, %c0_40] : memref<2x16x1xf32, #tpu.memory_space<vmem>>, vector<1x16x1xf32>
    %57 = vector.shape_cast %56 : vector<1x16x1xf32> to vector<16x1xf32>
    %c1_41 = arith.constant 1 : index
    %c0_42 = arith.constant 0 : index
    %c0_43 = arith.constant 0 : index
    %58 = vector.load %arg9[%c1_41, %c0_42, %c0_43] : memref<2x16x16xf32, #tpu.memory_space<vmem>>, vector<1x16x16xf32>
    %59 = vector.shape_cast %58 : vector<1x16x16xf32> to vector<16x16xf32>
    %cst_44 = arith.constant dense<0.000000e+00> : vector<16x16xf32>
    %60 = tpu.matmul %49, %51, %cst_44 {dimension_numbers = #tpu.dot_dimension_numbers<[1], [1], [0], [0], [0, 0, 1, 0], [], []>} : vector<16x16xbf16>, vector<16x16xbf16>, vector<16x16xf32> -> vector<16x16xf32>
    %cst_45 = arith.constant dense<0xFF800000> : vector<16xf32>
    %61 = vector.multi_reduction <maximumf>, %60, %cst_45 [1] : vector<16x16xf32> to vector<16xf32>
    %62 = vector.shape_cast %61 : vector<16xf32> to vector<16x1xf32>
    %63 = arith.maximumf %55, %62 : vector<16x1xf32>
    %64 = arith.subf %55, %63 : vector<16x1xf32>
    %65 = math.exp %64 : vector<16x1xf32>
    %66 = vector.broadcast %63 : vector<16x1xf32> to vector<16x16xf32>
    %67 = arith.subf %60, %66 : vector<16x16xf32>
    %68 = math.exp %67 : vector<16x16xf32>
    %69 = arith.mulf %65, %57 : vector<16x1xf32>
    %cst_46 = arith.constant dense<0.000000e+00> : vector<16xf32>
    %70 = vector.multi_reduction <add>, %68, %cst_46 [1] : vector<16x16xf32> to vector<16xf32>
    %71 = vector.shape_cast %70 : vector<16xf32> to vector<16x1xf32>
    %72 = arith.addf %69, %71 : vector<16x1xf32>
    %73 = vector.broadcast %65 : vector<16x1xf32> to vector<16x16xf32>
    %74 = arith.mulf %73, %59 : vector<16x16xf32>
    %75 = arith.truncf %68 : vector<16x16xf32> to vector<16x16xbf16>
    %cst_47 = arith.constant dense<0.000000e+00> : vector<16x16xf32>
    %76 = tpu.matmul %75, %53, %cst_47 {dimension_numbers = #tpu.dot_dimension_numbers<[1], [0], [0], [1], [0, 0, 1, 1], [], []>} : vector<16x16xbf16>, vector<16x16xbf16>, vector<16x16xf32> -> vector<16x16xf32>
    %77 = arith.addf %74, %76 : vector<16x16xf32>
    %c1_48 = arith.constant 1 : index
    %c0_49 = arith.constant 0 : index
    %c0_50 = arith.constant 0 : index
    %78 = vector.load %arg7[%c1_48, %c0_49, %c0_50] : memref<2x16x1xf32, #tpu.memory_space<vmem>>, vector<1x16x1xf32>
    %79 = vector.shape_cast %78 : vector<1x16x1xf32> to vector<16x1xf32>
    %80 = vector.shape_cast %63 : vector<16x1xf32> to vector<1x16x1xf32>
    tpu.vector_store %arg7[%c1_48, %c0_49, %c0_50], %80 {strides = array<i32>} : memref<2x16x1xf32, #tpu.memory_space<vmem>>, vector<1x16x1xf32>,
    %c1_51 = arith.constant 1 : index
    %c0_52 = arith.constant 0 : index
    %c0_53 = arith.constant 0 : index
    %81 = vector.load %arg8[%c1_51, %c0_52, %c0_53] : memref<2x16x1xf32, #tpu.memory_space<vmem>>, vector<1x16x1xf32>
    %82 = vector.shape_cast %81 : vector<1x16x1xf32> to vector<16x1xf32>
    %83 = vector.shape_cast %72 : vector<16x1xf32> to vector<1x16x1xf32>
    tpu.vector_store %arg8[%c1_51, %c0_52, %c0_53], %83 {strides = array<i32>} : memref<2x16x1xf32, #tpu.memory_space<vmem>>, vector<1x16x1xf32>,
    %c1_54 = arith.constant 1 : index
    %c0_55 = arith.constant 0 : index
    %c0_56 = arith.constant 0 : index
    %84 = vector.load %arg9[%c1_54, %c0_55, %c0_56] : memref<2x16x16xf32, #tpu.memory_space<vmem>>, vector<1x16x16xf32>
    %85 = vector.shape_cast %84 : vector<1x16x16xf32> to vector<16x16xf32>
    %86 = vector.shape_cast %77 : vector<16x16xf32> to vector<1x16x16xf32>
    tpu.vector_store %arg9[%c1_54, %c0_55, %c0_56], %86 {strides = array<i32>} : memref<2x16x16xf32, #tpu.memory_space<vmem>>, vector<1x16x16xf32>,
    %c0_i32_57 = arith.constant 0 : i32
    %87 = arith.cmpi eq, %arg2, %c0_i32_57 : i32
    %88 = arith.extui %87 : i1 to i32
    %c0_i32_58 = arith.constant 0 : i32
    %89 = arith.cmpi ne, %88, %c0_i32_58 : i32
    scf.if %89 {
      %c0_59 = arith.constant 0 : index
      %c0_60 = arith.constant 0 : index
      %c0_61 = arith.constant 0 : index
      %90 = vector.load %arg9[%c0_59, %c0_60, %c0_61] : memref<2x16x16xf32, #tpu.memory_space<vmem>>, vector<1x16x16xf32>
      %91 = vector.shape_cast %90 : vector<1x16x16xf32> to vector<16x16xf32>
      %c0_62 = arith.constant 0 : index
      %c0_63 = arith.constant 0 : index
      %c0_64 = arith.constant 0 : index
      %92 = vector.load %arg8[%c0_62, %c0_63, %c0_64] : memref<2x16x1xf32, #tpu.memory_space<vmem>>, vector<1x16x1xf32>
      %93 = vector.shape_cast %92 : vector<1x16x1xf32> to vector<16x1xf32>
      %94 = tpu.reciprocal %93 {approx = true} : vector<16x1xf32> -> vector<16x1xf32>
      %95 = vector.broadcast %94 : vector<16x1xf32> to vector<16x16xf32>
      %96 = arith.mulf %91, %95 : vector<16x16xf32>
      %97 = arith.truncf %96 : vector<16x16xf32> to vector<16x16xbf16>
      %c1_65 = arith.constant 1 : index
      %c0_66 = arith.constant 0 : index
      %c0_67 = arith.constant 0 : index
      %98 = vector.load %arg9[%c1_65, %c0_66, %c0_67] : memref<2x16x16xf32, #tpu.memory_space<vmem>>, vector<1x16x16xf32>
      %99 = vector.shape_cast %98 : vector<1x16x16xf32> to vector<16x16xf32>
      %c1_68 = arith.constant 1 : index
      %c0_69 = arith.constant 0 : index
      %c0_70 = arith.constant 0 : index
      %100 = vector.load %arg8[%c1_68, %c0_69, %c0_70] : memref<2x16x1xf32, #tpu.memory_space<vmem>>, vector<1x16x1xf32>
      %101 = vector.shape_cast %100 : vector<1x16x1xf32> to vector<16x1xf32>
      %102 = tpu.reciprocal %101 {approx = true} : vector<16x1xf32> -> vector<16x1xf32>
      %103 = vector.broadcast %102 : vector<16x1xf32> to vector<16x16xf32>
      %104 = arith.mulf %99, %103 : vector<16x16xf32>
      %105 = arith.truncf %104 : vector<16x16xf32> to vector<16x16xbf16>
      %106 = tpu.concatenate %97, %105 in 1 : vector<16x16xbf16>, vector<16x16xbf16> -> vector<16x32xbf16>
      %c0_71 = arith.constant 0 : index
      %c0_72 = arith.constant 0 : index
      %c0_73 = arith.constant 0 : index
      %107 = vector.load %arg6[%c0_71, %c0_72, %c0_73] : memref<1x16x32xbf16, #tpu.memory_space<vmem>>, vector<1x16x32xbf16>
      %108 = vector.shape_cast %107 : vector<1x16x32xbf16> to vector<16x32xbf16>
      %109 = vector.shape_cast %106 : vector<16x32xbf16> to vector<1x16x32xbf16>
      tpu.vector_store %arg6[%c0_71, %c0_72, %c0_73], %109 {strides = array<i32>} : memref<1x16x32xbf16, #tpu.memory_space<vmem>>, vector<1x16x32xbf16>,
    } else {
    }
    return
  }
  func.func @transform_0(%arg0: i32, %arg1: i32, %arg2: i32) -> (i32, i32, i32, i32, i32) {
    %c0_i32 = arith.constant 0 : i32
    %c0_i32_0 = arith.constant 0 : i32
    %c0_i32_1 = arith.constant 0 : i32
    %c0_i32_2 = arith.constant 0 : i32
    return %arg0, %arg1, %c0_i32, %c0_i32_0, %c0_i32_1 : i32, i32, i32, i32, i32
  }
  func.func @transform_1(%arg0: i32, %arg1: i32, %arg2: i32) -> (i32, i32, i32, i32, i32) {
    %c1_i32 = arith.constant 1 : i32
    %c0_i32 = arith.constant 0 : i32
    %c0_i32_0 = arith.constant 0 : i32
    %c0_i32_1 = arith.constant 0 : i32
    return %arg0, %arg2, %c1_i32, %c0_i32, %c0_i32_0 : i32, i32, i32, i32, i32
  }
  func.func @transform_2(%arg0: i32, %arg1: i32, %arg2: i32) -> (i32, i32, i32, i32, i32) {
    %c2_i32 = arith.constant 2 : i32
    %c0_i32 = arith.constant 0 : i32
    %c0_i32_0 = arith.constant 0 : i32
    %c0_i32_1 = arith.constant 0 : i32
    return %arg0, %arg2, %c2_i32, %c0_i32, %c0_i32_0 : i32, i32, i32, i32, i32
  }
  func.func @transform_3(%arg0: i32, %arg1: i32, %arg2: i32) -> (i32, i32, i32) {
    %c0_i32 = arith.constant 0 : i32
    %c0_i32_0 = arith.constant 0 : i32
    return %arg0, %arg1, %c0_i32 : i32, i32, i32
  }
}

module attributes {stable_mosaic.version = 11 : i64} {
  func.func @residual_matmul_bias_kernel(%arg0: i32, %arg1: memref<32x32xbf16, #tpu.memory_space<vmem>>, %arg2: memref<32x32xbf16, #tpu.memory_space<vmem>>, %arg3: memref<32x32xbf16, #tpu.memory_space<vmem>>, %arg4: memref<1x32xf32, #tpu.memory_space<vmem>>, %arg5: memref<32x32xbf16, #tpu.memory_space<vmem>>) attributes {dimension_semantics = [#tpu.dimension_semantics<parallel>], iteration_bounds = array<i64: 1>, scalar_prefetch = 0 : i64, scratch_operands = 0 : i64, tpu.core_type = #tpu.core_type<tc>, window_params = [{transform_indices = @transform_0, window_bounds = array<i64: 32, 32>}, {transform_indices = @transform_1, window_bounds = array<i64: 32, 32>}, {pipeline_mode = #tpu.pipeline_mode<synchronous>, transform_indices = @transform_2, window_bounds = array<i64: 32, 32>}, {pipeline_mode = #tpu.pipeline_mode<synchronous>, transform_indices = @transform_3, window_bounds = array<i64: 1, 32>}, {transform_indices = @transform_4, window_bounds = array<i64: 32, 32>}]} {
    %c0 = arith.constant 0 : index
    %c0_0 = arith.constant 0 : index
    %0 = vector.load %arg1[%c0, %c0_0] : memref<32x32xbf16, #tpu.memory_space<vmem>>, vector<32x32xbf16>
    %1 = arith.extf %0 : vector<32x32xbf16> to vector<32x32xf32>
    %c0_1 = arith.constant 0 : index
    %c0_2 = arith.constant 0 : index
    %2 = vector.load %arg2[%c0_1, %c0_2] : memref<32x32xbf16, #tpu.memory_space<vmem>>, vector<32x32xbf16>
    %c0_3 = arith.constant 0 : index
    %c0_4 = arith.constant 0 : index
    %3 = vector.load %arg3[%c0_3, %c0_4] : memref<32x32xbf16, #tpu.memory_space<vmem>>, vector<32x32xbf16>
    %cst = arith.constant dense<0.000000e+00> : vector<32x32xf32>
    %4 = tpu.matmul %2, %3, %cst {dimension_numbers = #tpu.dot_dimension_numbers<[1], [0], [0], [1], [0, 0, 1, 1], [], []>} : vector<32x32xbf16>, vector<32x32xbf16>, vector<32x32xf32> -> vector<32x32xf32>
    %5 = arith.addf %1, %4 : vector<32x32xf32>
    %c0_5 = arith.constant 0 : index
    %c0_6 = arith.constant 0 : index
    %6 = vector.load %arg4[%c0_5, %c0_6] : memref<1x32xf32, #tpu.memory_space<vmem>>, vector<1x32xf32>
    %7 = vector.broadcast %6 : vector<1x32xf32> to vector<32x32xf32>
    %8 = arith.addf %5, %7 : vector<32x32xf32>
    %9 = arith.truncf %8 : vector<32x32xf32> to vector<32x32xbf16>
    %c0_7 = arith.constant 0 : index
    %c0_8 = arith.constant 0 : index
    %10 = vector.load %arg5[%c0_7, %c0_8] : memref<32x32xbf16, #tpu.memory_space<vmem>>, vector<32x32xbf16>
    tpu.vector_store %arg5[%c0_7, %c0_8], %9 {strides = array<i32>} : memref<32x32xbf16, #tpu.memory_space<vmem>>, vector<32x32xbf16>,
    return
  }
  func.func @transform_0(%arg0: i32) -> (i32, i32) {
    %c0_i32 = arith.constant 0 : i32
    %c0_i32_0 = arith.constant 0 : i32
    return %arg0, %c0_i32 : i32, i32
  }
  func.func @transform_1(%arg0: i32) -> (i32, i32) {
    %c0_i32 = arith.constant 0 : i32
    %c0_i32_0 = arith.constant 0 : i32
    return %arg0, %c0_i32 : i32, i32
  }
  func.func @transform_2(%arg0: i32) -> (i32, i32) {
    %c0_i32 = arith.constant 0 : i32
    %c0_i32_0 = arith.constant 0 : i32
    %c0_i32_1 = arith.constant 0 : i32
    return %c0_i32, %c0_i32_0 : i32, i32
  }
  func.func @transform_3(%arg0: i32) -> (i32, i32) {
    %c0_i32 = arith.constant 0 : i32
    %c0_i32_0 = arith.constant 0 : i32
    %c0_i32_1 = arith.constant 0 : i32
    return %c0_i32, %c0_i32_0 : i32, i32
  }
  func.func @transform_4(%arg0: i32) -> (i32, i32) {
    %c0_i32 = arith.constant 0 : i32
    %c0_i32_0 = arith.constant 0 : i32
    return %arg0, %c0_i32 : i32, i32
  }
}

module attributes {stable_mosaic.version = 11 : i64} {
  func.func @mlp_residual_kernel(%arg0: i32, %arg1: i32, %arg2: memref<32x32xbf16, #tpu.memory_space<vmem>>, %arg3: memref<1x32xf32, #tpu.memory_space<vmem>>, %arg4: memref<1x32xf32, #tpu.memory_space<vmem>>, %arg5: memref<32x128xbf16, #tpu.memory_space<vmem>>, %arg6: memref<1x128xf32, #tpu.memory_space<vmem>>, %arg7: memref<128x32xbf16, #tpu.memory_space<vmem>>, %arg8: memref<1x32xf32, #tpu.memory_space<vmem>>, %arg9: memref<32x32xbf16, #tpu.memory_space<vmem>>, %arg10: memref<32x32xf32, #tpu.memory_space<vmem>>, %arg11: memref<32x32xbf16, #tpu.memory_space<vmem>>) attributes {dimension_semantics = [#tpu.dimension_semantics<parallel>, #tpu.dimension_semantics<arbitrary>], iteration_bounds = array<i64: 1, 1>, scalar_prefetch = 0 : i64, scratch_operands = 2 : i64, tpu.core_type = #tpu.core_type<tc>, window_params = [{transform_indices = @transform_0, window_bounds = array<i64: 32, 32>}, {pipeline_mode = #tpu.pipeline_mode<synchronous>, transform_indices = @transform_1, window_bounds = array<i64: 1, 32>}, {pipeline_mode = #tpu.pipeline_mode<synchronous>, transform_indices = @transform_2, window_bounds = array<i64: 1, 32>}, {transform_indices = @transform_3, window_bounds = array<i64: 32, 128>}, {transform_indices = @transform_4, window_bounds = array<i64: 1, 128>}, {transform_indices = @transform_5, window_bounds = array<i64: 128, 32>}, {pipeline_mode = #tpu.pipeline_mode<synchronous>, transform_indices = @transform_6, window_bounds = array<i64: 1, 32>}, {transform_indices = @transform_7, window_bounds = array<i64: 32, 32>}]} {
    %c0_i32 = arith.constant 0 : i32
    %0 = arith.cmpi eq, %arg1, %c0_i32 : i32
    %1 = arith.extui %0 : i1 to i32
    %c0_i32_0 = arith.constant 0 : i32
    %2 = arith.cmpi ne, %1, %c0_i32_0 : i32
    scf.if %2 {
      %c0_19 = arith.constant 0 : index
      %c0_20 = arith.constant 0 : index
      %31 = vector.load %arg2[%c0_19, %c0_20] : memref<32x32xbf16, #tpu.memory_space<vmem>>, vector<32x32xbf16>
      %32 = arith.extf %31 : vector<32x32xbf16> to vector<32x32xf32>
      %c0_21 = arith.constant 0 : index
      %c0_22 = arith.constant 0 : index
      %33 = vector.load %arg8[%c0_21, %c0_22] : memref<1x32xf32, #tpu.memory_space<vmem>>, vector<1x32xf32>
      %34 = vector.broadcast %33 : vector<1x32xf32> to vector<32x32xf32>
      %35 = arith.addf %32, %34 : vector<32x32xf32>
      %c0_23 = arith.constant 0 : index
      %c0_24 = arith.constant 0 : index
      %36 = vector.load %arg10[%c0_23, %c0_24] : memref<32x32xf32, #tpu.memory_space<vmem>>, vector<32x32xf32>
      tpu.vector_store %arg10[%c0_23, %c0_24], %35 {strides = array<i32>} : memref<32x32xf32, #tpu.memory_space<vmem>>, vector<32x32xf32>,
      %c0_25 = arith.constant 0 : index
      %c0_26 = arith.constant 0 : index
      %37 = vector.load %arg3[%c0_25, %c0_26] : memref<1x32xf32, #tpu.memory_space<vmem>>, vector<1x32xf32>
      %c0_27 = arith.constant 0 : index
      %c0_28 = arith.constant 0 : index
      %38 = vector.load %arg4[%c0_27, %c0_28] : memref<1x32xf32, #tpu.memory_space<vmem>>, vector<1x32xf32>
      %39 = arith.extf %31 : vector<32x32xbf16> to vector<32x32xf32>
      %cst_29 = arith.constant dense<0.000000e+00> : vector<32xf32>
      %40 = vector.multi_reduction <add>, %39, %cst_29 [1] : vector<32x32xf32> to vector<32xf32>
      %41 = vector.shape_cast %40 : vector<32xf32> to vector<32x1xf32>
      %cst_30 = arith.constant 3.200000e+01 : f32
      %42 = vector.broadcast %cst_30 : f32 to vector<32x1xf32>
      %43 = arith.divf %41, %42 : vector<32x1xf32>
      %44 = vector.broadcast %43 : vector<32x1xf32> to vector<32x32xf32>
      %45 = arith.subf %39, %44 : vector<32x32xf32>
      %46 = arith.mulf %45, %45 : vector<32x32xf32>
      %cst_31 = arith.constant dense<0.000000e+00> : vector<32xf32>
      %47 = vector.multi_reduction <add>, %46, %cst_31 [1] : vector<32x32xf32> to vector<32xf32>
      %48 = vector.shape_cast %47 : vector<32xf32> to vector<32x1xf32>
      %cst_32 = arith.constant 3.200000e+01 : f32
      %49 = vector.broadcast %cst_32 : f32 to vector<32x1xf32>
      %50 = arith.divf %48, %49 : vector<32x1xf32>
      %51 = vector.broadcast %43 : vector<32x1xf32> to vector<32x32xf32>
      %52 = arith.subf %39, %51 : vector<32x32xf32>
      %cst_33 = arith.constant 9.99999997E-7 : f32
      %53 = vector.broadcast %cst_33 : f32 to vector<32x1xf32>
      %54 = arith.addf %50, %53 : vector<32x1xf32>
      %55 = math.rsqrt %54 : vector<32x1xf32>
      %56 = vector.broadcast %55 : vector<32x1xf32> to vector<32x32xf32>
      %57 = arith.mulf %52, %56 : vector<32x32xf32>
      %58 = vector.broadcast %37 : vector<1x32xf32> to vector<32x32xf32>
      %59 = arith.mulf %57, %58 : vector<32x32xf32>
      %60 = vector.broadcast %38 : vector<1x32xf32> to vector<32x32xf32>
      %61 = arith.addf %59, %60 : vector<32x32xf32>
      %62 = arith.truncf %61 : vector<32x32xf32> to vector<32x32xbf16>
      %c0_34 = arith.constant 0 : index
      %c0_35 = arith.constant 0 : index
      %63 = vector.load %arg11[%c0_34, %c0_35] : memref<32x32xbf16, #tpu.memory_space<vmem>>, vector<32x32xbf16>
      tpu.vector_store %arg11[%c0_34, %c0_35], %62 {strides = array<i32>} : memref<32x32xbf16, #tpu.memory_space<vmem>>, vector<32x32xbf16>,
    } else {
    }
    %c0 = arith.constant 0 : index
    %c0_1 = arith.constant 0 : index
    %3 = vector.load %arg11[%c0, %c0_1] : memref<32x32xbf16, #tpu.memory_space<vmem>>, vector<32x32xbf16>
    %c0_2 = arith.constant 0 : index
    %c0_3 = arith.constant 0 : index
    %4 = vector.load %arg5[%c0_2, %c0_3] : memref<32x128xbf16, #tpu.memory_space<vmem>>, vector<32x128xbf16>
    %cst = arith.constant dense<0.000000e+00> : vector<32x128xf32>
    %5 = tpu.matmul %3, %4, %cst {dimension_numbers = #tpu.dot_dimension_numbers<[1], [0], [0], [1], [0, 0, 1, 1], [], []>} : vector<32x32xbf16>, vector<32x128xbf16>, vector<32x128xf32> -> vector<32x128xf32>
    %c0_4 = arith.constant 0 : index
    %c0_5 = arith.constant 0 : index
    %6 = vector.load %arg6[%c0_4, %c0_5] : memref<1x128xf32, #tpu.memory_space<vmem>>, vector<1x128xf32>
    %7 = vector.broadcast %6 : vector<1x128xf32> to vector<32x128xf32>
    %8 = arith.addf %5, %7 : vector<32x128xf32>
    %9 = arith.mulf %8, %8 : vector<32x128xf32>
    %10 = arith.mulf %8, %9 : vector<32x128xf32>
    %cst_6 = arith.constant 4.471500e-02 : f32
    %11 = vector.broadcast %cst_6 : f32 to vector<32x128xf32>
    %12 = arith.mulf %11, %10 : vector<32x128xf32>
    %13 = arith.addf %8, %12 : vector<32x128xf32>
    %cst_7 = arith.constant 0.797884583 : f32
    %14 = vector.broadcast %cst_7 : f32 to vector<32x128xf32>
    %15 = arith.mulf %14, %13 : vector<32x128xf32>
    %16 = math.tanh %15 : vector<32x128xf32>
    %cst_8 = arith.constant 1.000000e+00 : f32
    %17 = vector.broadcast %cst_8 : f32 to vector<32x128xf32>
    %18 = arith.addf %17, %16 : vector<32x128xf32>
    %cst_9 = arith.constant 5.000000e-01 : f32
    %19 = vector.broadcast %cst_9 : f32 to vector<32x128xf32>
    %20 = arith.mulf %19, %18 : vector<32x128xf32>
    %21 = arith.mulf %8, %20 : vector<32x128xf32>
    %c0_10 = arith.constant 0 : index
    %c0_11 = arith.constant 0 : index
    %22 = vector.load %arg10[%c0_10, %c0_11] : memref<32x32xf32, #tpu.memory_space<vmem>>, vector<32x32xf32>
    %23 = arith.truncf %21 : vector<32x128xf32> to vector<32x128xbf16>
    %c0_12 = arith.constant 0 : index
    %c0_13 = arith.constant 0 : index
    %24 = vector.load %arg7[%c0_12, %c0_13] : memref<128x32xbf16, #tpu.memory_space<vmem>>, vector<128x32xbf16>
    %cst_14 = arith.constant dense<0.000000e+00> : vector<32x32xf32>
    %25 = tpu.matmul %23, %24, %cst_14 {dimension_numbers = #tpu.dot_dimension_numbers<[1], [0], [0], [1], [0, 0, 1, 1], [], []>} : vector<32x128xbf16>, vector<128x32xbf16>, vector<32x32xf32> -> vector<32x32xf32>
    %26 = arith.addf %22, %25 : vector<32x32xf32>
    %c0_15 = arith.constant 0 : index
    %c0_16 = arith.constant 0 : index
    %27 = vector.load %arg10[%c0_15, %c0_16] : memref<32x32xf32, #tpu.memory_space<vmem>>, vector<32x32xf32>
    tpu.vector_store %arg10[%c0_15, %c0_16], %26 {strides = array<i32>} : memref<32x32xf32, #tpu.memory_space<vmem>>, vector<32x32xf32>,
    %c0_i32_17 = arith.constant 0 : i32
    %28 = arith.cmpi eq, %arg1, %c0_i32_17 : i32
    %29 = arith.extui %28 : i1 to i32
    %c0_i32_18 = arith.constant 0 : i32
    %30 = arith.cmpi ne, %29, %c0_i32_18 : i32
    scf.if %30 {
      %c0_19 = arith.constant 0 : index
      %c0_20 = arith.constant 0 : index
      %31 = vector.load %arg10[%c0_19, %c0_20] : memref<32x32xf32, #tpu.memory_space<vmem>>, vector<32x32xf32>
      %32 = arith.truncf %31 : vector<32x32xf32> to vector<32x32xbf16>
      %c0_21 = arith.constant 0 : index
      %c0_22 = arith.constant 0 : index
      %33 = vector.load %arg9[%c0_21, %c0_22] : memref<32x32xbf16, #tpu.memory_space<vmem>>, vector<32x32xbf16>
      tpu.vector_store %arg9[%c0_21, %c0_22], %32 {strides = array<i32>} : memref<32x32xbf16, #tpu.memory_space<vmem>>, vector<32x32xbf16>,
    } else {
    }
    return
  }
  func.func @transform_0(%arg0: i32, %arg1: i32) -> (i32, i32) {
    %c0_i32 = arith.constant 0 : i32
    %c0_i32_0 = arith.constant 0 : i32
    return %arg0, %c0_i32 : i32, i32
  }
  func.func @transform_1(%arg0: i32, %arg1: i32) -> (i32, i32) {
    %c0_i32 = arith.constant 0 : i32
    %c0_i32_0 = arith.constant 0 : i32
    %c0_i32_1 = arith.constant 0 : i32
    return %c0_i32, %c0_i32_0 : i32, i32
  }
  func.func @transform_2(%arg0: i32, %arg1: i32) -> (i32, i32) {
    %c0_i32 = arith.constant 0 : i32
    %c0_i32_0 = arith.constant 0 : i32
    %c0_i32_1 = arith.constant 0 : i32
    return %c0_i32, %c0_i32_0 : i32, i32
  }
  func.func @transform_3(%arg0: i32, %arg1: i32) -> (i32, i32) {
    %c0_i32 = arith.constant 0 : i32
    %c0_i32_0 = arith.constant 0 : i32
    return %c0_i32, %arg1 : i32, i32
  }
  func.func @transform_4(%arg0: i32, %arg1: i32) -> (i32, i32) {
    %c0_i32 = arith.constant 0 : i32
    %c0_i32_0 = arith.constant 0 : i32
    return %c0_i32, %arg1 : i32, i32
  }
  func.func @transform_5(%arg0: i32, %arg1: i32) -> (i32, i32) {
    %c0_i32 = arith.constant 0 : i32
    %c0_i32_0 = arith.constant 0 : i32
    return %arg1, %c0_i32 : i32, i32
  }
  func.func @transform_6(%arg0: i32, %arg1: i32) -> (i32, i32) {
    %c0_i32 = arith.constant 0 : i32
    %c0_i32_0 = arith.constant 0 : i32
    %c0_i32_1 = arith.constant 0 : i32
    return %c0_i32, %c0_i32_0 : i32, i32
  }
  func.func @transform_7(%arg0: i32, %arg1: i32) -> (i32, i32) {
    %c0_i32 = arith.constant 0 : i32
    %c0_i32_0 = arith.constant 0 : i32
    return %arg0, %c0_i32 : i32, i32
  }
}

module attributes {stable_mosaic.version = 11 : i64} {
  func.func @matmul_ln_kernel(%arg0: i32, %arg1: memref<32x32xbf16, #tpu.memory_space<vmem>>, %arg2: memref<32x16xbf16, #tpu.memory_space<vmem>>, %arg3: memref<1x16xf32, #tpu.memory_space<vmem>>, %arg4: memref<1x16xf32, #tpu.memory_space<vmem>>, %arg5: memref<32x16xbf16, #tpu.memory_space<vmem>>) attributes {dimension_semantics = [#tpu.dimension_semantics<parallel>], iteration_bounds = array<i64: 1>, scalar_prefetch = 0 : i64, scratch_operands = 0 : i64, tpu.core_type = #tpu.core_type<tc>, window_params = [{transform_indices = @transform_0, window_bounds = array<i64: 32, 32>}, {pipeline_mode = #tpu.pipeline_mode<synchronous>, transform_indices = @transform_1, window_bounds = array<i64: 32, 16>}, {pipeline_mode = #tpu.pipeline_mode<synchronous>, transform_indices = @transform_2, window_bounds = array<i64: 1, 16>}, {pipeline_mode = #tpu.pipeline_mode<synchronous>, transform_indices = @transform_3, window_bounds = array<i64: 1, 16>}, {transform_indices = @transform_4, window_bounds = array<i64: 32, 16>}]} {
    %c0 = arith.constant 0 : index
    %c0_0 = arith.constant 0 : index
    %0 = vector.load %arg1[%c0, %c0_0] : memref<32x32xbf16, #tpu.memory_space<vmem>>, vector<32x32xbf16>
    %c0_1 = arith.constant 0 : index
    %c0_2 = arith.constant 0 : index
    %1 = vector.load %arg2[%c0_1, %c0_2] : memref<32x16xbf16, #tpu.memory_space<vmem>>, vector<32x16xbf16>
    %cst = arith.constant dense<0.000000e+00> : vector<32x16xf32>
    %2 = tpu.matmul %0, %1, %cst {dimension_numbers = #tpu.dot_dimension_numbers<[1], [0], [0], [1], [0, 0, 1, 1], [], []>} : vector<32x32xbf16>, vector<32x16xbf16>, vector<32x16xf32> -> vector<32x16xf32>
    %c0_3 = arith.constant 0 : index
    %c0_4 = arith.constant 0 : index
    %3 = vector.load %arg3[%c0_3, %c0_4] : memref<1x16xf32, #tpu.memory_space<vmem>>, vector<1x16xf32>
    %c0_5 = arith.constant 0 : index
    %c0_6 = arith.constant 0 : index
    %4 = vector.load %arg4[%c0_5, %c0_6] : memref<1x16xf32, #tpu.memory_space<vmem>>, vector<1x16xf32>
    %cst_7 = arith.constant dense<0.000000e+00> : vector<32xf32>
    %5 = vector.multi_reduction <add>, %2, %cst_7 [1] : vector<32x16xf32> to vector<32xf32>
    %6 = vector.shape_cast %5 : vector<32xf32> to vector<32x1xf32>
    %cst_8 = arith.constant 1.600000e+01 : f32
    %7 = vector.broadcast %cst_8 : f32 to vector<32x1xf32>
    %8 = arith.divf %6, %7 : vector<32x1xf32>
    %9 = vector.broadcast %8 : vector<32x1xf32> to vector<32x16xf32>
    %10 = arith.subf %2, %9 : vector<32x16xf32>
    %11 = arith.mulf %10, %10 : vector<32x16xf32>
    %cst_9 = arith.constant dense<0.000000e+00> : vector<32xf32>
    %12 = vector.multi_reduction <add>, %11, %cst_9 [1] : vector<32x16xf32> to vector<32xf32>
    %13 = vector.shape_cast %12 : vector<32xf32> to vector<32x1xf32>
    %cst_10 = arith.constant 1.600000e+01 : f32
    %14 = vector.broadcast %cst_10 : f32 to vector<32x1xf32>
    %15 = arith.divf %13, %14 : vector<32x1xf32>
    %16 = vector.broadcast %8 : vector<32x1xf32> to vector<32x16xf32>
    %17 = arith.subf %2, %16 : vector<32x16xf32>
    %cst_11 = arith.constant 9.99999997E-7 : f32
    %18 = vector.broadcast %cst_11 : f32 to vector<32x1xf32>
    %19 = arith.addf %15, %18 : vector<32x1xf32>
    %20 = math.rsqrt %19 : vector<32x1xf32>
    %21 = vector.broadcast %20 : vector<32x1xf32> to vector<32x16xf32>
    %22 = arith.mulf %17, %21 : vector<32x16xf32>
    %23 = vector.broadcast %3 : vector<1x16xf32> to vector<32x16xf32>
    %24 = arith.mulf %22, %23 : vector<32x16xf32>
    %25 = vector.broadcast %4 : vector<1x16xf32> to vector<32x16xf32>
    %26 = arith.addf %24, %25 : vector<32x16xf32>
    %27 = arith.truncf %26 : vector<32x16xf32> to vector<32x16xbf16>
    %c0_12 = arith.constant 0 : index
    %c0_13 = arith.constant 0 : index
    %28 = vector.load %arg5[%c0_12, %c0_13] : memref<32x16xbf16, #tpu.memory_space<vmem>>, vector<32x16xbf16>
    tpu.vector_store %arg5[%c0_12, %c0_13], %27 {strides = array<i32>} : memref<32x16xbf16, #tpu.memory_space<vmem>>, vector<32x16xbf16>,
    return
  }
  func.func @transform_0(%arg0: i32) -> (i32, i32) {
    %c0_i32 = arith.constant 0 : i32
    %c0_i32_0 = arith.constant 0 : i32
    return %arg0, %c0_i32 : i32, i32
  }
  func.func @transform_1(%arg0: i32) -> (i32, i32) {
    %c0_i32 = arith.constant 0 : i32
    %c0_i32_0 = arith.constant 0 : i32
    %c0_i32_1 = arith.constant 0 : i32
    return %c0_i32, %c0_i32_0 : i32, i32
  }
  func.func @transform_2(%arg0: i32) -> (i32, i32) {
    %c0_i32 = arith.constant 0 : i32
    %c0_i32_0 = arith.constant 0 : i32
    %c0_i32_1 = arith.constant 0 : i32
    return %c0_i32, %c0_i32_0 : i32, i32
  }
  func.func @transform_3(%arg0: i32) -> (i32, i32) {
    %c0_i32 = arith.constant 0 : i32
    %c0_i32_0 = arith.constant 0 : i32
    %c0_i32_1 = arith.constant 0 : i32
    return %c0_i32, %c0_i32_0 : i32, i32
  }
  func.func @transform_4(%arg0: i32) -> (i32, i32) {
    %c0_i32 = arith.constant 0 : i32
    %c0_i32_0 = arith.constant 0 : i32
    return %arg0, %c0_i32 : i32, i32
  }
}

module attributes {stable_mosaic.version = 11 : i64} {
  func.func @conv3x3_ln_kernel(%arg0: i32, %arg1: memref<1x64x16xbf16, #tpu.memory_space<vmem>>, %arg2: memref<9x16x16xbf16, #tpu.memory_space<vmem>>, %arg3: memref<1x16xf32, #tpu.memory_space<vmem>>, %arg4: memref<1x16xf32, #tpu.memory_space<vmem>>, %arg5: memref<1x32x16xf32, #tpu.memory_space<vmem>>, %arg6: memref<32x16xf32, #tpu.memory_space<vmem>>) attributes {dimension_semantics = [#tpu.dimension_semantics<parallel>], iteration_bounds = array<i64: 2>, scalar_prefetch = 0 : i64, scratch_operands = 1 : i64, tpu.core_type = #tpu.core_type<tc>, window_params = [{transform_indices = @transform_0, window_bounds = array<i64: 1, 64, 16>}, {pipeline_mode = #tpu.pipeline_mode<synchronous>, transform_indices = @transform_1, window_bounds = array<i64: 9, 16, 16>}, {pipeline_mode = #tpu.pipeline_mode<synchronous>, transform_indices = @transform_2, window_bounds = array<i64: 1, 16>}, {pipeline_mode = #tpu.pipeline_mode<synchronous>, transform_indices = @transform_3, window_bounds = array<i64: 1, 16>}, {transform_indices = @transform_4, window_bounds = array<i64: 1, 32, 16>}]} {
    %c0 = arith.constant 0 : index
    %c0_0 = arith.constant 0 : index
    %c0_1 = arith.constant 0 : index
    %0 = vector.load %arg1[%c0, %c0_0, %c0_1] : memref<1x64x16xbf16, #tpu.memory_space<vmem>>, vector<1x64x16xbf16>
    %1 = vector.shape_cast %0 : vector<1x64x16xbf16> to vector<64x16xbf16>
    %2 = vector.extract_strided_slice %1 {offsets = [7, 0], sizes = [32, 16], strides = [1, 1]} : vector<64x16xbf16> to vector<32x16xbf16>
    %c0_2 = arith.constant 0 : index
    %c0_3 = arith.constant 0 : index
    %c0_4 = arith.constant 0 : index
    %3 = vector.load %arg2[%c0_2, %c0_3, %c0_4] : memref<9x16x16xbf16, #tpu.memory_space<vmem>>, vector<1x16x16xbf16>
    %4 = vector.shape_cast %3 : vector<1x16x16xbf16> to vector<16x16xbf16>
    %cst = arith.constant dense<0.000000e+00> : vector<32x16xf32>
    %5 = tpu.matmul %2, %4, %cst {dimension_numbers = #tpu.dot_dimension_numbers<[1], [0], [0], [1], [0, 0, 1, 1], [], []>} : vector<32x16xbf16>, vector<16x16xbf16>, vector<32x16xf32> -> vector<32x16xf32>
    %c0_5 = arith.constant 0 : index
    %c0_6 = arith.constant 0 : index
    %6 = vector.load %arg6[%c0_5, %c0_6] : memref<32x16xf32, #tpu.memory_space<vmem>>, vector<32x16xf32>
    tpu.vector_store %arg6[%c0_5, %c0_6], %5 {strides = array<i32>} : memref<32x16xf32, #tpu.memory_space<vmem>>, vector<32x16xf32>,
    %7 = vector.extract_strided_slice %1 {offsets = [8, 0], sizes = [32, 16], strides = [1, 1]} : vector<64x16xbf16> to vector<32x16xbf16>
    %c1 = arith.constant 1 : index
    %c0_7 = arith.constant 0 : index
    %c0_8 = arith.constant 0 : index
    %8 = vector.load %arg2[%c1, %c0_7, %c0_8] : memref<9x16x16xbf16, #tpu.memory_space<vmem>>, vector<1x16x16xbf16>
    %9 = vector.shape_cast %8 : vector<1x16x16xbf16> to vector<16x16xbf16>
    %cst_9 = arith.constant dense<0.000000e+00> : vector<32x16xf32>
    %10 = tpu.matmul %7, %9, %cst_9 {dimension_numbers = #tpu.dot_dimension_numbers<[1], [0], [0], [1], [0, 0, 1, 1], [], []>} : vector<32x16xbf16>, vector<16x16xbf16>, vector<32x16xf32> -> vector<32x16xf32>
    %c0_10 = arith.constant 0 : index
    %c0_11 = arith.constant 0 : index
    %11 = vector.load %arg6[%c0_10, %c0_11] : memref<32x16xf32, #tpu.memory_space<vmem>>, vector<32x16xf32>
    %12 = arith.addf %11, %10 : vector<32x16xf32>
    %c0_12 = arith.constant 0 : index
    %c0_13 = arith.constant 0 : index
    %13 = vector.load %arg6[%c0_12, %c0_13] : memref<32x16xf32, #tpu.memory_space<vmem>>, vector<32x16xf32>
    tpu.vector_store %arg6[%c0_12, %c0_13], %12 {strides = array<i32>} : memref<32x16xf32, #tpu.memory_space<vmem>>, vector<32x16xf32>,
    %14 = vector.extract_strided_slice %1 {offsets = [9, 0], sizes = [32, 16], strides = [1, 1]} : vector<64x16xbf16> to vector<32x16xbf16>
    %c2 = arith.constant 2 : index
    %c0_14 = arith.constant 0 : index
    %c0_15 = arith.constant 0 : index
    %15 = vector.load %arg2[%c2, %c0_14, %c0_15] : memref<9x16x16xbf16, #tpu.memory_space<vmem>>, vector<1x16x16xbf16>
    %16 = vector.shape_cast %15 : vector<1x16x16xbf16> to vector<16x16xbf16>
    %cst_16 = arith.constant dense<0.000000e+00> : vector<32x16xf32>
    %17 = tpu.matmul %14, %16, %cst_16 {dimension_numbers = #tpu.dot_dimension_numbers<[1], [0], [0], [1], [0, 0, 1, 1], [], []>} : vector<32x16xbf16>, vector<16x16xbf16>, vector<32x16xf32> -> vector<32x16xf32>
    %c0_17 = arith.constant 0 : index
    %c0_18 = arith.constant 0 : index
    %18 = vector.load %arg6[%c0_17, %c0_18] : memref<32x16xf32, #tpu.memory_space<vmem>>, vector<32x16xf32>
    %19 = arith.addf %18, %17 : vector<32x16xf32>
    %c0_19 = arith.constant 0 : index
    %c0_20 = arith.constant 0 : index
    %20 = vector.load %arg6[%c0_19, %c0_20] : memref<32x16xf32, #tpu.memory_space<vmem>>, vector<32x16xf32>
    tpu.vector_store %arg6[%c0_19, %c0_20], %19 {strides = array<i32>} : memref<32x16xf32, #tpu.memory_space<vmem>>, vector<32x16xf32>,
    %21 = vector.extract_strided_slice %1 {offsets = [15, 0], sizes = [32, 16], strides = [1, 1]} : vector<64x16xbf16> to vector<32x16xbf16>
    %c3 = arith.constant 3 : index
    %c0_21 = arith.constant 0 : index
    %c0_22 = arith.constant 0 : index
    %22 = vector.load %arg2[%c3, %c0_21, %c0_22] : memref<9x16x16xbf16, #tpu.memory_space<vmem>>, vector<1x16x16xbf16>
    %23 = vector.shape_cast %22 : vector<1x16x16xbf16> to vector<16x16xbf16>
    %cst_23 = arith.constant dense<0.000000e+00> : vector<32x16xf32>
    %24 = tpu.matmul %21, %23, %cst_23 {dimension_numbers = #tpu.dot_dimension_numbers<[1], [0], [0], [1], [0, 0, 1, 1], [], []>} : vector<32x16xbf16>, vector<16x16xbf16>, vector<32x16xf32> -> vector<32x16xf32>
    %c0_24 = arith.constant 0 : index
    %c0_25 = arith.constant 0 : index
    %25 = vector.load %arg6[%c0_24, %c0_25] : memref<32x16xf32, #tpu.memory_space<vmem>>, vector<32x16xf32>
    %26 = arith.addf %25, %24 : vector<32x16xf32>
    %c0_26 = arith.constant 0 : index
    %c0_27 = arith.constant 0 : index
    %27 = vector.load %arg6[%c0_26, %c0_27] : memref<32x16xf32, #tpu.memory_space<vmem>>, vector<32x16xf32>
    tpu.vector_store %arg6[%c0_26, %c0_27], %26 {strides = array<i32>} : memref<32x16xf32, #tpu.memory_space<vmem>>, vector<32x16xf32>,
    %28 = vector.extract_strided_slice %1 {offsets = [16, 0], sizes = [32, 16], strides = [1, 1]} : vector<64x16xbf16> to vector<32x16xbf16>
    %c4 = arith.constant 4 : index
    %c0_28 = arith.constant 0 : index
    %c0_29 = arith.constant 0 : index
    %29 = vector.load %arg2[%c4, %c0_28, %c0_29] : memref<9x16x16xbf16, #tpu.memory_space<vmem>>, vector<1x16x16xbf16>
    %30 = vector.shape_cast %29 : vector<1x16x16xbf16> to vector<16x16xbf16>
    %cst_30 = arith.constant dense<0.000000e+00> : vector<32x16xf32>
    %31 = tpu.matmul %28, %30, %cst_30 {dimension_numbers = #tpu.dot_dimension_numbers<[1], [0], [0], [1], [0, 0, 1, 1], [], []>} : vector<32x16xbf16>, vector<16x16xbf16>, vector<32x16xf32> -> vector<32x16xf32>
    %c0_31 = arith.constant 0 : index
    %c0_32 = arith.constant 0 : index
    %32 = vector.load %arg6[%c0_31, %c0_32] : memref<32x16xf32, #tpu.memory_space<vmem>>, vector<32x16xf32>
    %33 = arith.addf %32, %31 : vector<32x16xf32>
    %c0_33 = arith.constant 0 : index
    %c0_34 = arith.constant 0 : index
    %34 = vector.load %arg6[%c0_33, %c0_34] : memref<32x16xf32, #tpu.memory_space<vmem>>, vector<32x16xf32>
    tpu.vector_store %arg6[%c0_33, %c0_34], %33 {strides = array<i32>} : memref<32x16xf32, #tpu.memory_space<vmem>>, vector<32x16xf32>,
    %35 = vector.extract_strided_slice %1 {offsets = [17, 0], sizes = [32, 16], strides = [1, 1]} : vector<64x16xbf16> to vector<32x16xbf16>
    %c5 = arith.constant 5 : index
    %c0_35 = arith.constant 0 : index
    %c0_36 = arith.constant 0 : index
    %36 = vector.load %arg2[%c5, %c0_35, %c0_36] : memref<9x16x16xbf16, #tpu.memory_space<vmem>>, vector<1x16x16xbf16>
    %37 = vector.shape_cast %36 : vector<1x16x16xbf16> to vector<16x16xbf16>
    %cst_37 = arith.constant dense<0.000000e+00> : vector<32x16xf32>
    %38 = tpu.matmul %35, %37, %cst_37 {dimension_numbers = #tpu.dot_dimension_numbers<[1], [0], [0], [1], [0, 0, 1, 1], [], []>} : vector<32x16xbf16>, vector<16x16xbf16>, vector<32x16xf32> -> vector<32x16xf32>
    %c0_38 = arith.constant 0 : index
    %c0_39 = arith.constant 0 : index
    %39 = vector.load %arg6[%c0_38, %c0_39] : memref<32x16xf32, #tpu.memory_space<vmem>>, vector<32x16xf32>
    %40 = arith.addf %39, %38 : vector<32x16xf32>
    %c0_40 = arith.constant 0 : index
    %c0_41 = arith.constant 0 : index
    %41 = vector.load %arg6[%c0_40, %c0_41] : memref<32x16xf32, #tpu.memory_space<vmem>>, vector<32x16xf32>
    tpu.vector_store %arg6[%c0_40, %c0_41], %40 {strides = array<i32>} : memref<32x16xf32, #tpu.memory_space<vmem>>, vector<32x16xf32>,
    %42 = vector.extract_strided_slice %1 {offsets = [23, 0], sizes = [32, 16], strides = [1, 1]} : vector<64x16xbf16> to vector<32x16xbf16>
    %c6 = arith.constant 6 : index
    %c0_42 = arith.constant 0 : index
    %c0_43 = arith.constant 0 : index
    %43 = vector.load %arg2[%c6, %c0_42, %c0_43] : memref<9x16x16xbf16, #tpu.memory_space<vmem>>, vector<1x16x16xbf16>
    %44 = vector.shape_cast %43 : vector<1x16x16xbf16> to vector<16x16xbf16>
    %cst_44 = arith.constant dense<0.000000e+00> : vector<32x16xf32>
    %45 = tpu.matmul %42, %44, %cst_44 {dimension_numbers = #tpu.dot_dimension_numbers<[1], [0], [0], [1], [0, 0, 1, 1], [], []>} : vector<32x16xbf16>, vector<16x16xbf16>, vector<32x16xf32> -> vector<32x16xf32>
    %c0_45 = arith.constant 0 : index
    %c0_46 = arith.constant 0 : index
    %46 = vector.load %arg6[%c0_45, %c0_46] : memref<32x16xf32, #tpu.memory_space<vmem>>, vector<32x16xf32>
    %47 = arith.addf %46, %45 : vector<32x16xf32>
    %c0_47 = arith.constant 0 : index
    %c0_48 = arith.constant 0 : index
    %48 = vector.load %arg6[%c0_47, %c0_48] : memref<32x16xf32, #tpu.memory_space<vmem>>, vector<32x16xf32>
    tpu.vector_store %arg6[%c0_47, %c0_48], %47 {strides = array<i32>} : memref<32x16xf32, #tpu.memory_space<vmem>>, vector<32x16xf32>,
    %49 = vector.extract_strided_slice %1 {offsets = [24, 0], sizes = [32, 16], strides = [1, 1]} : vector<64x16xbf16> to vector<32x16xbf16>
    %c7 = arith.constant 7 : index
    %c0_49 = arith.constant 0 : index
    %c0_50 = arith.constant 0 : index
    %50 = vector.load %arg2[%c7, %c0_49, %c0_50] : memref<9x16x16xbf16, #tpu.memory_space<vmem>>, vector<1x16x16xbf16>
    %51 = vector.shape_cast %50 : vector<1x16x16xbf16> to vector<16x16xbf16>
    %cst_51 = arith.constant dense<0.000000e+00> : vector<32x16xf32>
    %52 = tpu.matmul %49, %51, %cst_51 {dimension_numbers = #tpu.dot_dimension_numbers<[1], [0], [0], [1], [0, 0, 1, 1], [], []>} : vector<32x16xbf16>, vector<16x16xbf16>, vector<32x16xf32> -> vector<32x16xf32>
    %c0_52 = arith.constant 0 : index
    %c0_53 = arith.constant 0 : index
    %53 = vector.load %arg6[%c0_52, %c0_53] : memref<32x16xf32, #tpu.memory_space<vmem>>, vector<32x16xf32>
    %54 = arith.addf %53, %52 : vector<32x16xf32>
    %c0_54 = arith.constant 0 : index
    %c0_55 = arith.constant 0 : index
    %55 = vector.load %arg6[%c0_54, %c0_55] : memref<32x16xf32, #tpu.memory_space<vmem>>, vector<32x16xf32>
    tpu.vector_store %arg6[%c0_54, %c0_55], %54 {strides = array<i32>} : memref<32x16xf32, #tpu.memory_space<vmem>>, vector<32x16xf32>,
    %56 = vector.extract_strided_slice %1 {offsets = [25, 0], sizes = [32, 16], strides = [1, 1]} : vector<64x16xbf16> to vector<32x16xbf16>
    %c8 = arith.constant 8 : index
    %c0_56 = arith.constant 0 : index
    %c0_57 = arith.constant 0 : index
    %57 = vector.load %arg2[%c8, %c0_56, %c0_57] : memref<9x16x16xbf16, #tpu.memory_space<vmem>>, vector<1x16x16xbf16>
    %58 = vector.shape_cast %57 : vector<1x16x16xbf16> to vector<16x16xbf16>
    %cst_58 = arith.constant dense<0.000000e+00> : vector<32x16xf32>
    %59 = tpu.matmul %56, %58, %cst_58 {dimension_numbers = #tpu.dot_dimension_numbers<[1], [0], [0], [1], [0, 0, 1, 1], [], []>} : vector<32x16xbf16>, vector<16x16xbf16>, vector<32x16xf32> -> vector<32x16xf32>
    %c0_59 = arith.constant 0 : index
    %c0_60 = arith.constant 0 : index
    %60 = vector.load %arg6[%c0_59, %c0_60] : memref<32x16xf32, #tpu.memory_space<vmem>>, vector<32x16xf32>
    %61 = arith.addf %60, %59 : vector<32x16xf32>
    %c0_61 = arith.constant 0 : index
    %c0_62 = arith.constant 0 : index
    %62 = vector.load %arg6[%c0_61, %c0_62] : memref<32x16xf32, #tpu.memory_space<vmem>>, vector<32x16xf32>
    tpu.vector_store %arg6[%c0_61, %c0_62], %61 {strides = array<i32>} : memref<32x16xf32, #tpu.memory_space<vmem>>, vector<32x16xf32>,
    %c0_63 = arith.constant 0 : index
    %c0_64 = arith.constant 0 : index
    %63 = vector.load %arg6[%c0_63, %c0_64] : memref<32x16xf32, #tpu.memory_space<vmem>>, vector<32x16xf32>
    %c0_65 = arith.constant 0 : index
    %c0_66 = arith.constant 0 : index
    %64 = vector.load %arg3[%c0_65, %c0_66] : memref<1x16xf32, #tpu.memory_space<vmem>>, vector<1x16xf32>
    %c0_67 = arith.constant 0 : index
    %c0_68 = arith.constant 0 : index
    %65 = vector.load %arg4[%c0_67, %c0_68] : memref<1x16xf32, #tpu.memory_space<vmem>>, vector<1x16xf32>
    %cst_69 = arith.constant dense<0.000000e+00> : vector<32xf32>
    %66 = vector.multi_reduction <add>, %63, %cst_69 [1] : vector<32x16xf32> to vector<32xf32>
    %67 = vector.shape_cast %66 : vector<32xf32> to vector<32x1xf32>
    %cst_70 = arith.constant 1.600000e+01 : f32
    %68 = vector.broadcast %cst_70 : f32 to vector<32x1xf32>
    %69 = arith.divf %67, %68 : vector<32x1xf32>
    %70 = vector.broadcast %69 : vector<32x1xf32> to vector<32x16xf32>
    %71 = arith.subf %63, %70 : vector<32x16xf32>
    %72 = arith.mulf %71, %71 : vector<32x16xf32>
    %cst_71 = arith.constant dense<0.000000e+00> : vector<32xf32>
    %73 = vector.multi_reduction <add>, %72, %cst_71 [1] : vector<32x16xf32> to vector<32xf32>
    %74 = vector.shape_cast %73 : vector<32xf32> to vector<32x1xf32>
    %cst_72 = arith.constant 1.600000e+01 : f32
    %75 = vector.broadcast %cst_72 : f32 to vector<32x1xf32>
    %76 = arith.divf %74, %75 : vector<32x1xf32>
    %77 = vector.broadcast %69 : vector<32x1xf32> to vector<32x16xf32>
    %78 = arith.subf %63, %77 : vector<32x16xf32>
    %cst_73 = arith.constant 9.99999997E-7 : f32
    %79 = vector.broadcast %cst_73 : f32 to vector<32x1xf32>
    %80 = arith.addf %76, %79 : vector<32x1xf32>
    %81 = math.rsqrt %80 : vector<32x1xf32>
    %82 = vector.broadcast %81 : vector<32x1xf32> to vector<32x16xf32>
    %83 = arith.mulf %78, %82 : vector<32x16xf32>
    %84 = vector.broadcast %64 : vector<1x16xf32> to vector<32x16xf32>
    %85 = arith.mulf %83, %84 : vector<32x16xf32>
    %86 = vector.broadcast %65 : vector<1x16xf32> to vector<32x16xf32>
    %87 = arith.addf %85, %86 : vector<32x16xf32>
    %c0_74 = arith.constant 0 : index
    %c0_75 = arith.constant 0 : index
    %c0_76 = arith.constant 0 : index
    %88 = vector.load %arg5[%c0_74, %c0_75, %c0_76] : memref<1x32x16xf32, #tpu.memory_space<vmem>>, vector<1x32x16xf32>
    %89 = vector.shape_cast %88 : vector<1x32x16xf32> to vector<32x16xf32>
    %90 = vector.shape_cast %87 : vector<32x16xf32> to vector<1x32x16xf32>
    tpu.vector_store %arg5[%c0_74, %c0_75, %c0_76], %90 {strides = array<i32>} : memref<1x32x16xf32, #tpu.memory_space<vmem>>, vector<1x32x16xf32>,
    return
  }
  func.func @transform_0(%arg0: i32) -> (i32, i32, i32) {
    %c0_i32 = arith.constant 0 : i32
    %c0_i32_0 = arith.constant 0 : i32
    %c0_i32_1 = arith.constant 0 : i32
    return %arg0, %c0_i32, %c0_i32_0 : i32, i32, i32
  }
  func.func @transform_1(%arg0: i32) -> (i32, i32, i32) {
    %c0_i32 = arith.constant 0 : i32
    %c0_i32_0 = arith.constant 0 : i32
    %c0_i32_1 = arith.constant 0 : i32
    %c0_i32_2 = arith.constant 0 : i32
    return %c0_i32, %c0_i32_0, %c0_i32_1 : i32, i32, i32
  }
  func.func @transform_2(%arg0: i32) -> (i32, i32) {
    %c0_i32 = arith.constant 0 : i32
    %c0_i32_0 = arith.constant 0 : i32
    %c0_i32_1 = arith.constant 0 : i32
    return %c0_i32, %c0_i32_0 : i32, i32
  }
  func.func @transform_3(%arg0: i32) -> (i32, i32) {
    %c0_i32 = arith.constant 0 : i32
    %c0_i32_0 = arith.constant 0 : i32
    %c0_i32_1 = arith.constant 0 : i32
    return %c0_i32, %c0_i32_0 : i32, i32
  }
  func.func @transform_4(%arg0: i32) -> (i32, i32, i32) {
    %c0_i32 = arith.constant 0 : i32
    %c0_i32_0 = arith.constant 0 : i32
    %c0_i32_1 = arith.constant 0 : i32
    return %arg0, %c0_i32, %c0_i32_0 : i32, i32, i32
  }
}

</mosaic_0001>

<bundles_post_ra>
// kernel: ft_sam_forward.12
= control target key start
LH: loop header
LB: loop body
LE: loop exit
PB: predicated region body
PF: predicated region fallthrough
CT: control target
= control target key end

     0   :  { %vm31_vm0 = vcmask 261120   ;;  %v238_v10 = vmov 32.0   ;;  %vm192_vm14 = vcmask 781312   ;;  %s332_s0 = inlined_call_operand.vmem [shape: bf16[32,32], index: 0, kind: input, shape index: {}]   ;;  %s333_s1 = inlined_call_operand.vmem [shape: f32[1,32], index: 1, kind: input, shape index: {}]   ;;  %s334_s2 = inlined_call_operand.vmem [shape: f32[1,32], index: 2, kind: input, shape index: {}]   ;;  %s335_s4 = inlined_call_operand.vmem [shape: f32[1,96], index: 4, kind: input, shape index: {}]   ;;  %s336_s3 = inlined_call_operand.vmem [shape: bf16[32,96], index: 3, kind: input, shape index: {}]   ;;  %s337_s5 = inlined_call_operand.vmem [shape: bf16[32,96], index: 5, kind: output, shape index: {}]  }
   0x1   :  { %v221_v0 = vld [vmem:[%s332_s0 + $0x8] sm:$0xff]   ;;  %v214_v1 = vld [vmem:[%s332_s0] sm:$0xff]   ;;  %228 = vrcp.f32 %v238_v10 }
   0x2   :  { %v219_v2 = vunpack.c.l.bf16 %v221_v0  ;;  %v215_v3 = vunpack.c.l.bf16 %v214_v1  ;;  %v220_v6 = vunpack.c.h.bf16 %v221_v0  ;;  %v216_v7 = vunpack.c.h.bf16 %v214_v1  ;;  %v212_v37 = vld [vmem:[%s336_s3 + $0x8] sm:$0xff]  ;;  %v211_v42 = vld [vmem:[%s336_s3] sm:$0xff] }
   0x3   :  { %175 = vmatpush.bf16.msra.mxu0 %v212_v37  ;;  %222 = vmatpush.bf16.msra.mxu1 %v212_v37 }
   0x4   :  { %v38_v4 = vsel %vm31_vm0, %v219_v2, 0.0  ;;  %v32_v5 = vsel %vm31_vm0, %v215_v3, 0.0  ;;  %v41_v8 = vsel %vm31_vm0, %v220_v6, 0.0  ;;  %v35_v9 = vsel %vm31_vm0, %v216_v7, 0.0 }
   0x5   :  { %39 = vadd.xlane.f32.xlu1 %v38_v4  ;;  %33 = vadd.xlane.f32.xlu0 %v32_v5 }
   0x7   :  { %v229_v11 = vpop.eup %228  ;;  %176 = vmatpush.bf16.msra.mxu0 %v211_v42  ;;  %223 = vmatpush.bf16.msra.mxu1 %v211_v42 }
   0x8   :  { %v45_v12 = vmul.f32 32.0, %v229_v11  ;;  %vm49_vm1 = vweird.f32 %v229_v11 }
   0xa   :  { %v46_v13 = vsub.f32 1.0, %v45_v12  ;;  %v225_v12 = vld [vmem:[%s333_s1] ss:$0 sm:$0xff] }
   0xc   :  { %v47_v14 = vmul.f32 %v229_v11, %v46_v13 }
   0xd   :  { %42 = vadd.xlane.f32.xlu1 %v41_v8  ;;  %36 = vadd.xlane.f32.xlu0 %v35_v9 }
   0xe   :  { %v48_v15 = vadd.f32 %v229_v11, %v47_v14 }
  0x10   :  { %v50_v16 = vsel %vm49_vm1, %v229_v11, %v48_v15 }
  0x78   :  { %v40_v17 = vpop.xlane.xlu1 %39  ;;  %v34_v18 = vpop.xlane.xlu0 %33 }
  0x79   :  { %v53_v19 = vmul.f32 %v50_v16, %v40_v17  ;;  %v51_v20 = vmul.f32 %v50_v16, %v34_v18 }
  0x7b   :  { %v279_v21 = vsub.f32 %v219_v2, %v53_v19  ;;  %v281_v22 = vsub.f32 %v215_v3, %v51_v20  ;;  %v226_v19 = vld [vmem:[%s334_s2] ss:$0 sm:$0xff] }
  0x7d   :  { %v61_v23 = vmul.f32 %v279_v21, %v279_v21  ;;  %v59_v24 = vmul.f32 %v281_v22, %v281_v22 }
  0x7f   :  { %v69_v25 = vsel %vm31_vm0, %v61_v23, 0.0  ;;  %v63_v26 = vsel %vm31_vm0, %v59_v24, 0.0 }
  0x80   :  { %v43_v27 = vpop.xlane.xlu1 %42  ;;  %70 = vadd.xlane.f32.xlu0 %v69_v25  ;;  %64 = vadd.xlane.f32.xlu2 %v63_v26  ;;  %v37_v28 = vpop.xlane.xlu0 %36 }
  0x81   :  { %v54_v29 = vmul.f32 %v50_v16, %v43_v27  ;;  %v52_v30 = vmul.f32 %v50_v16, %v37_v28 }
  0x83   :  { %v289_v31 = vsub.f32 %v220_v6, %v54_v29  ;;  %v291_v32 = vsub.f32 %v216_v7, %v52_v30 }
  0x85   :  { %v62_v33 = vmul.f32 %v289_v31, %v289_v31  ;;  %v60_v34 = vmul.f32 %v291_v32, %v291_v32 }
  0x87   :  { %v72_v35 = vsel %vm31_vm0, %v62_v33, 0.0  ;;  %v66_v36 = vsel %vm31_vm0, %v60_v34, 0.0 }
  0x88   :  { %73 = vadd.xlane.f32.xlu1 %v72_v35  ;;  %67 = vadd.xlane.f32.xlu2 %v66_v36 }
  0xf3   :  { %v65_v38 = vpop.xlane.xlu2 %64  ;;  %v71_v39 = vpop.xlane.xlu0 %70 }
  0xf4   :  { %v75_v40 = vmul.f32 %v65_v38, %v50_v16  ;;  %v77_v41 = vmul.f32 %v71_v39, %v50_v16 }
  0xf6   :  { %v79_v43 = vadd.f32 1e-06, %v75_v40  ;;  %v81_v44 = vadd.f32 1e-06, %v77_v41 }
  0xf8   :  { %230 = vrsqrt.f32 %v79_v43  ;;  %vm109_vm4 = vweird.f32 %v81_v44  ;;  %vm89_vm5 = vweird.f32 %v79_v43 }
  0xf9   :  { %232 = vrsqrt.f32 %v81_v44 }
  0xfb   :  { %v74_v45 = vpop.xlane.xlu1 %73  ;;  %v68_v46 = vpop.xlane.xlu2 %67 }
  0xfc   :  { %v78_v47 = vmul.f32 %v74_v45, %v50_v16  ;;  %v76_v48 = vmul.f32 %v68_v46, %v50_v16 }
  0xfe   :  { %v231_v49 = vpop.eup %230  ;;  %v82_v50 = vadd.f32 1e-06, %v78_v47  ;;  %v80_v51 = vadd.f32 1e-06, %v76_v48 }
  0xff   :  { %v233_v52 = vpop.eup %232  ;;  %v84_v53 = vmul.f32 %v231_v49, %v79_v43  ;;  %vm90_vm3 = vweird.f32 %v231_v49 }
 0x100   :  { %v104_v54 = vmul.f32 %v233_v52, %v81_v44  ;;  %234 = vrsqrt.f32 %v82_v50  ;;  %vm110_vm2 = vweird.f32 %v233_v52  ;;  %vm91_vm7 = vmor %vm89_vm5, %vm90_vm3  ;;  %vm119_vm10 = vweird.f32 %v82_v50 }
 0x101   :  { %v85_v55 = vmul.f32 %v231_v49, %v84_v53  ;;  %236 = vrsqrt.f32 %v80_v51  ;;  %vm111_vm6 = vmor %vm109_vm4, %vm110_vm2  ;;  %vm99_vm12 = vweird.f32 %v80_v51 }
 0x102   :  { %v105_v56 = vmul.f32 %v233_v52, %v104_v54 }
 0x103   :  { %v86_v57 = vmul.f32 0.5, %v85_v55 }
 0x104   :  { %v106_v58 = vmul.f32 0.5, %v105_v56 }
 0x105   :  { %v87_v59 = vsub.f32 1.5, %v86_v57 }
 0x106   :  { %v235_v60 = vpop.eup %234  ;;  %v107_v61 = vsub.f32 1.5, %v106_v58 }
 0x107   :  { %v237_v62 = vpop.eup %236  ;;  %v114_v63 = vmul.f32 %v235_v60, %v82_v50  ;;  %v88_v0 = vmul.f32 %v231_v49, %v87_v59  ;;  %vm120_vm8 = vweird.f32 %v235_v60 }
 0x108   :  { %v108_v1 = vmul.f32 %v233_v52, %v107_v61  ;;  %v94_v2 = vmul.f32 %v237_v62, %v80_v51  ;;  %vm100_vm9 = vweird.f32 %v237_v62  ;;  %vm121_vm11 = vmor %vm119_vm10, %vm120_vm8 }
 0x109   :  { %v115_v3 = vmul.f32 %v235_v60, %v114_v63  ;;  %v92_v7 = vsel %vm91_vm7, %v231_v49, %v88_v0  ;;  %vm101_vm13 = vmor %vm99_vm12, %vm100_vm9 }
 0x10a   :  { %v95_v4 = vmul.f32 %v237_v62, %v94_v2  ;;  %v112_v5 = vsel %vm111_vm6, %v233_v52, %v108_v1  ;;  %v123_v13 = vmul.f32 %v92_v7, %v281_v22 }
 0x10b   :  { %v116_v6 = vmul.f32 0.5, %v115_v3  ;;  %v125_v10 = vmul.f32 %v112_v5, %v279_v21 }
 0x10c   :  { %v96_v8 = vmul.f32 0.5, %v95_v4  ;;  %v130_v23 = vmul.f32 %v225_v12, %v123_v13 }
 0x10d   :  { %v117_v9 = vsub.f32 1.5, %v116_v6  ;;  %v132_v20 = vmul.f32 %v225_v12, %v125_v10 }
 0x10e   :  { %v97_v11 = vsub.f32 1.5, %v96_v8  ;;  %v137_v27 = vadd.f32 %v226_v19, %v130_v23 }
 0x10f   :  { %v118_v14 = vmul.f32 %v235_v60, %v117_v9  ;;  %v139_v25 = vadd.f32 %v226_v19, %v132_v20 }
 0x110   :  { %v98_v15 = vmul.f32 %v237_v62, %v97_v11 }
 0x111   :  { %v122_v16 = vsel %vm121_vm11, %v235_v60, %v118_v14 }
 0x112   :  { %v126_v17 = vmul.f32 %v122_v16, %v289_v31  ;;  %v102_v18 = vsel %vm101_vm13, %v237_v62, %v98_v15  ;;  %v227_v31 = vld [vmem:[%s335_s4] ss:$0 sm:$0xff] }
 0x113   :  { %v124_v21 = vmul.f32 %v102_v18, %v291_v32 }
 0x114   :  { %v133_v24 = vmul.f32 %v225_v12, %v126_v17 }
 0x115   :  { %v131_v22 = vmul.f32 %v225_v12, %v124_v21 }
 0x116   :  { %v140_v26 = vadd.f32 %v226_v19, %v133_v24 }
 0x117   :  { %v138_v28 = vadd.f32 %v226_v19, %v131_v22 }
 0x118   :  { %v142_v29 = vpack.c.bf16 %v140_v26, %v139_v25 }
 0x119   :  { %v141_v30 = vpack.c.bf16 %v138_v28, %v137_v27 }
 0x11a   :  { %210 = vmatmul.msk.bf16.vlgmr.msra.gmra.mxu1 %vm31_vm0, %v142_v29 }
 0x11b   :  { %209 = vmatmul.msk.bf16.vlgmr.msra.gmra.mxu0 %vm31_vm0, %v141_v30 }
 0x197   :  { %v183_v33 = vpop.f32.mrf.mxu1 }
 0x198   :  { %v178_v34 = vpop.f32.mrf.mxu0  ;;  %v184_v32 = vadd.f32 %v227_v31, %v183_v33 }
 0x199   :  { %v179_v35 = vadd.f32 %v227_v31, %v178_v34 }
 0x19a   :  { %v190_v36 = vpack.c.bf16 %v184_v32, %v184_v32 }
 0x19b   :  { %v188_v37 = vpack.c.bf16 %v179_v35, %v179_v35 }
 0x19c   :  { %195 = vst.msk [vmem:[%s337_s5 + $0x8] sm:$0xf] %vm192_vm14, %v190_v36 }
 0x19d   :  { %193 = vst.msk [vmem:[%s337_s5] sm:$0xf] %vm192_vm14, %v188_v37 }
 0x19f   :  { %v185_v38 = vpop.f32.mrf.mxu1 }
 0x1a0   :  { %v180_v39 = vpop.f32.mrf.mxu0  ;;  %v186_v40 = vadd.f32 %v227_v31, %v185_v38 }
 0x1a1   :  { %v181_v41 = vadd.f32 %v227_v31, %v180_v39 }
 0x1a2   :  { %v191_v42 = vpack.c.bf16 %v186_v40, %v186_v40 }
 0x1a3   :  { %v189_v43 = vpack.c.bf16 %v181_v41, %v181_v41 }
 0x1a4   :  { %196 = vst.msk [vmem:[%s337_s5 + $0xc] sm:$0xf] %vm192_vm14, %v191_v42 }
 0x1a5   :  { %194 = vst.msk [vmem:[%s337_s5 + $0x4] sm:$0xf] %vm192_vm14, %v189_v43 }

// kernel: ft_sam_forward.11
= control target key start
LH: loop header
LB: loop body
LE: loop exit
PB: predicated region body
PF: predicated region fallthrough
CT: control target
= control target key end

     0   :  { %vm137_vm0 = vcmask 523264   ;;  %vm186_vm1 = vcmask 257024   ;;  %s387_s1 = inlined_call_operand.vmem [shape: bf16[192,32], index: 1, kind: input, shape index: {}]   ;;  %s388_s0 = inlined_call_operand.vmem [shape: bf16[32,192], index: 0, kind: input, shape index: {}]   ;;  %s389_s2 = inlined_call_operand.vmem [shape: f32[1,32], index: 2, kind: input, shape index: {}]   ;;  %s390_s3 = inlined_call_operand.vmem [shape: bf16[32,32], index: 3, kind: output, shape index: {}]  }
   0x1   :  { %v272_v0 = vld [vmem:[%s387_s1 + $0x38] sm:$0xff]  ;;  %v271_v2 = vld [vmem:[%s387_s1 + $0x30] sm:$0xff]  ;;  %v270_v4 = vld [vmem:[%s387_s1 + $0x28] sm:$0xff] }
   0x2   :  { %v276_v1 = vld [vmem:[%s387_s1 + $0x58] sm:$0xff]  ;;  %144 = vmatpush.bf16.msra.mxu0 %v272_v0  ;;  %277 = vmatpush.bf16.msra.mxu2 %v272_v0  ;;  %v275_v3 = vld [vmem:[%s387_s1 + $0x50] sm:$0xff]  ;;  %v274_v5 = vld [vmem:[%s387_s1 + $0x48] sm:$0xff] }
   0x3   :  { %167 = vmatpush.bf16.msra.mxu1 %v276_v1  ;;  %v269_v6 = vld [vmem:[%s387_s1 + $0x20] sm:$0xff]  ;;  %v199_v9 = vld [vmem:[%s388_s0 + $0x8] sm:$0xf0]  ;;  %v268_v11 = vld [vmem:[%s387_s1 + $0x18] sm:$0xff] }
   0x4   :  { %v273_v7 = vld [vmem:[%s387_s1 + $0x40] sm:$0xff]  ;;  %v267_v12 = vld [vmem:[%s387_s1 + $0x10] sm:$0xff]  ;;  %v266_v13 = vld [vmem:[%s387_s1 + $0x8] sm:$0xff] }
   0x5   :  { %v261_v8 = vld [vmem:[%s388_s0 + $0x4] sm:$0xf]  ;;  %v197_v15 = vld [vmem:[%s388_s0] sm:$0xf]  ;;  %v262_v16 = vld [vmem:[%s388_s0 + $0x4] sm:$0xf0] }
   0x6   :  { %145 = vmatpush.bf16.msra.mxu0 %v271_v2  ;;  %278 = vmatpush.bf16.msra.mxu2 %v271_v2  ;;  %v202_v10 = vor.u32 %v261_v8, %v199_v9  ;;  %v265_v14 = vld [vmem:[%s387_s1] sm:$0xff]  ;;  %v205_v17 = vld [vmem:[%s388_s0 + $0x10] sm:$0xf]  ;;  %v264_v18 = vld [vmem:[%s388_s0 + $0x14] sm:$0xf0]  ;;  %v198_v21 = vor.u32 %v262_v16, %v197_v15 }
   0x7   :  { %168 = vmatpush.bf16.msra.mxu1 %v275_v3  ;;  %v263_v19 = vld [vmem:[%s388_s0 + $0x14] sm:$0xf]  ;;  %v207_v20 = vld [vmem:[%s388_s0 + $0x18] sm:$0xf0]  ;;  %v206_v22 = vor.u32 %v264_v18, %v205_v17  ;;  %v285_v26 = vld [vmem:[%s389_s2] ss:$0 sm:$0xff] }
   0x8   :  { %v210_v23 = vor.u32 %v263_v19, %v207_v20 }
   0xa   :  { %146 = vmatpush.bf16.msra.mxu0 %v270_v4  ;;  %279 = vmatpush.bf16.msra.mxu2 %v270_v4 }
   0xb   :  { %169 = vmatpush.bf16.msra.mxu1 %v274_v5 }
   0xe   :  { %147 = vmatpush.bf16.msra.mxu0 %v269_v6  ;;  %280 = vmatpush.bf16.msra.mxu2 %v269_v6 }
   0xf   :  { %170 = vmatpush.bf16.msra.mxu1 %v273_v7 }
  0x12   :  { %259 = vmatmul.msk.bf16.vlgmr.msra.gmra.mxu1 %vm137_vm0, %v202_v10  ;;  %148 = vmatpush.bf16.msra.mxu0 %v268_v11 }
  0x13   :  { %281 = vmatpush.bf16.msra.mxu2 %v268_v11 }
  0x16   :  { %149 = vmatpush.bf16.msra.mxu0 %v267_v12 }
  0x17   :  { %282 = vmatpush.bf16.msra.mxu2 %v267_v12 }
  0x1a   :  { %150 = vmatpush.bf16.msra.mxu0 %v266_v13 }
  0x1b   :  { %283 = vmatpush.bf16.msra.mxu2 %v266_v13 }
  0x1e   :  { %151 = vmatpush.bf16.msra.mxu0 %v265_v14 }
  0x1f   :  { %284 = vmatpush.bf16.msra.mxu2 %v265_v14 }
  0x21   :  { %152 = vmatmul.bf16.vlgmr.msra.gmra.mxu0 %v198_v21 }
  0x22   :  { %157 = vmatmul.bf16.vlgmr.msra.gmra.mxu2 %v206_v22  ;;  %260 = vmatmul.msk.bf16.gmra.mxu1 %vm137_vm0, %v210_v23 }
  0x8f   :  { %v172_v24 = vpop.f32.mrf.mxu1 }
  0x97   :  { %v174_v25 = vpop.f32.mrf.mxu1 }
  0x9e   :  { %v153_v27 = vpop.f32.mrf.mxu0 }
  0x9f   :  { %v154_v28 = vadd.f32 %v285_v26, %v153_v27  ;;  %v177_v31 = vpop.f32.mrf.mxu1 }
  0xa1   :  { %v173_v29 = vadd.f32 %v172_v24, %v154_v28 }
  0xa3   :  { %v182_v30 = vpack.c.bf16 %v173_v29, %v173_v29 }
  0xa5   :  { %187 = vst.msk [vmem:[%s390_s3] sm:$0xf] %vm186_vm1, %v182_v30  ;;  %v158_v32 = vpop.f32.mrf.mxu2 }
  0xa6   :  { %v159_v33 = vadd.f32 %v285_v26, %v158_v32  ;;  %v155_v34 = vpop.f32.mrf.mxu0 }
  0xa7   :  { %v156_v35 = vadd.f32 %v285_v26, %v155_v34  ;;  %v179_v42 = vpop.f32.mrf.mxu1 }
  0xa8   :  { %v178_v36 = vadd.f32 %v177_v31, %v159_v33 }
  0xa9   :  { %v175_v37 = vadd.f32 %v174_v25, %v156_v35 }
  0xaa   :  { %v184_v38 = vpack.c.bf16 %v178_v36, %v178_v36 }
  0xab   :  { %v183_v39 = vpack.c.bf16 %v175_v37, %v175_v37 }
  0xac   :  { %189 = vst.msk [vmem:[%s390_s3 + $0x8] sm:$0xf] %vm186_vm1, %v184_v38 }
  0xad   :  { %188 = vst.msk [vmem:[%s390_s3 + $0x4] sm:$0xf] %vm186_vm1, %v183_v39  ;;  %v160_v40 = vpop.f32.mrf.mxu2 }
  0xae   :  { %v161_v41 = vadd.f32 %v285_v26, %v160_v40 }
  0xb0   :  { %v180_v43 = vadd.f32 %v179_v42, %v161_v41 }
  0xb2   :  { %v185_v44 = vpack.c.bf16 %v180_v43, %v180_v43 }
  0xb4   :  { %190 = vst.msk [vmem:[%s390_s3 + $0xc] sm:$0xf] %vm186_vm1, %v185_v44 }

// kernel: ft_sam_forward.14
= control target key start
LH: loop header
LB: loop body
LE: loop exit
PB: predicated region body
PF: predicated region fallthrough
CT: control target
= control target key end

     0   :  { %vm56_vm0 = vcmask 261120   ;;  %vm98_vm1 = vcmask 257024   ;;  %s203_s2 = inlined_call_operand.vmem [shape: bf16[32,32], index: 2, kind: input, shape index: {}]   ;;  %s204_s3 = inlined_call_operand.vmem [shape: f32[1,32], index: 3, kind: input, shape index: {}]   ;;  %s205_s1 = inlined_call_operand.vmem [shape: bf16[32,32], index: 1, kind: input, shape index: {}]   ;;  %s206_s0 = inlined_call_operand.vmem [shape: bf16[32,32], index: 0, kind: input, shape index: {}]   ;;  %s207_s4 = inlined_call_operand.vmem [shape: bf16[32,32], index: 4, kind: output, shape index: {}]  }
   0x1   :  { %v128_v0 = vld [vmem:[%s203_s2 + $0x8] sm:$0xff]  ;;  %v127_v1 = vld [vmem:[%s203_s2] sm:$0xff] }
   0x2   :  { %69 = vmatpush.bf16.msra.mxu0 %v128_v0  ;;  %138 = vmatpush.bf16.msra.mxu1 %v128_v0  ;;  %v125_v2 = vld [vmem:[%s205_s1] sm:$0xff]  ;;  %v126_v3 = vld [vmem:[%s205_s1 + $0x8] sm:$0xff] }
   0x3   :  { %v130_v4 = vld [vmem:[%s206_s0] sm:$0xff]   ;;  %v137_v5 = vld [vmem:[%s206_s0 + $0x8] sm:$0xff]  }
   0x4   :  { %v131_v6 = vunpack.c.l.bf16 %v130_v4  ;;  %v135_v7 = vunpack.c.l.bf16 %v137_v5  ;;  %v140_v8 = vld [vmem:[%s204_s3] ss:$0 sm:$0xff]  ;;  %v132_v17 = vunpack.c.h.bf16 %v130_v4  ;;  %v136_v18 = vunpack.c.h.bf16 %v137_v5 }
   0x6   :  { %70 = vmatpush.bf16.msra.mxu0 %v127_v1  ;;  %139 = vmatpush.bf16.msra.mxu1 %v127_v1 }
   0x9   :  { %123 = vmatmul.msk.bf16.vlgmr.msra.gmra.mxu0 %vm56_vm0, %v125_v2  ;;  %124 = vmatmul.msk.bf16.vlgmr.msra.gmra.mxu1 %vm56_vm0, %v126_v3 }
  0x86   :  { %v72_v9 = vpop.f32.mrf.mxu0  ;;  %v77_v10 = vpop.f32.mrf.mxu1 }
  0x87   :  { %v82_v11 = vadd.f32 %v131_v6, %v72_v9  ;;  %v84_v12 = vadd.f32 %v135_v7, %v77_v10 }
  0x89   :  { %v90_v13 = vadd.f32 %v140_v8, %v82_v11  ;;  %v92_v14 = vadd.f32 %v140_v8, %v84_v12 }
  0x8b   :  { %v94_v15 = vpack.c.bf16 %v90_v13, %v90_v13  ;;  %v96_v16 = vpack.c.bf16 %v92_v14, %v92_v14 }
  0x8d   :  { %99 = vst.msk [vmem:[%s207_s4] sm:$0xf] %vm98_vm1, %v94_v15 }
  0x8e   :  { %101 = vst.msk [vmem:[%s207_s4 + $0x8] sm:$0xf] %vm98_vm1, %v96_v16  ;;  %v74_v19 = vpop.f32.mrf.mxu0  ;;  %v79_v20 = vpop.f32.mrf.mxu1 }
  0x8f   :  { %v83_v21 = vadd.f32 %v132_v17, %v74_v19  ;;  %v85_v22 = vadd.f32 %v136_v18, %v79_v20 }
  0x91   :  { %v91_v23 = vadd.f32 %v140_v8, %v83_v21  ;;  %v93_v24 = vadd.f32 %v140_v8, %v85_v22 }
  0x93   :  { %v95_v25 = vpack.c.bf16 %v91_v23, %v91_v23  ;;  %v97_v26 = vpack.c.bf16 %v93_v24, %v93_v24 }
  0x95   :  { %100 = vst.msk [vmem:[%s207_s4 + $0x4] sm:$0xf] %vm98_vm1, %v95_v25 }
  0x96   :  { %102 = vst.msk [vmem:[%s207_s4 + $0xc] sm:$0xf] %vm98_vm1, %v97_v26 }

// kernel: ft_sam_forward.20
= control target key start
LH: loop header
LB: loop body
LE: loop exit
PB: predicated region body
PF: predicated region fallthrough
CT: control target
= control target key end

     0   :  { %vm48_vm0 = vcmask 261120   ;;  %vm76_vm1 = vcmask 130048   ;;  %v236_v12 = vmov 16.0   ;;  %vm190_vm11 = vcmask 125952   ;;  %s319_s1 = inlined_call_operand.vmem [shape: bf16[32,16], index: 1, kind: input, shape index: {}]   ;;  %s320_s0 = inlined_call_operand.vmem [shape: bf16[32,32], index: 0, kind: input, shape index: {}]   ;;  %s321_s2 = inlined_call_operand.vmem [shape: f32[1,16], index: 2, kind: input, shape index: {}]   ;;  %s322_s3 = inlined_call_operand.vmem [shape: f32[1,16], index: 3, kind: input, shape index: {}]   ;;  %s323_s4 = inlined_call_operand.vmem [shape: bf16[32,16], index: 4, kind: output, shape index: {}]  }
   0x1   :  { %v220_v0 = vld [vmem:[%s319_s1 + $0x8] sm:$0xff]  ;;  %v219_v1 = vld [vmem:[%s319_s1] sm:$0xff]  ;;  %226 = vrcp.f32 %v236_v12 }
   0x2   :  { %61 = vmatpush.bf16.msra.mxu0 %v220_v0  ;;  %221 = vmatpush.bf16.msra.mxu1 %v220_v0  ;;  %v217_v2 = vld [vmem:[%s320_s0] sm:$0xff]  ;;  %v218_v3 = vld [vmem:[%s320_s0 + $0x8] sm:$0xff] }
   0x6   :  { %62 = vmatpush.bf16.msra.mxu0 %v219_v1  ;;  %222 = vmatpush.bf16.msra.mxu1 %v219_v1  ;;  %v224_v1 = vld [vmem:[%s321_s2] ss:$0 sm:$0xff] }
   0x7   :  { %v227_v13 = vpop.eup %226 }
   0x8   :  { %v90_v14 = vmul.f32 16.0, %v227_v13  ;;  %vm94_vm2 = vweird.f32 %v227_v13 }
   0x9   :  { %215 = vmatmul.msk.bf16.vlgmr.msra.gmra.mxu0 %vm48_vm0, %v217_v2  ;;  %216 = vmatmul.msk.bf16.vlgmr.msra.gmra.mxu1 %vm48_vm0, %v218_v3 }
   0xa   :  { %v91_v15 = vsub.f32 1.0, %v90_v14 }
   0xc   :  { %v92_v16 = vmul.f32 %v227_v13, %v91_v15 }
   0xe   :  { %v93_v17 = vadd.f32 %v227_v13, %v92_v16 }
  0x10   :  { %v95_v18 = vsel %vm94_vm2, %v227_v13, %v93_v17 }
  0x86   :  { %v64_v4 = vpop.f32.mrf.mxu0  ;;  %v69_v5 = vpop.f32.mrf.mxu1 }
  0x87   :  { %v83_v6 = vsel %vm76_vm1, %v69_v5, 0.0  ;;  %v77_v7 = vsel %vm76_vm1, %v64_v4, 0.0 }
  0x88   :  { %84 = vadd.xlane.f32.xlu1 %v83_v6  ;;  %78 = vadd.xlane.f32.xlu0 %v77_v7  ;;  %v225_v6 = vld [vmem:[%s322_s3] ss:$0 sm:$0xff] }
  0x8e   :  { %v66_v8 = vpop.f32.mrf.mxu0  ;;  %v71_v9 = vpop.f32.mrf.mxu1 }
  0x8f   :  { %v86_v10 = vsel %vm76_vm1, %v71_v9, 0.0  ;;  %v80_v11 = vsel %vm76_vm1, %v66_v8, 0.0 }
  0x90   :  { %87 = vadd.xlane.f32.xlu1 %v86_v10  ;;  %81 = vadd.xlane.f32.xlu0 %v80_v11 }
  0xfb   :  { %v85_v19 = vpop.xlane.xlu1 %84  ;;  %v79_v20 = vpop.xlane.xlu0 %78 }
  0xfc   :  { %v98_v21 = vmul.f32 %v95_v18, %v85_v19  ;;  %v96_v22 = vmul.f32 %v95_v18, %v79_v20 }
  0xfe   :  { %v278_v23 = vsub.f32 %v69_v5, %v98_v21  ;;  %v100_v24 = vsub.f32 %v64_v4, %v96_v22 }
 0x100   :  { %v104_v25 = vmul.f32 %v100_v24, %v100_v24  ;;  %v106_v26 = vmul.f32 %v278_v23, %v278_v23 }
 0x102   :  { %v108_v27 = vsel %vm76_vm1, %v104_v25, 0.0  ;;  %v114_v28 = vsel %vm76_vm1, %v106_v26, 0.0 }
 0x103   :  { %v88_v29 = vpop.xlane.xlu1 %87  ;;  %109 = vadd.xlane.f32.xlu2 %v108_v27  ;;  %115 = vadd.xlane.f32.xlu0 %v114_v28  ;;  %v82_v30 = vpop.xlane.xlu0 %81 }
 0x104   :  { %v99_v31 = vmul.f32 %v95_v18, %v88_v29  ;;  %v97_v32 = vmul.f32 %v95_v18, %v82_v30 }
 0x106   :  { %v284_v33 = vsub.f32 %v71_v9, %v99_v31  ;;  %v286_v34 = vsub.f32 %v66_v8, %v97_v32 }
 0x108   :  { %v107_v35 = vmul.f32 %v284_v33, %v284_v33  ;;  %v105_v36 = vmul.f32 %v286_v34, %v286_v34 }
 0x10a   :  { %v117_v37 = vsel %vm76_vm1, %v107_v35, 0.0  ;;  %v111_v38 = vsel %vm76_vm1, %v105_v36, 0.0 }
 0x10b   :  { %118 = vadd.xlane.f32.xlu1 %v117_v37  ;;  %112 = vadd.xlane.f32.xlu2 %v111_v38 }
 0x176   :  { %v110_v39 = vpop.xlane.xlu2 %109  ;;  %v116_v40 = vpop.xlane.xlu0 %115 }
 0x177   :  { %v120_v41 = vmul.f32 %v110_v39, %v95_v18  ;;  %v122_v42 = vmul.f32 %v116_v40, %v95_v18 }
 0x179   :  { %v124_v43 = vadd.f32 1e-06, %v120_v41  ;;  %v126_v44 = vadd.f32 1e-06, %v122_v42 }
 0x17b   :  { %228 = vrsqrt.f32 %v124_v43  ;;  %vm134_vm5 = vweird.f32 %v124_v43  ;;  %vm154_vm7 = vweird.f32 %v126_v44 }
 0x17c   :  { %230 = vrsqrt.f32 %v126_v44 }
 0x17e   :  { %v119_v45 = vpop.xlane.xlu1 %118  ;;  %v113_v46 = vpop.xlane.xlu2 %112 }
 0x17f   :  { %v123_v47 = vmul.f32 %v119_v45, %v95_v18  ;;  %v121_v48 = vmul.f32 %v113_v46, %v95_v18 }
 0x181   :  { %v229_v49 = vpop.eup %228  ;;  %v127_v50 = vadd.f32 1e-06, %v123_v47  ;;  %v125_v51 = vadd.f32 1e-06, %v121_v48 }
 0x182   :  { %v231_v52 = vpop.eup %230  ;;  %v129_v53 = vmul.f32 %v229_v49, %v124_v43  ;;  %vm135_vm3 = vweird.f32 %v229_v49 }
 0x183   :  { %v149_v54 = vmul.f32 %v231_v52, %v126_v44  ;;  %232 = vrsqrt.f32 %v127_v50  ;;  %vm155_vm4 = vweird.f32 %v231_v52  ;;  %vm136_vm6 = vmor %vm134_vm5, %vm135_vm3  ;;  %vm164_vm12 = vweird.f32 %v127_v50 }
 0x184   :  { %v130_v55 = vmul.f32 %v229_v49, %v129_v53  ;;  %234 = vrsqrt.f32 %v125_v51  ;;  %vm156_vm8 = vmor %vm154_vm7, %vm155_vm4  ;;  %vm144_vm14 = vweird.f32 %v125_v51 }
 0x185   :  { %v150_v56 = vmul.f32 %v231_v52, %v149_v54 }
 0x186   :  { %v131_v57 = vmul.f32 0.5, %v130_v55 }
 0x187   :  { %v151_v58 = vmul.f32 0.5, %v150_v56 }
 0x188   :  { %v132_v59 = vsub.f32 1.5, %v131_v57 }
 0x189   :  { %v233_v60 = vpop.eup %232  ;;  %v152_v61 = vsub.f32 1.5, %v151_v58 }
 0x18a   :  { %v235_v62 = vpop.eup %234  ;;  %v133_v63 = vmul.f32 %v229_v49, %v132_v59  ;;  %v159_v0 = vmul.f32 %v233_v60, %v127_v50  ;;  %vm165_vm9 = vweird.f32 %v233_v60 }
 0x18b   :  { %v153_v2 = vmul.f32 %v231_v52, %v152_v61  ;;  %v139_v3 = vmul.f32 %v235_v62, %v125_v51  ;;  %vm145_vm10 = vweird.f32 %v235_v62  ;;  %vm166_vm13 = vmor %vm164_vm12, %vm165_vm9 }
 0x18c   :  { %v137_v4 = vsel %vm136_vm6, %v229_v49, %v133_v63  ;;  %v160_v5 = vmul.f32 %v233_v60, %v159_v0  ;;  %vm146_vm15 = vmor %vm144_vm14, %vm145_vm10 }
 0x18d   :  { %v168_v7 = vmul.f32 %v137_v4, %v100_v24  ;;  %v157_v8 = vsel %vm156_vm8, %v231_v52, %v153_v2  ;;  %v140_v9 = vmul.f32 %v235_v62, %v139_v3 }
 0x18e   :  { %v170_v10 = vmul.f32 %v157_v8, %v278_v23  ;;  %v161_v11 = vmul.f32 0.5, %v160_v5 }
 0x18f   :  { %v175_v12 = vmul.f32 %v224_v1, %v168_v7  ;;  %v141_v13 = vmul.f32 0.5, %v140_v9 }
 0x190   :  { %v177_v14 = vmul.f32 %v224_v1, %v170_v10  ;;  %v162_v15 = vsub.f32 1.5, %v161_v11 }
 0x191   :  { %v182_v16 = vadd.f32 %v225_v6, %v175_v12  ;;  %v142_v17 = vsub.f32 1.5, %v141_v13 }
 0x192   :  { %v184_v18 = vadd.f32 %v225_v6, %v177_v14  ;;  %v163_v19 = vmul.f32 %v233_v60, %v162_v15 }
 0x193   :  { %v186_v20 = vpack.c.bf16 %v182_v16, %v182_v16  ;;  %v143_v21 = vmul.f32 %v235_v62, %v142_v17 }
 0x194   :  { %v188_v22 = vpack.c.bf16 %v184_v18, %v184_v18  ;;  %v167_v24 = vsel %vm166_vm13, %v233_v60, %v163_v19 }
 0x195   :  { %191 = vst.msk [vmem:[%s323_s4] sm:$0xf] %vm190_vm11, %v186_v20  ;;  %v171_v23 = vmul.f32 %v167_v24, %v284_v33  ;;  %v147_v25 = vsel %vm146_vm15, %v235_v62, %v143_v21 }
 0x196   :  { %193 = vst.msk [vmem:[%s323_s4 + $0x8] sm:$0xf] %vm190_vm11, %v188_v22  ;;  %v169_v26 = vmul.f32 %v147_v25, %v286_v34 }
 0x197   :  { %v178_v27 = vmul.f32 %v224_v1, %v171_v23 }
 0x198   :  { %v176_v28 = vmul.f32 %v224_v1, %v169_v26 }
 0x199   :  { %v185_v29 = vadd.f32 %v225_v6, %v178_v27 }
 0x19a   :  { %v183_v30 = vadd.f32 %v225_v6, %v176_v28 }
 0x19b   :  { %v189_v31 = vpack.c.bf16 %v185_v29, %v185_v29 }
 0x19c   :  { %v187_v32 = vpack.c.bf16 %v183_v30, %v183_v30 }
 0x19d   :  { %194 = vst.msk [vmem:[%s323_s4 + $0xc] sm:$0xf] %vm190_vm11, %v189_v31 }
 0x19e   :  { %192 = vst.msk [vmem:[%s323_s4 + $0x4] sm:$0xf] %vm190_vm11, %v187_v32 }

// kernel: ft_sam_forward.15
= control target key start
LH: loop header
LB: loop body
LE: loop exit
PB: predicated region body
PF: predicated region fallthrough
CT: control target
= control target key end

     0   :  { %vm47_vm0 = vcmask 261120   ;;  %v487_v15 = vmov 32.0   ;;  %vm167_vm12 = vcmask 257024   ;;  %s634_s0 = inlined_call_operand.vmem [shape: bf16[32,32], index: 0, kind: input, shape index: {}]   ;;  %s635_s6 = inlined_call_operand.vmem [shape: f32[1,32], index: 6, kind: input, shape index: {}]   ;;  %s636_s1 = inlined_call_operand.vmem [shape: f32[1,32], index: 1, kind: input, shape index: {}]   ;;  %s637_s2 = inlined_call_operand.vmem [shape: f32[1,32], index: 2, kind: input, shape index: {}]   ;;  %s638_s4 = inlined_call_operand.vmem [shape: f32[1,128], index: 4, kind: input, shape index: {}]   ;;  %s639_s3 = inlined_call_operand.vmem [shape: bf16[32,128], index: 3, kind: input, shape index: {}]   ;;  %s640_s5 = inlined_call_operand.vmem [shape: bf16[128,32], index: 5, kind: input, shape index: {}]   ;;  %s641_s7 = inlined_call_operand.vmem [shape: bf16[32,32], index: 7, kind: output, shape index: {}]  }
   0x1   :  { %v455_v0 = vld [vmem:[%s634_s0 + $0x8] sm:$0xff]   ;;  %v465_v1 = vld [vmem:[%s635_s6] ss:$0 sm:$0xff]  ;;  %469 = vrcp.f32 %v487_v15 }
   0x2   :  { %v453_v2 = vunpack.c.l.bf16 %v455_v0  ;;  %v448_v3 = vld [vmem:[%s634_s0] sm:$0xff]   ;;  %v454_v4 = vunpack.c.h.bf16 %v455_v0  ;;  %v438_v49 = vld [vmem:[%s639_s3 + $0x8] sm:$0xff] }
   0x3   :  { %v449_v5 = vunpack.c.l.bf16 %v448_v3  ;;  %v450_v6 = vunpack.c.h.bf16 %v448_v3  ;;  %219 = vmatpush.bf16.msra.mxu0 %v438_v49  ;;  %v437_v53 = vld [vmem:[%s639_s3] sm:$0xff] }
   0x4   :  { %v60_v7 = vsel %vm47_vm0, %v453_v2, 0.0  ;;  %v45_v8 = vadd.f32 %v465_v1, %v453_v2  ;;  %v46_v9 = vadd.f32 %v465_v1, %v454_v4  ;;  %v63_v13 = vsel %vm47_vm0, %v454_v4, 0.0 }
   0x5   :  { %61 = vadd.xlane.f32.xlu1 %v60_v7  ;;  %v54_v10 = vsel %vm47_vm0, %v449_v5, 0.0  ;;  %v43_v11 = vadd.f32 %v465_v1, %v449_v5  ;;  %v44_v12 = vadd.f32 %v465_v1, %v450_v6  ;;  %v57_v14 = vsel %vm47_vm0, %v450_v6, 0.0 }
   0x6   :  { %50 = vst.msk [vmem:[#allocation2 + $0x10] sm:$0xff] %vm47_vm0, %v45_v8  ;;  %55 = vadd.xlane.f32.xlu0 %v54_v10 }
   0x7   :  { %48 = vst.msk [vmem:[#allocation2] sm:$0xff] %vm47_vm0, %v43_v11  ;;  %v470_v16 = vpop.eup %469  ;;  %220 = vmatpush.bf16.msra.mxu0 %v437_v53  ;;  %v467_v11 = vld [vmem:[%s637_s2] ss:$0 sm:$0xff] }
   0x8   :  { %51 = vst.msk [vmem:[#allocation2 + $0x18] sm:$0xff] %vm47_vm0, %v46_v9  ;;  %v67_v17 = vmul.f32 32.0, %v470_v16  ;;  %vm71_vm1 = vweird.f32 %v470_v16 }
   0x9   :  { %49 = vst.msk [vmem:[#allocation2 + $0x8] sm:$0xff] %vm47_vm0, %v44_v12 }
   0xa   :  { %v68_v18 = vsub.f32 1.0, %v67_v17 }
   0xc   :  { %v69_v19 = vmul.f32 %v470_v16, %v68_v18 }
   0xd   :  { %64 = vadd.xlane.f32.xlu1 %v63_v13 }
   0xe   :  { %58 = vadd.xlane.f32.xlu0 %v57_v14  ;;  %v70_v20 = vadd.f32 %v470_v16, %v69_v19 }
  0x10   :  { %v72_v21 = vsel %vm71_vm1, %v470_v16, %v70_v20 }
  0x78   :  { %v62_v22 = vpop.xlane.xlu1 %61 }
  0x79   :  { %v75_v23 = vmul.f32 %v72_v21, %v62_v22  ;;  %v56_v24 = vpop.xlane.xlu0 %55 }
  0x7a   :  { %v73_v25 = vmul.f32 %v72_v21, %v56_v24 }
  0x7b   :  { %v545_v26 = vsub.f32 %v453_v2, %v75_v23 }
  0x7c   :  { %v547_v27 = vsub.f32 %v449_v5, %v73_v25 }
  0x7d   :  { %v83_v28 = vmul.f32 %v545_v26, %v545_v26 }
  0x7e   :  { %v81_v29 = vmul.f32 %v547_v27, %v547_v27 }
  0x7f   :  { %v91_v30 = vsel %vm47_vm0, %v83_v28, 0.0 }
  0x80   :  { %v65_v31 = vpop.xlane.xlu1 %64  ;;  %92 = vadd.xlane.f32.xlu0 %v91_v30  ;;  %v85_v32 = vsel %vm47_vm0, %v81_v29, 0.0 }
  0x81   :  { %v76_v33 = vmul.f32 %v72_v21, %v65_v31  ;;  %86 = vadd.xlane.f32.xlu2 %v85_v32  ;;  %v59_v34 = vpop.xlane.xlu0 %58 }
  0x82   :  { %v74_v35 = vmul.f32 %v72_v21, %v59_v34 }
  0x83   :  { %v555_v36 = vsub.f32 %v454_v4, %v76_v33 }
  0x84   :  { %v557_v37 = vsub.f32 %v450_v6, %v74_v35  ;;  %v466_v6 = vld [vmem:[%s636_s1] ss:$0 sm:$0xff] }
  0x85   :  { %v84_v38 = vmul.f32 %v555_v36, %v555_v36 }
  0x86   :  { %v82_v39 = vmul.f32 %v557_v37, %v557_v37 }
  0x87   :  { %v94_v40 = vsel %vm47_vm0, %v84_v38, 0.0 }
  0x88   :  { %95 = vadd.xlane.f32.xlu1 %v94_v40  ;;  %v88_v41 = vsel %vm47_vm0, %v82_v39, 0.0 }
  0x89   :  { %89 = vadd.xlane.f32.xlu2 %v88_v41 }
  0xf3   :  { %v93_v42 = vpop.xlane.xlu0 %92 }
  0xf4   :  { %v87_v43 = vpop.xlane.xlu2 %86  ;;  %v99_v44 = vmul.f32 %v93_v42, %v72_v21  ;;  %v444_v42 = vld [vmem:[%s640_s5 + $0x28] sm:$0xff] }
  0xf5   :  { %v97_v45 = vmul.f32 %v87_v43, %v72_v21  ;;  %v443_v43 = vld [vmem:[%s640_s5 + $0x20] sm:$0xff] }
  0xf6   :  { %v103_v46 = vadd.f32 1e-06, %v99_v44  ;;  %v442_v44 = vld [vmem:[%s640_s5 + $0x18] sm:$0xff] }
  0xf7   :  { %v101_v47 = vadd.f32 1e-06, %v97_v45  ;;  %v441_v45 = vld [vmem:[%s640_s5 + $0x10] sm:$0xff] }
  0xf8   :  { %471 = vrsqrt.f32 %v103_v46  ;;  %vm131_vm2 = vweird.f32 %v103_v46 }
  0xf9   :  { %473 = vrsqrt.f32 %v101_v47  ;;  %vm111_vm6 = vweird.f32 %v101_v47 }
  0xfb   :  { %v96_v48 = vpop.xlane.xlu1 %95 }
  0xfc   :  { %v100_v50 = vmul.f32 %v96_v48, %v72_v21  ;;  %v90_v51 = vpop.xlane.xlu2 %89  ;;  %v439_v48 = vld [vmem:[%s640_s5] sm:$0xff] }
  0xfd   :  { %v98_v52 = vmul.f32 %v90_v51, %v72_v21 }
  0xfe   :  { %v472_v54 = vpop.eup %471  ;;  %v104_v55 = vadd.f32 1e-06, %v100_v50 }
  0xff   :  { %v474_v56 = vpop.eup %473  ;;  %v126_v57 = vmul.f32 %v472_v54, %v103_v46  ;;  %v102_v58 = vadd.f32 1e-06, %v98_v52  ;;  %vm132_vm3 = vweird.f32 %v472_v54  ;;  %v440_v46 = vld [vmem:[%s640_s5 + $0x8] sm:$0xff] }
 0x100   :  { %v106_v59 = vmul.f32 %v474_v56, %v101_v47  ;;  %475 = vrsqrt.f32 %v104_v55  ;;  %vm112_vm4 = vweird.f32 %v474_v56  ;;  %vm133_vm5 = vmor %vm131_vm2, %vm132_vm3  ;;  %vm141_vm8 = vweird.f32 %v104_v55  ;;  %v468_v47 = vld [vmem:[%s638_s4] ss:$0 sm:$0xff] }
 0x101   :  { %v127_v60 = vmul.f32 %v472_v54, %v126_v57  ;;  %477 = vrsqrt.f32 %v102_v58  ;;  %vm113_vm7 = vmor %vm111_vm6, %vm112_vm4  ;;  %vm121_vm13 = vweird.f32 %v102_v58 }
 0x102   :  { %v107_v61 = vmul.f32 %v474_v56, %v106_v59 }
 0x103   :  { %v128_v62 = vmul.f32 0.5, %v127_v60 }
 0x104   :  { %v108_v63 = vmul.f32 0.5, %v107_v61 }
 0x105   :  { %v129_v0 = vsub.f32 1.5, %v128_v62 }
 0x106   :  { %v476_v1 = vpop.eup %475  ;;  %v109_v2 = vsub.f32 1.5, %v108_v63 }
 0x107   :  { %v478_v3 = vpop.eup %477  ;;  %v130_v4 = vmul.f32 %v472_v54, %v129_v0  ;;  %v136_v5 = vmul.f32 %v476_v1, %v104_v55  ;;  %vm142_vm9 = vweird.f32 %v476_v1 }
 0x108   :  { %v110_v7 = vmul.f32 %v474_v56, %v109_v2  ;;  %v116_v8 = vmul.f32 %v478_v3, %v102_v58  ;;  %vm143_vm10 = vmor %vm141_vm8, %vm142_vm9  ;;  %vm122_vm11 = vweird.f32 %v478_v3 }
 0x109   :  { %v134_v9 = vsel %vm133_vm5, %v472_v54, %v130_v4  ;;  %v137_v10 = vmul.f32 %v476_v1, %v136_v5  ;;  %vm123_vm14 = vmor %vm121_vm13, %vm122_vm11 }
 0x10a   :  { %v114_v12 = vsel %vm113_vm7, %v474_v56, %v110_v7  ;;  %v147_v13 = vmul.f32 %v134_v9, %v545_v26  ;;  %v117_v14 = vmul.f32 %v478_v3, %v116_v8 }
 0x10b   :  { %v145_v15 = vmul.f32 %v114_v12, %v547_v27  ;;  %v138_v16 = vmul.f32 0.5, %v137_v10 }
 0x10c   :  { %v154_v17 = vmul.f32 %v466_v6, %v147_v13  ;;  %v118_v18 = vmul.f32 0.5, %v117_v14 }
 0x10d   :  { %v152_v19 = vmul.f32 %v466_v6, %v145_v15  ;;  %v139_v20 = vsub.f32 1.5, %v138_v16 }
 0x10e   :  { %v161_v21 = vadd.f32 %v467_v11, %v154_v17  ;;  %v119_v22 = vsub.f32 1.5, %v118_v18 }
 0x10f   :  { %v159_v23 = vadd.f32 %v467_v11, %v152_v19  ;;  %v140_v24 = vmul.f32 %v476_v1, %v139_v20 }
 0x110   :  { %v165_v25 = vpack.c.bf16 %v161_v21, %v161_v21  ;;  %v120_v28 = vmul.f32 %v478_v3, %v119_v22 }
 0x111   :  { %v163_v26 = vpack.c.bf16 %v159_v23, %v159_v23  ;;  %v144_v29 = vsel %vm143_vm10, %v476_v1, %v140_v24 }
 0x112   :  { %170 = vst.msk [vmem:[#allocation3 + $0x8] sm:$0xf] %vm167_vm12, %v165_v25  ;;  %v148_v27 = vmul.f32 %v144_v29, %v555_v36  ;;  %v124_v30 = vsel %vm123_vm14, %v478_v3, %v120_v28  ;;  %v446_v36 = vld [vmem:[%s640_s5 + $0x38] sm:$0xff] }
 0x113   :  { %168 = vst.msk [vmem:[#allocation3] sm:$0xf] %vm167_vm12, %v163_v26  ;;  %v146_v31 = vmul.f32 %v124_v30, %v557_v37  ;;  %338 = vmatpush.bf16.msra.mxu1 %v446_v36  ;;  %456 = vmatpush.bf16.msra.mxu2 %v446_v36  ;;  %v445_v37 = vld [vmem:[%s640_s5 + $0x30] sm:$0xff] }
 0x114   :  { %v155_v32 = vmul.f32 %v466_v6, %v148_v27 }
 0x115   :  { %v153_v33 = vmul.f32 %v466_v6, %v146_v31  ;;  %v268_v31 = vld [vmem:[#allocation2] sm:$0xff] }
 0x116   :  { %v162_v34 = vadd.f32 %v467_v11, %v155_v32 }
 0x117   :  { %v160_v35 = vadd.f32 %v467_v11, %v153_v33  ;;  %339 = vmatpush.bf16.msra.mxu1 %v445_v37  ;;  %457 = vmatpush.bf16.msra.mxu2 %v445_v37  ;;  %v270_v37 = vld [vmem:[#allocation2 + $0x10] sm:$0xff] }
 0x118   :  { %v166_v38 = vpack.c.bf16 %v162_v34, %v162_v34  ;;  %v269_v34 = vld [vmem:[#allocation2 + $0x8] sm:$0xff] }
 0x119   :  { %v164_v39 = vpack.c.bf16 %v160_v35, %v160_v35 }
 0x11a   :  { %171 = vst.msk [vmem:[#allocation3 + $0xc] sm:$0xf] %vm167_vm12, %v166_v38 }
 0x11b   :  { %169 = vst.msk [vmem:[#allocation3 + $0x4] sm:$0xf] %vm167_vm12, %v164_v39  ;;  %340 = vmatpush.bf16.msra.mxu1 %v444_v42  ;;  %458 = vmatpush.bf16.msra.mxu2 %v444_v42 }
 0x11f   :  { %341 = vmatpush.bf16.msra.mxu1 %v443_v43  ;;  %459 = vmatpush.bf16.msra.mxu2 %v443_v43 }
 0x121   :  { %v436_v41 = vld [vmem:[#allocation3 + $0x8] sm:$0xff] }
 0x122   :  { %v435_v40 = vld [vmem:[#allocation3] sm:$0xff] }
 0x123   :  { %401 = vmatmul.msk.bf16.vlgmr.msra.gmra.mxu0 %vm47_vm0, %v435_v40  ;;  %342 = vmatpush.bf16.msra.mxu1 %v442_v44 }
 0x124   :  { %460 = vmatpush.bf16.msra.mxu2 %v442_v44  ;;  %v271_v44 = vld [vmem:[#allocation2 + $0x18] sm:$0xff] }
 0x127   :  { %343 = vmatpush.bf16.msra.mxu1 %v441_v45 }
 0x128   :  { %461 = vmatpush.bf16.msra.mxu2 %v441_v45 }
 0x12b   :  { %344 = vmatpush.bf16.msra.mxu1 %v440_v46 }
 0x12c   :  { %462 = vmatpush.bf16.msra.mxu2 %v440_v46 }
 0x12f   :  { %345 = vmatpush.bf16.msra.mxu1 %v439_v48 }
 0x130   :  { %463 = vmatpush.bf16.msra.mxu2 %v439_v48 }
 0x133   :  { %402 = vmatmul.msk.bf16.gmra.mxu0 %vm47_vm0, %v436_v41 }
 0x1a0   :  { %v222_v49 = vpop.f32.mrf.mxu0 }
 0x1a1   :  { %v223_v50 = vadd.f32 %v468_v47, %v222_v49 }
 0x1a3   :  { %v232_v51 = vmul.f32 %v223_v50, %v223_v50 }
 0x1a5   :  { %v236_v52 = vmul.f32 %v232_v51, %v223_v50 }
 0x1a7   :  { %v240_v53 = vmul.f32 0.044715, %v236_v52 }
 0x1a8   :  { %v224_v54 = vpop.f32.mrf.mxu0 }
 0x1a9   :  { %v244_v55 = vadd.f32 %v240_v53, %v223_v50  ;;  %v225_v56 = vadd.f32 %v468_v47, %v224_v54 }
 0x1ab   :  { %v233_v57 = vmul.f32 %v225_v56, %v225_v56  ;;  %v248_v58 = vmul.f32 0.7978846, %v244_v55 }
 0x1ad   :  { %v237_v59 = vmul.f32 %v233_v57, %v225_v56  ;;  %479 = vtanh.f32 %v248_v58 }
 0x1af   :  { %v241_v60 = vmul.f32 0.044715, %v237_v59 }
 0x1b0   :  { %v227_v61 = vpop.f32.mrf.mxu0 }
 0x1b1   :  { %v245_v62 = vadd.f32 %v241_v60, %v225_v56  ;;  %v228_v63 = vadd.f32 %v468_v47, %v227_v61 }
 0x1b3   :  { %v234_v0 = vmul.f32 %v228_v63, %v228_v63  ;;  %v249_v1 = vmul.f32 0.7978846, %v245_v62  ;;  %v480_v2 = vpop.eup %479 }
 0x1b4   :  { %v256_v6 = vadd.f32 1.0, %v480_v2 }
 0x1b5   :  { %v238_v3 = vmul.f32 %v234_v0, %v228_v63  ;;  %481 = vtanh.f32 %v249_v1 }
 0x1b6   :  { %v260_v13 = vmul.f32 0.5, %v256_v6 }
 0x1b7   :  { %v242_v4 = vmul.f32 0.044715, %v238_v3 }
 0x1b8   :  { %v229_v5 = vpop.f32.mrf.mxu0  ;;  %v264_v17 = vmul.f32 %v260_v13, %v223_v50 }
 0x1b9   :  { %v246_v7 = vadd.f32 %v242_v4, %v228_v63  ;;  %v230_v8 = vadd.f32 %v468_v47, %v229_v5 }
 0x1bb   :  { %v482_v9 = vpop.eup %481  ;;  %v235_v10 = vmul.f32 %v230_v8, %v230_v8  ;;  %v250_v11 = vmul.f32 0.7978846, %v246_v7 }
 0x1bc   :  { %v257_v12 = vadd.f32 1.0, %v482_v9 }
 0x1bd   :  { %v239_v14 = vmul.f32 %v235_v10, %v230_v8  ;;  %483 = vtanh.f32 %v250_v11 }
 0x1be   :  { %v261_v15 = vmul.f32 0.5, %v257_v12 }
 0x1bf   :  { %v243_v16 = vmul.f32 0.044715, %v239_v14 }
 0x1c0   :  { %v265_v18 = vmul.f32 %v261_v15, %v225_v56 }
 0x1c1   :  { %v247_v19 = vadd.f32 %v243_v16, %v230_v8 }
 0x1c2   :  { %v272_v20 = vpack.c.bf16 %v265_v18, %v264_v17 }
 0x1c3   :  { %v251_v21 = vmul.f32 0.7978846, %v247_v19  ;;  %v484_v22 = vpop.eup %483 }
 0x1c4   :  { %346 = vmatmul.bf16.vlgmr.msra.gmra.mxu1 %v272_v20  ;;  %v258_v23 = vadd.f32 1.0, %v484_v22 }
 0x1c5   :  { %485 = vtanh.f32 %v251_v21 }
 0x1c6   :  { %v262_v28 = vmul.f32 0.5, %v258_v23 }
 0x1c8   :  { %v266_v29 = vmul.f32 %v262_v28, %v228_v63 }
 0x1cb   :  { %v486_v24 = vpop.eup %485 }
 0x1cc   :  { %v259_v25 = vadd.f32 1.0, %v486_v24 }
 0x1ce   :  { %v263_v26 = vmul.f32 0.5, %v259_v25 }
 0x1d0   :  { %v267_v27 = vmul.f32 %v263_v26, %v230_v8 }
 0x1d2   :  { %v273_v30 = vpack.c.bf16 %v267_v27, %v266_v29 }
 0x1d4   :  { %351 = vmatmul.bf16.vlgmr.msra.gmra.mxu2 %v273_v30 }
 0x241   :  { %v347_v32 = vpop.f32.mrf.mxu1 }
 0x242   :  { %v357_v33 = vadd.f32 %v347_v32, %v268_v31 }
 0x244   :  { %361 = vst.msk [vmem:[#allocation2] sm:$0xff] %vm47_vm0, %v357_v33 }
 0x249   :  { %v349_v35 = vpop.f32.mrf.mxu1 }
 0x24a   :  { %v358_v38 = vadd.f32 %v349_v35, %v269_v34 }
 0x24b   :  { %v368_v39 = vld [vmem:[#allocation2] sm:$0xff] }
 0x24c   :  { %v372_v40 = vpack.c.bf16 %v368_v39, %v368_v39  ;;  %362 = vst.msk [vmem:[#allocation2 + $0x8] sm:$0xff] %vm47_vm0, %v358_v38 }
 0x24e   :  { %377 = vst.msk [vmem:[%s641_s7] sm:$0xf] %vm167_vm12, %v372_v40 }
 0x253   :  { %v369_v41 = vld [vmem:[#allocation2 + $0x8] sm:$0xff] }
 0x254   :  { %v373_v36 = vpack.c.bf16 %v369_v41, %v369_v41 }
 0x256   :  { %378 = vst.msk [vmem:[%s641_s7 + $0x4] sm:$0xf] %vm167_vm12, %v373_v36 }
 0x257   :  { %v352_v42 = vpop.f32.mrf.mxu2 }
 0x258   :  { %v359_v43 = vadd.f32 %v352_v42, %v270_v37 }
 0x25a   :  { %363 = vst.msk [vmem:[#allocation2 + $0x10] sm:$0xff] %vm47_vm0, %v359_v43 }
 0x25f   :  { %v354_v45 = vpop.f32.mrf.mxu2 }
 0x260   :  { %v360_v46 = vadd.f32 %v354_v45, %v271_v44 }
 0x261   :  { %v370_v47 = vld [vmem:[#allocation2 + $0x10] sm:$0xff] }
 0x262   :  { %v374_v48 = vpack.c.bf16 %v370_v47, %v370_v47  ;;  %364 = vst.msk [vmem:[#allocation2 + $0x18] sm:$0xff] %vm47_vm0, %v360_v46 }
 0x264   :  { %379 = vst.msk [vmem:[%s641_s7 + $0x8] sm:$0xf] %vm167_vm12, %v374_v48 }
 0x269   :  { %v371_v49 = vld [vmem:[#allocation2 + $0x18] sm:$0xff] }
 0x26a   :  { %v375_v50 = vpack.c.bf16 %v371_v49, %v371_v49 }
 0x26c   :  { %380 = vst.msk [vmem:[%s641_s7 + $0xc] sm:$0xf] %vm167_vm12, %v375_v50 }

// kernel: ft_sam_forward.13
= control target key start
LH: loop header
LB: loop body
LE: loop exit
PB: predicated region body
PF: predicated region fallthrough
CT: control target
= control target key end

     0   :  { %s1855_s12 = smov 0   ;;  %s1857_s13 = smov 0   ;;  %s2596_s0 = inlined_call_operand.vmem [shape: bf16[2,16,3,2,16], index: 0, kind: input, shape index: {}, may-alias: {0,1,2}]   ;;  %s2597_s1 = inlined_call_operand.vmem [shape: bf16[2,16,3,2,16], index: 1, kind: input, shape index: {}, may-alias: {0,1,2}]   ;;  %s2598_s2 = inlined_call_operand.vmem [shape: bf16[2,16,3,2,16], index: 2, kind: input, shape index: {}, may-alias: {0,1,2}]   ;;  %s2599_s3 = inlined_call_operand.vmem [shape: bf16[2,16,32], index: 3, kind: output, shape index: {}]  }
   0x1   :  { %s1859_s14 = smov 0   ;;  %s1861_s15 = smov 0  }
   0x2   :  { %s1863_s16 = smov 0  }
   0x3 LB: > { %s32_s17 = sadd.s32 1, %s1825_s15  ;;  %p48_p1 = scmp.ne.s32.totalorder %s1817_s13, %s1813_s12  ;;  %s1829_s16 = sphi %s1863_s16, %s13_s16   ;;  %s1825_s15 = sphi %s1861_s15, %s2661_s15   ;;  %s1821_s14 = sphi %s1859_s14, %s2660_s14   ;;  %s1817_s13 = sphi %s1857_s13, %s2659_s13   ;;  %s1813_s12 = sphi %s1855_s12, %s2658_s12  }
   0x4   : > { %p34_p0 = scmp.ge.s32.totalorder %s32_s17, 2  ;;  %p49_p2 = scmp.eq.s32.totalorder %s1829_s16, 0 }
   0x5   : > { %s41_s20 = sadd.s32 1, %s1817_s13  ;;  %p1670_p5 = scmp.ge.s32.totalorder %s1829_s16, 2 }
   0x6   : > { %s2663_s17 = smov (%p34_p0, %s32_s17), 0  ;;  %p1886_p3 = por %p49_p2, %p48_p1 }
   0x7   : > { %s36_s19 = ssub.s32 %s1825_s15, %s2663_s17  ;;  %158 = sbr.rel (%p1670_p5) target bundleno = 75 (0x4b), region = 16 }
   0x8   : > { %p39_p4 = scmp.eq.s32.totalorder %s36_s19, 0 }
   0xa   : > { %s1894_s21 = scalar_select %p39_p4, %s1817_s13, %s41_s20  }
   0xc   : > { %161 = sbr.rel (!%p1886_p3) target bundleno = 33 (0x21), region = 20  ;;  %s163_s22 = sand.u32 (%p1886_p3), 1, %s1817_s13  }
   0xd   : > { %s1719_s23 = smul.u32 (%p1886_p3), 48, %s1825_s15  ;;  %s1671_s24 = sshll.u32 (%p1886_p3), %s163_s22, 4 }
   0xe   : > { %s165_s28 = scalar_lea.vmem (%p1886_p3), [#allocation5], %s1671_s24 }
   0xf   : > { %s1904_s27 = scalar_lea.vmem (%p1886_p3), %s2596_s0, %s1719_s23 }
  0x10   : > { %v187_v0 = vld [vmem:[%s1904_s27] sm:$0x1] (%p1886_p3)  ;;  %v189_v1 = vld [vmem:[%s1904_s27 + $0x3] sm:$0x1] (%p1886_p3)  ;;  %v191_v2 = vld [vmem:[%s1904_s27 + $0x6] sm:$0x1] (%p1886_p3) }
  0x11   : > { %188 = vst [vmem:[%s165_s28] sm:$0x1] %v187_v0  ;;  %v193_v3 = vld [vmem:[%s1904_s27 + $0x9] sm:$0x1]  ;;  %v195_v4 = vld [vmem:[%s1904_s27 + $0xc] sm:$0x1] }
  0x12   : > { %190 = vst [vmem:[%s165_s28 + $0x1] sm:$0x1] %v189_v1  ;;  %v197_v5 = vld [vmem:[%s1904_s27 + $0xf] sm:$0x1]  ;;  %v199_v6 = vld [vmem:[%s1904_s27 + $0x12] sm:$0x1] }
  0x13   : > { %192 = vst [vmem:[%s165_s28 + $0x2] sm:$0x1] %v191_v2  ;;  %v201_v7 = vld [vmem:[%s1904_s27 + $0x15] sm:$0x1]  ;;  %v203_v8 = vld [vmem:[%s1904_s27 + $0x18] sm:$0x1] }
  0x14   : > { %194 = vst [vmem:[%s165_s28 + $0x3] sm:$0x1] %v193_v3  ;;  %v205_v9 = vld [vmem:[%s1904_s27 + $0x1b] sm:$0x1]  ;;  %v207_v10 = vld [vmem:[%s1904_s27 + $0x1e] sm:$0x1] }
  0x15   : > { %196 = vst [vmem:[%s165_s28 + $0x4] sm:$0x1] %v195_v4  ;;  %v209_v11 = vld [vmem:[%s1904_s27 + $0x21] sm:$0x1]  ;;  %v211_v12 = vld [vmem:[%s1904_s27 + $0x24] sm:$0x1] }
  0x16   : > { %198 = vst [vmem:[%s165_s28 + $0x5] sm:$0x1] %v197_v5  ;;  %v213_v13 = vld [vmem:[%s1904_s27 + $0x27] sm:$0x1]  ;;  %v215_v14 = vld [vmem:[%s1904_s27 + $0x2a] sm:$0x1] }
  0x17   : > { %200 = vst [vmem:[%s165_s28 + $0x6] sm:$0x1] %v199_v6  ;;  %v217_v15 = vld [vmem:[%s1904_s27 + $0x2d] sm:$0x1] }
  0x18   : > { %202 = vst [vmem:[%s165_s28 + $0x7] sm:$0x1] %v201_v7 }
  0x19   : > { %204 = vst [vmem:[%s165_s28 + $0x8] sm:$0x1] %v203_v8 }
  0x1a   : > { %206 = vst [vmem:[%s165_s28 + $0x9] sm:$0x1] %v205_v9 }
  0x1b   : > { %208 = vst [vmem:[%s165_s28 + $0xa] sm:$0x1] %v207_v10 }
  0x1c   : > { %210 = vst [vmem:[%s165_s28 + $0xb] sm:$0x1] %v209_v11 }
  0x1d   : > { %212 = vst [vmem:[%s165_s28 + $0xc] sm:$0x1] %v211_v12 }
  0x1e   : > { %214 = vst [vmem:[%s165_s28 + $0xd] sm:$0x1] %v213_v13 }
  0x1f   : > { %216 = vst [vmem:[%s165_s28 + $0xe] sm:$0x1] %v215_v14 }
  0x20   : > { %218 = vst [vmem:[%s165_s28 + $0xf] sm:$0x1] %v217_v15 }
  0x21 PF: > { %274 = sbr.rel (!%p1886_p3) target bundleno = 54 (0x36), region = 61  ;;  %s276_s29 = sand.u32 (%p1886_p3), 1, %s1817_s13  }
  0x22   : > { %s1572_s30 = smul.u32 (%p1886_p3), 48, %s1825_s15  ;;  %s1672_s4 = sshll.u32 (%p1886_p3), %s276_s29, 4 }
  0x23   : > { %s278_s8 = scalar_lea.vmem (%p1886_p3), [#allocation6], %s1672_s4 }
  0x24   : > { %s1929_s7 = scalar_lea.vmem (%p1886_p3), %s2597_s1, %s1572_s30 }
  0x25   : > { %v1673_v16 = vld [vmem:[%s1929_s7 + $0x1] sm:$0x1] (%p1886_p3)  ;;  %v1674_v17 = vld [vmem:[%s1929_s7 + $0x4] sm:$0x1] (%p1886_p3)  ;;  %v1675_v18 = vld [vmem:[%s1929_s7 + $0x7] sm:$0x1] (%p1886_p3) }
  0x26   : > { %302 = vst [vmem:[%s278_s8] sm:$0x1] %v1673_v16  ;;  %v1676_v19 = vld [vmem:[%s1929_s7 + $0xa] sm:$0x1]  ;;  %v1677_v20 = vld [vmem:[%s1929_s7 + $0xd] sm:$0x1] }
  0x27   : > { %304 = vst [vmem:[%s278_s8 + $0x1] sm:$0x1] %v1674_v17  ;;  %v1678_v21 = vld [vmem:[%s1929_s7 + $0x10] sm:$0x1]  ;;  %v1679_v22 = vld [vmem:[%s1929_s7 + $0x13] sm:$0x1] }
  0x28   : > { %306 = vst [vmem:[%s278_s8 + $0x2] sm:$0x1] %v1675_v18  ;;  %v1680_v23 = vld [vmem:[%s1929_s7 + $0x16] sm:$0x1]  ;;  %v1681_v24 = vld [vmem:[%s1929_s7 + $0x19] sm:$0x1] }
  0x29   : > { %308 = vst [vmem:[%s278_s8 + $0x3] sm:$0x1] %v1676_v19  ;;  %v1682_v25 = vld [vmem:[%s1929_s7 + $0x1c] sm:$0x1]  ;;  %v1683_v26 = vld [vmem:[%s1929_s7 + $0x1f] sm:$0x1] }
  0x2a   : > { %310 = vst [vmem:[%s278_s8 + $0x4] sm:$0x1] %v1677_v20  ;;  %v1684_v27 = vld [vmem:[%s1929_s7 + $0x22] sm:$0x1]  ;;  %v1685_v28 = vld [vmem:[%s1929_s7 + $0x25] sm:$0x1] }
  0x2b   : > { %312 = vst [vmem:[%s278_s8 + $0x5] sm:$0x1] %v1678_v21  ;;  %v1686_v29 = vld [vmem:[%s1929_s7 + $0x28] sm:$0x1]  ;;  %v1687_v30 = vld [vmem:[%s1929_s7 + $0x2b] sm:$0x1] }
  0x2c   : > { %314 = vst [vmem:[%s278_s8 + $0x6] sm:$0x1] %v1679_v22  ;;  %v1688_v31 = vld [vmem:[%s1929_s7 + $0x2e] sm:$0x1] }
  0x2d   : > { %316 = vst [vmem:[%s278_s8 + $0x7] sm:$0x1] %v1680_v23 }
  0x2e   : > { %318 = vst [vmem:[%s278_s8 + $0x8] sm:$0x1] %v1681_v24 }
  0x2f   : > { %320 = vst [vmem:[%s278_s8 + $0x9] sm:$0x1] %v1682_v25 }
  0x30   : > { %322 = vst [vmem:[%s278_s8 + $0xa] sm:$0x1] %v1683_v26 }
  0x31   : > { %324 = vst [vmem:[%s278_s8 + $0xb] sm:$0x1] %v1684_v27 }
  0x32   : > { %326 = vst [vmem:[%s278_s8 + $0xc] sm:$0x1] %v1685_v28 }
  0x33   : > { %328 = vst [vmem:[%s278_s8 + $0xd] sm:$0x1] %v1686_v29 }
  0x34   : > { %330 = vst [vmem:[%s278_s8 + $0xe] sm:$0x1] %v1687_v30 }
  0x35   : > { %332 = vst [vmem:[%s278_s8 + $0xf] sm:$0x1] %v1688_v31 }
  0x36 PF: > { %388 = sbr.rel (!%p1886_p3) target bundleno = 75 (0x4b), region = 102  ;;  %s390_s9 = sand.u32 (%p1886_p3), 1, %s1817_s13  }
  0x37   : > { %s1579_s10 = smul.u32 (%p1886_p3), 48, %s1825_s15  ;;  %s1689_s11 = sshll.u32 (%p1886_p3), %s390_s9, 4 }
  0x38   : > { %s392_s18 = scalar_lea.vmem (%p1886_p3), [#allocation7], %s1689_s11 }
  0x39   : > { %s1954_s22 = scalar_lea.vmem (%p1886_p3), %s2598_s2, %s1579_s10 }
  0x3a   : > { %v1690_v32 = vld [vmem:[%s1954_s22 + $0x2] sm:$0x1] (%p1886_p3)  ;;  %v1691_v33 = vld [vmem:[%s1954_s22 + $0x5] sm:$0x1] (%p1886_p3)  ;;  %v1692_v34 = vld [vmem:[%s1954_s22 + $0x8] sm:$0x1] (%p1886_p3) }
  0x3b   : > { %416 = vst [vmem:[%s392_s18] sm:$0x1] %v1690_v32  ;;  %v1693_v35 = vld [vmem:[%s1954_s22 + $0xb] sm:$0x1]  ;;  %v1694_v36 = vld [vmem:[%s1954_s22 + $0xe] sm:$0x1] }
  0x3c   : > { %418 = vst [vmem:[%s392_s18 + $0x1] sm:$0x1] %v1691_v33  ;;  %v1695_v37 = vld [vmem:[%s1954_s22 + $0x11] sm:$0x1]  ;;  %v1696_v38 = vld [vmem:[%s1954_s22 + $0x14] sm:$0x1] }
  0x3d   : > { %420 = vst [vmem:[%s392_s18 + $0x2] sm:$0x1] %v1692_v34  ;;  %v1697_v39 = vld [vmem:[%s1954_s22 + $0x17] sm:$0x1]  ;;  %v1698_v40 = vld [vmem:[%s1954_s22 + $0x1a] sm:$0x1] }
  0x3e   : > { %422 = vst [vmem:[%s392_s18 + $0x3] sm:$0x1] %v1693_v35  ;;  %v1699_v41 = vld [vmem:[%s1954_s22 + $0x1d] sm:$0x1]  ;;  %v1700_v42 = vld [vmem:[%s1954_s22 + $0x20] sm:$0x1] }
  0x3f   : > { %424 = vst [vmem:[%s392_s18 + $0x4] sm:$0x1] %v1694_v36  ;;  %v1701_v43 = vld [vmem:[%s1954_s22 + $0x23] sm:$0x1]  ;;  %v1702_v44 = vld [vmem:[%s1954_s22 + $0x26] sm:$0x1] }
  0x40   : > { %426 = vst [vmem:[%s392_s18 + $0x5] sm:$0x1] %v1695_v37  ;;  %v1703_v45 = vld [vmem:[%s1954_s22 + $0x29] sm:$0x1]  ;;  %v1704_v46 = vld [vmem:[%s1954_s22 + $0x2c] sm:$0x1] }
  0x41   : > { %428 = vst [vmem:[%s392_s18 + $0x6] sm:$0x1] %v1696_v38  ;;  %v1705_v47 = vld [vmem:[%s1954_s22 + $0x2f] sm:$0x1] }
  0x42   : > { %430 = vst [vmem:[%s392_s18 + $0x7] sm:$0x1] %v1697_v39 }
  0x43   : > { %432 = vst [vmem:[%s392_s18 + $0x8] sm:$0x1] %v1698_v40 }
  0x44   : > { %434 = vst [vmem:[%s392_s18 + $0x9] sm:$0x1] %v1699_v41 }
  0x45   : > { %436 = vst [vmem:[%s392_s18 + $0xa] sm:$0x1] %v1700_v42 }
  0x46   : > { %438 = vst [vmem:[%s392_s18 + $0xb] sm:$0x1] %v1701_v43 }
  0x47   : > { %440 = vst [vmem:[%s392_s18 + $0xc] sm:$0x1] %v1702_v44 }
  0x48   : > { %442 = vst [vmem:[%s392_s18 + $0xd] sm:$0x1] %v1703_v45 }
  0x49   : > { %444 = vst [vmem:[%s392_s18 + $0xe] sm:$0x1] %v1704_v46 }
  0x4a   : > { %446 = vst [vmem:[%s392_s18 + $0xf] sm:$0x1] %v1705_v47 }
  0x4b PF: > { %p1706_p6 = scmp.ge.s32.totalorder %s1829_s16, 1  ;;  %p501_p7 = scmp.lt.s32.totalorder %s1829_s16, 3 }
  0x4d   : > { %p502_p8 = pnand %p1706_p6, %p501_p7 }
  0x4f   : > { %505 = sbr.rel (%p502_p8) target bundleno = 1490 (0x5d2), region = 143 }
  0x54   : > { %s508_s23 = sand.u32 1, %s1813_s12   ;;  %vm724_vm0 = vcmask 1041409   ;;  %vm727_vm1 = vcmask 1042434   ;;  %vm730_vm2 = vcmask 1043459   ;;  %vm733_vm3 = vcmask 1044484   ;;  %s1834_s27 = smov 16  }
  0x55   : > { %s1975_s24 = sshll.u32 %s508_s23, 4  ;;  %vm736_vm4 = vcmask 1045509   ;;  %vm739_vm5 = vcmask 1046534   ;;  %vm742_vm6 = vcmask 1047559   ;;  %vm584_vm7 = vcmask 130048   ;;  %p561_p9 = scmp.lt.s32.totalorder %s1821_s14, 1 }
  0x56   : > { %s1978_s25 = scalar_lea.vmem [#allocation5], %s1975_s24  ;;  %s2075_s12 = scalar_lea.vmem [#allocation6], %s1975_s24  ;;  %vm575_vm8 = vcmask 7168   ;;  %vm1530_vm9 = vcmask 257024  }
  0x57   : > { %v1981_v48 = vld [vmem:[%s1978_s25] sm:$0x1]  ;;  %v1985_v49 = vld [vmem:[%s1978_s25 + $0x1] sm:$0x1]  ;;  %v1991_v51 = vld [vmem:[%s1978_s25 + $0x2] sm:$0x1] }
  0x58   : > { %644 = vst [vmem:[#allocation1] ss:$9 sm:$0xff] %v1981_v48  ;;  %v1997_v53 = vld [vmem:[%s1978_s25 + $0x3] sm:$0x1]  ;;  %v2003_v55 = vld [vmem:[%s1978_s25 + $0x4] sm:$0x1] }
  0x59   : > { %v2009_v57 = vld [vmem:[%s1978_s25 + $0x5] sm:$0x1]  ;;  %v2015_v59 = vld [vmem:[%s1978_s25 + $0x6] sm:$0x1]  ;;  %v2021_v61 = vld [vmem:[%s1978_s25 + $0x7] sm:$0x1] }
  0x5a   : > { %v2027_v63 = vld [vmem:[%s1978_s25 + $0x8] sm:$0x1]  ;;  %v2033_v1 = vld [vmem:[%s1978_s25 + $0x9] sm:$0x1]  ;;  %v2039_v3 = vld [vmem:[%s1978_s25 + $0xa] sm:$0x1] }
  0x5b   : > { %v2045_v5 = vld [vmem:[%s1978_s25 + $0xb] sm:$0x1]  ;;  %v2051_v7 = vld [vmem:[%s1978_s25 + $0xc] sm:$0x1]  ;;  %v2057_v9 = vld [vmem:[%s1978_s25 + $0xd] sm:$0x1] }
  0x5c   : > { %v2063_v11 = vld [vmem:[%s1978_s25 + $0xe] sm:$0x1]  ;;  %v2069_v13 = vld [vmem:[%s1978_s25 + $0xf] sm:$0x1]  ;;  %v2078_v15 = vld [vmem:[%s2075_s12] sm:$0x1] }
  0x5d   : > { %v2084_v17 = vld [vmem:[%s2075_s12 + $0x1] sm:$0x1]  ;;  %v2088_v19 = vld [vmem:[%s2075_s12 + $0x2] sm:$0x1]  ;;  %v2092_v21 = vld [vmem:[%s2075_s12 + $0x3] sm:$0x1] }
  0x5e   : > { %v2096_v23 = vld [vmem:[%s2075_s12 + $0x4] sm:$0x1]  ;;  %v2100_v25 = vld [vmem:[%s2075_s12 + $0x5] sm:$0x1]  ;;  %v2106_v27 = vld [vmem:[%s2075_s12 + $0x6] sm:$0x1] }
  0x5f   : > { %v1987_v50 = vld [vmem:[#allocation1] sm:$0xf]  ;;  %2610 = vst [vmem:[#allocation8_spill] sm:$0xff] %v2100_v25  ;;  %v2112_v29 = vld [vmem:[%s2075_s12 + $0x7] sm:$0x1]  ;;  %s2183_s26 = scalar_lea.vmem [#allocation7], %s1975_s24 }
  0x60   : > { %648 = vst [vmem:[#allocation1] ss:$9 sm:$0xff] %v1985_v49  ;;  %v2118_v31 = vld [vmem:[%s2075_s12 + $0x8] sm:$0x1]  ;;  %v2124_v33 = vld [vmem:[%s2075_s12 + $0x9] sm:$0x1] }
  0x61   : > { %2611 = vst [vmem:[#allocation9_spill] sm:$0xff] %v2106_v27  ;;  %v2128_v35 = vld [vmem:[%s2075_s12 + $0xa] sm:$0x1]  ;;  %v2132_v37 = vld [vmem:[%s2075_s12 + $0xb] sm:$0x1]  ;;  %s2665_s14 = smov (!%p561_p9, %s1821_s14), 1 }
  0x62   : > { %2612 = vst [vmem:[#allocation10_spill] sm:$0xff] %v2112_v29  ;;  %v2136_v39 = vld [vmem:[%s2075_s12 + $0xc] sm:$0x1]  ;;  %v2140_v41 = vld [vmem:[%s2075_s12 + $0xd] sm:$0x1]  ;;  %s1718_s28 = sshll.u32 %s2665_s14, 3 }
  0x63   : > { %2613 = vst [vmem:[#allocation11_spill] sm:$0xff] %v2118_v31  ;;  %s568_s4 = scalar_lea.vmem %s2599_s3, %s1718_s28 }
  0x64   : > { %2614 = vst [vmem:[#allocation12_spill] sm:$0xff] %v2124_v33 }
  0x65   : > { %2615 = vst [vmem:[#allocation13_spill] sm:$0xff] %v2128_v35 }
  0x66   : > { %2616 = vst [vmem:[#allocation14_spill] sm:$0xff] %v2132_v37 }
  0x67   : > { %v1993_v52 = vld [vmem:[#allocation1] sm:$0xf]  ;;  %2617 = vst [vmem:[#allocation15_spill] sm:$0xff] %v2136_v39 }
  0x68   : > { %652 = vst [vmem:[#allocation1] ss:$9 sm:$0xff] %v1991_v51 }
  0x69   : > { %2618 = vst [vmem:[#allocation16_spill] sm:$0xff] %v2140_v41 }
  0x6f   : > { %v1999_v54 = vld [vmem:[#allocation1] sm:$0xf] }
  0x70   : > { %656 = vst [vmem:[#allocation1] ss:$9 sm:$0xff] %v1997_v53 }
  0x77   : > { %v2005_v56 = vld [vmem:[#allocation1] sm:$0xf] }
  0x78   : > { %660 = vst [vmem:[#allocation1] ss:$9 sm:$0xff] %v2003_v55 }
  0x7f   : > { %v2011_v58 = vld [vmem:[#allocation1] sm:$0xf] }
  0x80   : > { %664 = vst [vmem:[#allocation1] ss:$9 sm:$0xff] %v2009_v57 }
  0x87   : > { %v2017_v60 = vld [vmem:[#allocation1] sm:$0xf] }
  0x88   : > { %668 = vst [vmem:[#allocation1] ss:$9 sm:$0xff] %v2015_v59 }
  0x8f   : > { %v2023_v62 = vld [vmem:[#allocation1] sm:$0xf] }
  0x90   : > { %672 = vst [vmem:[#allocation1] ss:$9 sm:$0xff] %v2021_v61 }
  0x97   : > { %v2029_v0 = vld [vmem:[#allocation1] sm:$0xf] }
  0x98   : > { %676 = vst [vmem:[#allocation1] ss:$9 sm:$0xff] %v2027_v63 }
  0x9f   : > { %v2035_v2 = vld [vmem:[#allocation1] sm:$0xf] }
  0xa0   : > { %680 = vst [vmem:[#allocation1] ss:$9 sm:$0xff] %v2033_v1 }
  0xa7   : > { %v2041_v4 = vld [vmem:[#allocation1] sm:$0xf] }
  0xa8   : > { %684 = vst [vmem:[#allocation1] ss:$9 sm:$0xff] %v2039_v3 }
  0xaf   : > { %v2047_v6 = vld [vmem:[#allocation1] sm:$0xf] }
  0xb0   : > { %688 = vst [vmem:[#allocation1] ss:$9 sm:$0xff] %v2045_v5 }
  0xb7   : > { %v2053_v8 = vld [vmem:[#allocation1] sm:$0xf] }
  0xb8   : > { %692 = vst [vmem:[#allocation1] ss:$9 sm:$0xff] %v2051_v7 }
  0xbf   : > { %v2059_v10 = vld [vmem:[#allocation1] sm:$0xf] }
  0xc0   : > { %696 = vst [vmem:[#allocation1] ss:$9 sm:$0xff] %v2057_v9 }
  0xc7   : > { %v2065_v12 = vld [vmem:[#allocation1] sm:$0xf] }
  0xc8   : > { %700 = vst [vmem:[#allocation1] ss:$9 sm:$0xff] %v2063_v11 }
  0xcf   : > { %v2071_v14 = vld [vmem:[#allocation1] sm:$0xf] }
  0xd0   : > { %704 = vst [vmem:[#allocation1] ss:$9 sm:$0xff] %v2069_v13 }
  0xd7   : > { %v2080_v16 = vld [vmem:[#allocation1] sm:$0xf] }
  0xd8   : > { %760 = vst [vmem:[#allocation1] ss:$9 sm:$0xff] %v2078_v15 }
  0xdf   : > { %v761_v18 = vld [vmem:[#allocation1] sm:$0xf] }
  0xe0   : > { %764 = vst [vmem:[#allocation1] ss:$9 sm:$0xff] %v2084_v17  ;;  %v823_v46 = vunpack.c.l.b16 %v761_v18 }
  0xe7   : > { %v765_v20 = vld [vmem:[#allocation1] sm:$0xf] }
  0xe8   : > { %768 = vst [vmem:[#allocation1] ss:$9 sm:$0xff] %v2088_v19  ;;  %v824_v43 = vunpack.c.l.b16 %v765_v20 }
  0xef   : > { %v769_v22 = vld [vmem:[#allocation1] sm:$0xf] }
  0xf0   : > { %772 = vst [vmem:[#allocation1] ss:$9 sm:$0xff] %v2092_v21  ;;  %v825_v45 = vunpack.c.l.b16 %v769_v22 }
  0xf7   : > { %v773_v24 = vld [vmem:[#allocation1] sm:$0xf] }
  0xf8   : > { %776 = vst [vmem:[#allocation1] ss:$9 sm:$0xff] %v2096_v23  ;;  %v826_v47 = vunpack.c.l.b16 %v773_v24 }
  0xfa   : > { %v843_v24 = vrot.slane %v826_v47, 5 }
  0xff   : > { %v2102_v26 = vld [vmem:[#allocation1] sm:$0xf] }
 0x100   : > { %780 = vst [vmem:[#allocation1] ss:$9 sm:$0xff] %v2100_v25  ;;  %v827_v18 = vunpack.c.l.b16 %v2102_v26 }
 0x107   : > { %v2108_v28 = vld [vmem:[#allocation1] sm:$0xf] }
 0x108   : > { %784 = vst [vmem:[#allocation1] ss:$9 sm:$0xff] %v2106_v27  ;;  %v708_v27 = vunpack.c.l.b16 %v1993_v52  ;;  %v709_v52 = vunpack.c.l.b16 %v1999_v54  ;;  %v718_v54 = vunpack.c.l.b16 %v2053_v8  ;;  %v711_v8 = vunpack.c.l.b16 %v2011_v58 }
 0x10f   : > { %v2114_v30 = vld [vmem:[#allocation1] sm:$0xf] }
 0x110   : > { %788 = vst [vmem:[#allocation1] ss:$9 sm:$0xff] %v2112_v29  ;;  %v829_v47 = vunpack.c.l.b16 %v2114_v30 }
 0x117   : > { %v2120_v32 = vld [vmem:[#allocation1] sm:$0xf] }
 0x118   : > { %792 = vst [vmem:[#allocation1] ss:$9 sm:$0xff] %v2118_v31 }
 0x11f   : > { %v793_v34 = vld [vmem:[#allocation1] sm:$0xf] }
 0x120   : > { %796 = vst [vmem:[#allocation1] ss:$9 sm:$0xff] %v2124_v33  ;;  %v2144_v33 = vld [vmem:[%s2075_s12 + $0xe] sm:$0x1] }
 0x127   : > { %v797_v36 = vld [vmem:[#allocation1] sm:$0xf] }
 0x128   : > { %800 = vst [vmem:[#allocation1] ss:$9 sm:$0xff] %v2128_v35  ;;  %v832_v44 = vunpack.c.l.b16 %v797_v36  ;;  %v839_v35 = vrot.slane %v824_v43, 7  ;;  %v715_v43 = vunpack.c.l.b16 %v2035_v2  ;;  %v726_v2 = vrot.slane %v709_v52, 6 }
 0x12a   : > { %v853_v29 = vrot.slane %v832_v44, 7  ;;  %v840_v22 = vsel %vm724_vm0, %v839_v35, %v823_v46  ;;  %v723_v44 = vrot.slane %v708_v27, 7 }
 0x12f   : > { %v801_v38 = vld [vmem:[#allocation1] sm:$0xf] }
 0x130   : > { %804 = vst [vmem:[#allocation1] ss:$9 sm:$0xff] %v2132_v37  ;;  %v831_v37 = vunpack.c.l.b16 %v793_v34  ;;  %v833_v31 = vunpack.c.l.b16 %v801_v38  ;;  %v707_v38 = vunpack.c.l.b16 %v1987_v50 }
 0x132   : > { %v854_v34 = vsel %vm724_vm0, %v853_v29, %v831_v37  ;;  %v855_v36 = vrot.slane %v833_v31, 6  ;;  %v710_v31 = vunpack.c.l.b16 %v2005_v56  ;;  %v2161_v37 = vld [vmem:[%s2075_s12 + $0xf] sm:$0x1] }
 0x134   : > { %v856_v50 = vsel %vm727_vm1, %v855_v36, %v854_v34  ;;  %v748_v34 = vrot.slane %v718_v54, 5 }
 0x137   : > { %v805_v40 = vld [vmem:[#allocation1] sm:$0xf] }
 0x138   : > { %808 = vst [vmem:[#allocation1] ss:$9 sm:$0xff] %v2136_v39  ;;  %v716_v39 = vunpack.c.l.b16 %v2041_v4  ;;  %v834_v20 = vunpack.c.l.b16 %v805_v40  ;;  %v717_v4 = vunpack.c.l.b16 %v2047_v6  ;;  %v828_v40 = vunpack.c.l.b16 %v2108_v28 }
 0x139   : > { %v845_v6 = vrot.slane %v827_v18, 4 }
 0x13a   : > { %v857_v29 = vrot.slane %v834_v20, 5  ;;  %v746_v27 = vrot.slane %v717_v4, 6  ;;  %v719_v20 = vunpack.c.l.b16 %v2059_v10  ;;  %v847_v18 = vrot.slane %v828_v40, 3 }
 0x13b   : > { %v830_v4 = vunpack.c.l.b16 %v2120_v32  ;;  %v712_v10 = vunpack.c.l.b16 %v2017_v60  ;;  %v2186_v32 = vld [vmem:[%s2183_s26] sm:$0x1] }
 0x13d   : > { %v851_v54 = vrot.slane %v830_v4, 1 }
 0x13f   : > { %v809_v42 = vld [vmem:[#allocation1] sm:$0xf] }
 0x140   : > { %812 = vst [vmem:[#allocation1] ss:$9 sm:$0xff] %v2140_v41  ;;  %v841_v41 = vrot.slane %v825_v45, 6  ;;  %v744_v45 = vrot.slane %v716_v39, 7  ;;  %v835_v26 = vunpack.c.l.b16 %v809_v42  ;;  %v725_v42 = vsel %vm724_vm0, %v723_v44, %v707_v38 }
 0x141   : > { %v728_v52 = vsel %vm727_vm1, %v726_v2, %v725_v42  ;;  %v720_v38 = vunpack.c.l.b16 %v2065_v12  ;;  %v713_v12 = vunpack.c.l.b16 %v2023_v62  ;;  %v714_v62 = vunpack.c.l.b16 %v2029_v0  ;;  %v2203_v0 = vld [vmem:[%s2183_s26 + $0x1] sm:$0x1] }
 0x142   : > { %v842_v35 = vsel %vm727_vm1, %v841_v41, %v840_v22  ;;  %v745_v41 = vsel %vm724_vm0, %v744_v45, %v715_v43  ;;  %v859_v56 = vrot.slane %v835_v26, 4  ;;  %v858_v22 = vsel %vm730_vm2, %v857_v29, %v856_v50 }
 0x143   : > { %v844_v46 = vsel %vm730_vm2, %v843_v24, %v842_v35  ;;  %v747_v30 = vsel %vm727_vm1, %v746_v27, %v745_v41  ;;  %v849_v43 = vrot.slane %v829_v47, 2  ;;  %v732_v45 = vrot.slane %v711_v8, 4 }
 0x144   : > { %v846_v36 = vsel %vm733_vm3, %v845_v6, %v844_v46  ;;  %v860_v44 = vsel %vm733_vm3, %v859_v56, %v858_v22  ;;  %v750_v26 = vrot.slane %v719_v20, 4  ;;  %v749_v29 = vsel %vm730_vm2, %v748_v34, %v747_v30 }
 0x145   : > { %v848_v35 = vsel %vm736_vm4, %v847_v18, %v846_v36  ;;  %v735_v50 = vrot.slane %v712_v10, 3  ;;  %v752_v2 = vrot.slane %v720_v38, 3  ;;  %v738_v47 = vrot.slane %v713_v12, 2  ;;  %v2239_v12 = vld [vmem:[%s2183_s26 + $0x6] sm:$0x1] }
 0x146   : > { %v751_v42 = vsel %vm733_vm3, %v750_v26, %v749_v29  ;;  %v741_v34 = vrot.slane %v714_v62, 1  ;;  %v2233_v29 = vld [vmem:[%s2183_s26 + $0x5] sm:$0x1] }
 0x147   : > { %v813_v25 = vld [vmem:[#allocation1] sm:$0xf]  ;;  %v753_v22 = vsel %vm736_vm4, %v752_v2, %v751_v42 }
 0x148   : > { %816 = vst [vmem:[#allocation1] ss:$9 sm:$0xff] %v2144_v33  ;;  %v836_v39 = vunpack.c.l.b16 %v813_v25  ;;  %v729_v25 = vrot.slane %v710_v31, 5  ;;  %v721_v31 = vunpack.c.l.b16 %v2071_v14  ;;  %v722_v14 = vunpack.c.l.b16 %v2080_v16 }
 0x14a   : > { %v861_v58 = vrot.slane %v836_v39, 3  ;;  %v731_v40 = vsel %vm730_vm2, %v729_v25, %v728_v52  ;;  %v850_v39 = vsel %vm739_vm5, %v849_v43, %v848_v35  ;;  %v754_v56 = vrot.slane %v721_v31, 2  ;;  %v2214_v43 = vld [vmem:[%s2183_s26 + $0x2] sm:$0x1]  ;;  %v2227_v35 = vld [vmem:[%s2183_s26 + $0x4] sm:$0x1] }
 0x14b   : > { %v734_v46 = vsel %vm733_vm3, %v732_v45, %v731_v40  ;;  %v852_v8 = vsel %vm742_vm6, %v851_v54, %v850_v39  ;;  %v2221_v45 = vld [vmem:[%s2183_s26 + $0x3] sm:$0x1]  ;;  %v2245_v54 = vld [vmem:[%s2183_s26 + $0x7] sm:$0x1] }
 0x14c   : > { %v862_v6 = vsel %vm736_vm4, %v861_v58, %v860_v44  ;;  %v737_v18 = vsel %vm736_vm4, %v735_v50, %v734_v46  ;;  %v755_v52 = vsel %vm739_vm5, %v754_v56, %v753_v22  ;;  %v2251_v50 = vld [vmem:[%s2183_s26 + $0x8] sm:$0x1]  ;;  %v2263_v46 = vld [vmem:[%s2183_s26 + $0xa] sm:$0x1] }
 0x14d   : > { %v740_v36 = vsel %vm739_vm5, %v738_v47, %v737_v18  ;;  %v2281_v47 = vld [vmem:[%s2183_s26 + $0xd] sm:$0x1]  ;;  %v2293_v18 = vld [vmem:[%s2183_s26 + $0xf] sm:$0x1] }
 0x14e   : > { %v743_v58 = vsel %vm742_vm6, %v741_v34, %v740_v36 }
 0x14f   : > { %v817_v28 = vld [vmem:[#allocation1] sm:$0xf] }
 0x150   : > { %820 = vst [vmem:[#allocation1] ss:$9 sm:$0xff] %v2161_v37  ;;  %v837_v24 = vunpack.c.l.b16 %v817_v28 }
 0x152   : > { %v863_v60 = vrot.slane %v837_v24, 2  ;;  %v756_v24 = vrot.slane %v722_v14, 1  ;;  %v2275_v14 = vld [vmem:[%s2183_s26 + $0xc] sm:$0x1] }
 0x154   : > { %v864_v28 = vsel %vm739_vm5, %v863_v60, %v862_v6  ;;  %v757_v10 = vsel %vm742_vm6, %v756_v24, %v755_v52 }
 0x155   : > { %v758_v38 = vpack.c.b16 %v757_v10, %v743_v58  ;;  %v2634_v58 = vld [vmem:[#allocation8_spill] sm:$0xff]  ;;  %v2635_v10 = vld [vmem:[#allocation9_spill] sm:$0xff] }
 0x157   : > { %v821_v27 = vld [vmem:[#allocation1] sm:$0xf] }
 0x158   : > { %v838_v41 = vunpack.c.l.b16 %v821_v27  ;;  %943 = vst [vmem:[#allocation1] ss:$9 sm:$0xff] %v2186_v32  ;;  %v2257_v27 = vld [vmem:[%s2183_s26 + $0x9] sm:$0x1] }
 0x15a   : > { %v865_v20 = vrot.slane %v838_v41, 1  ;;  %v2269_v41 = vld [vmem:[%s2183_s26 + $0xb] sm:$0x1] }
 0x15c   : > { %v866_v25 = vsel %vm742_vm6, %v865_v20, %v864_v28 }
 0x15d   : > { %v867_v16 = vpack.c.b16 %v866_v25, %v852_v8  ;;  %v2287_v8 = vld [vmem:[%s2183_s26 + $0xe] sm:$0x1] }
 0x15f   : > { %v873_v30 = vsel %vm584_vm7, %v867_v16, 0  ;;  %v2208_v4 = vld [vmem:[#allocation1] sm:$0xf] }
 0x160   : > { %882 = vmatpush.bf16.xpose.msra.mxu0 %v873_v30  ;;  %947 = vst [vmem:[#allocation1] ss:$9 sm:$0xff] %v2203_v0 }
 0x167   : > { %1712 = vmatmul.msk.bf16.vlgmr.msra.gmra.mxu0 %vm584_vm7, %v758_v38  ;;  %v2217_v44 = vld [vmem:[#allocation1] sm:$0xf]  ;;  %v2636_v38 = vld [vmem:[#allocation10_spill] sm:$0xff] }
 0x168   : > { %2619 = vst [vmem:[#allocation17_spill] sm:$0xff] %v2217_v44 }
 0x169   : > { %951 = vst [vmem:[#allocation1] ss:$9 sm:$0xff] %v2214_v43 }
 0x170   : > { %v2223_v26 = vld [vmem:[#allocation1] sm:$0xf] }
 0x171   : > { %2620 = vst [vmem:[#allocation18_spill] sm:$0xff] %v2223_v26 }
 0x172   : > { %955 = vst [vmem:[#allocation1] ss:$9 sm:$0xff] %v2221_v45 }
 0x179   : > { %v2229_v40 = vld [vmem:[#allocation1] sm:$0xf] }
 0x17a   : > { %2621 = vst [vmem:[#allocation19_spill] sm:$0xff] %v2229_v40 }
 0x17b   : > { %959 = vst [vmem:[#allocation1] ss:$9 sm:$0xff] %v2227_v35 }
 0x182   : > { %v2235_v60 = vld [vmem:[#allocation1] sm:$0xf] }
 0x183   : > { %2622 = vst [vmem:[#allocation20_spill] sm:$0xff] %v2235_v60 }
 0x184   : > { %963 = vst [vmem:[#allocation1] ss:$9 sm:$0xff] %v2233_v29 }
 0x18b   : > { %v2241_v31 = vld [vmem:[#allocation1] sm:$0xf] }
 0x18c   : > { %2623 = vst [vmem:[#allocation21_spill] sm:$0xff] %v2241_v31 }
 0x18d   : > { %967 = vst [vmem:[#allocation1] ss:$9 sm:$0xff] %v2239_v12 }
 0x194   : > { %v2247_v6 = vld [vmem:[#allocation1] sm:$0xf] }
 0x195   : > { %2624 = vst [vmem:[#allocation22_spill] sm:$0xff] %v2247_v6 }
 0x196   : > { %971 = vst [vmem:[#allocation1] ss:$9 sm:$0xff] %v2245_v54 }
 0x19d   : > { %v2253_v2 = vld [vmem:[#allocation1] sm:$0xf] }
 0x19e   : > { %2625 = vst [vmem:[#allocation23_spill] sm:$0xff] %v2253_v2  ;;  %v2642_v2 = vld [vmem:[#allocation16_spill] sm:$0xff] }
 0x19f   : > { %975 = vst [vmem:[#allocation1] ss:$9 sm:$0xff] %v2251_v50 }
 0x1a6   : > { %v2259_v39 = vld [vmem:[#allocation1] sm:$0xf] }
 0x1a7   : > { %2626 = vst [vmem:[#allocation24_spill] sm:$0xff] %v2259_v39  ;;  %v2641_v39 = vld [vmem:[#allocation15_spill] sm:$0xff] }
 0x1a8   : > { %979 = vst [vmem:[#allocation1] ss:$9 sm:$0xff] %v2257_v27 }
 0x1af   : > { %v2265_v42 = vld [vmem:[#allocation1] sm:$0xf] }
 0x1b0   : > { %2627 = vst [vmem:[#allocation25_spill] sm:$0xff] %v2265_v42 }
 0x1b1   : > { %983 = vst [vmem:[#allocation1] ss:$9 sm:$0xff] %v2263_v46 }
 0x1b8   : > { %v2271_v62 = vld [vmem:[#allocation1] sm:$0xf] }
 0x1b9   : > { %2628 = vst [vmem:[#allocation26_spill] sm:$0xff] %v2271_v62 }
 0x1ba   : > { %987 = vst [vmem:[#allocation1] ss:$9 sm:$0xff] %v2269_v41 }
 0x1c1   : > { %v2277_v28 = vld [vmem:[#allocation1] sm:$0xf] }
 0x1c2   : > { %2629 = vst [vmem:[#allocation27_spill] sm:$0xff] %v2277_v28 }
 0x1c3   : > { %991 = vst [vmem:[#allocation1] ss:$9 sm:$0xff] %v2275_v14 }
 0x1ca   : > { %v2283_v56 = vld [vmem:[#allocation1] sm:$0xf] }
 0x1cb   : > { %2630 = vst [vmem:[#allocation28_spill] sm:$0xff] %v2283_v56 }
 0x1cc   : > { %995 = vst [vmem:[#allocation1] ss:$9 sm:$0xff] %v2281_v47 }
 0x1d3   : > { %v2289_v20 = vld [vmem:[#allocation1] sm:$0xf] }
 0x1d4   : > { %2631 = vst [vmem:[#allocation29_spill] sm:$0xff] %v2289_v20 }
 0x1d5   : > { %999 = vst [vmem:[#allocation1] ss:$9 sm:$0xff] %v2287_v8 }
 0x1dc   : > { %v2295_v22 = vld [vmem:[#allocation1] sm:$0xf] }
 0x1dd   : > { %2632 = vst [vmem:[#allocation30_spill] sm:$0xff] %v2295_v22 }
 0x1de   : > { %1003 = vst [vmem:[#allocation1] ss:$9 sm:$0xff] %v2293_v18 }
 0x1e5   : > { %v2298_v25 = vld [vmem:[#allocation1] sm:$0xf] }
 0x1e6   : > { %2633 = vst [vmem:[#allocation31_spill] sm:$0xff] %v2298_v25 }
 0x1e7   : > { %1087 = vst [vmem:[#allocation1] ss:$9 sm:$0xff] %v1981_v48 }
 0x1ee   : > { %v2301_v34 = vld [vmem:[#allocation1] sm:$0xf] }
 0x1ef   : > { %1090 = vst [vmem:[#allocation1] ss:$9 sm:$0xff] %v1985_v49 }
 0x1f6   : > { %v2304_v24 = vld [vmem:[#allocation1] sm:$0xf] }
 0x1f7   : > { %1093 = vst [vmem:[#allocation1] ss:$9 sm:$0xff] %v1991_v51 }
 0x1fe   : > { %v2307_v16 = vld [vmem:[#allocation1] sm:$0xf] }
 0x1ff   : > { %1096 = vst [vmem:[#allocation1] ss:$9 sm:$0xff] %v1997_v53 }
 0x206   : > { %v2310_v36 = vld [vmem:[#allocation1] sm:$0xf] }
 0x207   : > { %1099 = vst [vmem:[#allocation1] ss:$9 sm:$0xff] %v2003_v55 }
 0x20e   : > { %v2313_v52 = vld [vmem:[#allocation1] sm:$0xf] }
 0x20f   : > { %1102 = vst [vmem:[#allocation1] ss:$9 sm:$0xff] %v2009_v57 }
 0x216   : > { %v2316_v48 = vld [vmem:[#allocation1] sm:$0xf] }
 0x217   : > { %1105 = vst [vmem:[#allocation1] ss:$9 sm:$0xff] %v2015_v59 }
 0x21e   : > { %v2319_v49 = vld [vmem:[#allocation1] sm:$0xf] }
 0x21f   : > { %1108 = vst [vmem:[#allocation1] ss:$9 sm:$0xff] %v2021_v61 }
 0x226   : > { %v2322_v51 = vld [vmem:[#allocation1] sm:$0xf] }
 0x227   : > { %1111 = vst [vmem:[#allocation1] ss:$9 sm:$0xff] %v2027_v63 }
 0x22e   : > { %v2325_v53 = vld [vmem:[#allocation1] sm:$0xf] }
 0x22f   : > { %1114 = vst [vmem:[#allocation1] ss:$9 sm:$0xff] %v2033_v1  ;;  %v1143_v40 = vunpack.c.l.b16 %v2325_v53 }
 0x236   : > { %v2328_v55 = vld [vmem:[#allocation1] sm:$0xf] }
 0x237   : > { %1117 = vst [vmem:[#allocation1] ss:$9 sm:$0xff] %v2039_v3 }
 0x23e   : > { %v2331_v57 = vld [vmem:[#allocation1] sm:$0xf] }
 0x23f   : > { %1120 = vst [vmem:[#allocation1] ss:$9 sm:$0xff] %v2045_v5  ;;  %v1145_v53 = vunpack.c.l.b16 %v2331_v57 }
 0x246   : > { %v2334_v59 = vld [vmem:[#allocation1] sm:$0xf] }
 0x247   : > { %1123 = vst [vmem:[#allocation1] ss:$9 sm:$0xff] %v2051_v7 }
 0x24e   : > { %v2337_v61 = vld [vmem:[#allocation1] sm:$0xf] }
 0x24f   : > { %1126 = vst [vmem:[#allocation1] ss:$9 sm:$0xff] %v2057_v9 }
 0x256   : > { %v2340_v63 = vld [vmem:[#allocation1] sm:$0xf] }
 0x257   : > { %1129 = vst [vmem:[#allocation1] ss:$9 sm:$0xff] %v2063_v11 }
 0x25e   : > { %v2343_v1 = vld [vmem:[#allocation1] sm:$0xf] }
 0x25f   : > { %1132 = vst [vmem:[#allocation1] ss:$9 sm:$0xff] %v2069_v13 }
 0x266   : > { %v2346_v3 = vld [vmem:[#allocation1] sm:$0xf] }
 0x267   : > { %1180 = vst [vmem:[#allocation1] ss:$9 sm:$0xff] %v2078_v15 }
 0x26e   : > { %v1181_v5 = vld [vmem:[#allocation1] sm:$0xf] }
 0x26f   : > { %1183 = vst [vmem:[#allocation1] ss:$9 sm:$0xff] %v2084_v17 }
 0x276   : > { %v1184_v7 = vld [vmem:[#allocation1] sm:$0xf] }
 0x277   : > { %1186 = vst [vmem:[#allocation1] ss:$9 sm:$0xff] %v2088_v19  ;;  %v2637_v19 = vld [vmem:[#allocation11_spill] sm:$0xff]  ;;  %v1229_v42 = vunpack.c.l.b16 %v1184_v7  ;;  %v1144_v7 = vunpack.c.l.b16 %v2328_v55 }
 0x27e   : > { %v1187_v30 = vld [vmem:[#allocation1] sm:$0xf] }
 0x27f   : > { %1189 = vst [vmem:[#allocation1] ss:$9 sm:$0xff] %v2092_v21  ;;  %v2638_v21 = vld [vmem:[#allocation12_spill] sm:$0xff]  ;;  %v1230_v62 = vunpack.c.l.b16 %v1187_v30 }
 0x281   : > { %v1246_v44 = vrot.slane %v1230_v62, 7  ;;  %v1136_v62 = vunpack.c.l.b16 %v2304_v24 }
 0x286   : > { %v1190_v9 = vld [vmem:[#allocation1] sm:$0xf] }
 0x287   : > { %1192 = vst [vmem:[#allocation1] ss:$9 sm:$0xff] %v2096_v23  ;;  %v2639_v23 = vld [vmem:[#allocation13_spill] sm:$0xff]  ;;  %v1231_v31 = vunpack.c.l.b16 %v1190_v9 }
 0x28e   : > { %v1193_v11 = vld [vmem:[#allocation1] sm:$0xf] }
 0x28f   : > { %1195 = vst [vmem:[#allocation1] ss:$9 sm:$0xff] %v2634_v58  ;;  %v2640_v58 = vld [vmem:[#allocation14_spill] sm:$0xff]  ;;  %v1232_v26 = vunpack.c.l.b16 %v1193_v11 }
 0x296   : > { %v2354_v13 = vld [vmem:[#allocation1] sm:$0xf] }
 0x297   : > { %1198 = vst [vmem:[#allocation1] ss:$9 sm:$0xff] %v2635_v10 }
 0x29e   : > { %v2357_v15 = vld [vmem:[#allocation1] sm:$0xf] }
 0x29f   : > { %1201 = vst [vmem:[#allocation1] ss:$9 sm:$0xff] %v2636_v38  ;;  %v1228_v38 = vunpack.c.l.b16 %v1181_v5 }
 0x2a1   : > { %v1244_v6 = vrot.slane %v1228_v38, 1  ;;  %v1167_v38 = vrot.slane %v1145_v53, 7 }
 0x2a6   : > { %v2360_v17 = vld [vmem:[#allocation1] sm:$0xf] }
 0x2a7   : > { %1204 = vst [vmem:[#allocation1] ss:$9 sm:$0xff] %v2637_v19 }
 0x2ae   : > { %v1205_v25 = vld [vmem:[#allocation1] sm:$0xf] }
 0x2af   : > { %1207 = vst [vmem:[#allocation1] ss:$9 sm:$0xff] %v2638_v21  ;;  %v1236_v28 = vunpack.c.l.b16 %v1205_v25  ;;  %v1245_v25 = vsel %vm724_vm0, %v1229_v42, %v1244_v6  ;;  %v1233_v42 = vunpack.c.l.b16 %v2354_v13  ;;  %v1234_v13 = vunpack.c.l.b16 %v2357_v15 }
 0x2b0   : > { %v1247_v6 = vsel %vm727_vm1, %v1246_v44, %v1245_v25  ;;  %v1235_v15 = vunpack.c.l.b16 %v2360_v17  ;;  %v1149_v17 = vunpack.c.l.b16 %v2343_v1 }
 0x2b1   : > { %v1258_v60 = vrot.slane %v1236_v28, 1 }
 0x2b6   : > { %v1208_v22 = vld [vmem:[#allocation1] sm:$0xf] }
 0x2b7   : > { %1210 = vst [vmem:[#allocation1] ss:$9 sm:$0xff] %v2639_v23  ;;  %v1237_v21 = vunpack.c.l.b16 %v1208_v22  ;;  %v1135_v23 = vunpack.c.l.b16 %v2301_v34  ;;  %v1248_v22 = vrot.slane %v1231_v31, 6  ;;  %v1137_v34 = vunpack.c.l.b16 %v2307_v16 }
 0x2b8   : > { %v1138_v31 = vunpack.c.l.b16 %v2310_v36  ;;  %v1250_v16 = vrot.slane %v1232_v26, 5  ;;  %v1139_v36 = vunpack.c.l.b16 %v2313_v52  ;;  %v1252_v26 = vrot.slane %v1233_v42, 4 }
 0x2b9   : > { %v1259_v28 = vsel %vm724_vm0, %v1237_v21, %v1258_v60  ;;  %v1146_v60 = vunpack.c.l.b16 %v2334_v59  ;;  %v1153_v11 = vrot.slane %v1137_v34, 7  ;;  %v1249_v55 = vsel %vm730_vm2, %v1248_v22, %v1247_v6 }
 0x2ba   : > { %v1147_v59 = vunpack.c.l.b16 %v2337_v61  ;;  %v1251_v25 = vsel %vm733_vm3, %v1250_v16, %v1249_v55  ;;  %v1140_v52 = vunpack.c.l.b16 %v2316_v48  ;;  %v1148_v61 = vunpack.c.l.b16 %v2340_v63 }
 0x2bb   : > { %v1157_v34 = vrot.slane %v1139_v36, 5  ;;  %v1256_v6 = vrot.slane %v1235_v15, 2 }
 0x2bc   : > { %v1171_v53 = vrot.slane %v1147_v59, 5  ;;  %v1159_v63 = vrot.slane %v1140_v52, 4  ;;  %v1173_v42 = vrot.slane %v1148_v61, 4 }
 0x2be   : > { %v1211_v20 = vld [vmem:[#allocation1] sm:$0xf] }
 0x2bf   : > { %1213 = vst [vmem:[#allocation1] ss:$9 sm:$0xff] %v2640_v58  ;;  %v1238_v19 = vunpack.c.l.b16 %v1211_v20 }
 0x2c1   : > { %v1260_v5 = vrot.slane %v1238_v19, 7 }
 0x2c3   : > { %v1261_v57 = vsel %vm727_vm1, %v1260_v5, %v1259_v28 }
 0x2c6   : > { %v1214_v56 = vld [vmem:[#allocation1] sm:$0xf] }
 0x2c7   : > { %1216 = vst [vmem:[#allocation1] ss:$9 sm:$0xff] %v2641_v39  ;;  %v2370_v39 = vpop.f32.mrf.mxu0 }
 0x2c8   : > { %v889_v20 = vsel %vm584_vm7, %v2370_v39, -inf }
 0x2c9   : > { %890 = vmax.xlane.f32.xlu2 %v889_v20 }
 0x2ce   : > { %v1217_v10 = vld [vmem:[#allocation1] sm:$0xf] }
 0x2cf   : > { %1219 = vst [vmem:[#allocation1] ss:$9 sm:$0xff] %v2642_v2  ;;  %v1239_v2 = vunpack.c.l.b16 %v1214_v56  ;;  %v1165_v56 = vrot.slane %v1143_v40, 1  ;;  %v1240_v30 = vunpack.c.l.b16 %v1217_v10 }
 0x2d1   : > { %v1262_v9 = vrot.slane %v1239_v2, 6  ;;  %v1166_v10 = vsel %vm724_vm0, %v1144_v7, %v1165_v56  ;;  %v1264_v19 = vrot.slane %v1240_v30, 5  ;;  %v1141_v30 = vunpack.c.l.b16 %v2319_v49 }
 0x2d2   : > { %v1168_v20 = vsel %vm727_vm1, %v1167_v38, %v1166_v10  ;;  %v1150_v49 = vunpack.c.l.b16 %v2346_v3 }
 0x2d3   : > { %v1263_v21 = vsel %vm730_vm2, %v1262_v9, %v1261_v57  ;;  %v1161_v38 = vrot.slane %v1141_v30, 3 }
 0x2d4   : > { %v1265_v28 = vsel %vm733_vm3, %v1264_v19, %v1263_v21  ;;  %v1177_v36 = vrot.slane %v1150_v49, 2 }
 0x2d6   : > { %v1220_v58 = vld [vmem:[#allocation1] sm:$0xf] }
 0x2d7   : > { %1222 = vst [vmem:[#allocation1] ss:$9 sm:$0xff] %v2144_v33  ;;  %v1151_v33 = vrot.slane %v1135_v23, 1  ;;  %v1241_v24 = vunpack.c.l.b16 %v1220_v58  ;;  %v1155_v23 = vrot.slane %v1138_v31, 6  ;;  %v1169_v58 = vrot.slane %v1146_v60, 6 }
 0x2d9   : > { %v1152_v40 = vsel %vm724_vm0, %v1136_v62, %v1151_v33  ;;  %v1266_v22 = vrot.slane %v1241_v24, 4  ;;  %v1253_v62 = vsel %vm736_vm4, %v1252_v26, %v1251_v25  ;;  %v1170_v33 = vsel %vm730_vm2, %v1169_v58, %v1168_v20  ;;  %v2424_v58 = vpop.f32.mrf.mxu0 }
 0x2da   : > { %v1154_v5 = vsel %vm727_vm1, %v1153_v11, %v1152_v40  ;;  %v1172_v16 = vsel %vm733_vm3, %v1171_v53, %v1170_v33  ;;  %v1142_v11 = vunpack.c.l.b16 %v2322_v51  ;;  %v1175_v24 = vrot.slane %v1149_v17, 3 }
 0x2db   : > { %v1156_v7 = vsel %vm730_vm2, %v1155_v23, %v1154_v5  ;;  %v1267_v48 = vsel %vm736_vm4, %v1266_v22, %v1265_v28  ;;  %v1831_v25 = vmov -inf   ;;  %v1832_v5 = vmov 0  }
 0x2dc   : > { %v1158_v60 = vsel %vm733_vm3, %v1157_v34, %v1156_v7  ;;  %v1163_v19 = vrot.slane %v1142_v11, 2  ;;  %576 = vst.msk [vmem:[#allocation2] sm:$0xff] %vm575_vm8, %v1831_v25  ;;  %1765 = vset.pattern.permute.xlu0 %v1832_v5  ;;  %1764 = vset.pattern.permute.xlu1 %v1832_v5  ;;  %v1833_v53 = vmov 0.0  }
 0x2dd   : > { %v1160_v10 = vsel %vm736_vm4, %v1159_v63, %v1158_v60  ;;  %577 = vst.msk [vmem:[#allocation2 + $0x8] sm:$0xff] %vm575_vm8, %v1831_v25  ;;  %1766 = vset.pattern.permute.xlu2 %v1832_v5 }
 0x2de   : > { %v1223_v44 = vld [vmem:[#allocation1] sm:$0xf]  ;;  %v1162_v51 = vsel %vm739_vm5, %v1161_v38, %v1160_v10  ;;  %578 = vst.msk [vmem:[#allocation2 + $0x10] sm:$0xff] %vm575_vm8, %v1831_v25 }
 0x2df   : > { %1225 = vst [vmem:[#allocation1] ss:$9 sm:$0xff] %v2161_v37  ;;  %v1242_v2 = vunpack.c.l.b16 %v1223_v44  ;;  %v1254_v37 = vrot.slane %v1234_v13, 3  ;;  %v1174_v44 = vsel %vm736_vm4, %v1173_v42, %v1172_v16  ;;  %v1164_v26 = vsel %vm742_vm6, %v1163_v19, %v1162_v51 }
 0x2e0   : > { %v1176_v3 = vsel %vm739_vm5, %v1175_v24, %v1174_v44  ;;  %579 = vst.msk [vmem:[#allocation2 + $0x18] sm:$0xff] %vm575_vm8, %v1831_v25 }
 0x2e1   : > { %v1268_v56 = vrot.slane %v1242_v2, 3  ;;  %v1255_v31 = vsel %vm739_vm5, %v1254_v37, %v1253_v62  ;;  %v1178_v21 = vsel %vm742_vm6, %v1177_v36, %v1176_v3  ;;  %v892_v2 = vsel %vm584_vm7, %v2424_v58, -inf  ;;  %588 = vst.msk [vmem:[#allocation4 + $0x18] sm:$0xff] %vm584_vm7, %v1833_v53 }
 0x2e2   : > { %v1257_v55 = vsel %vm742_vm6, %v1256_v6, %v1255_v31  ;;  %v1179_v23 = vpack.c.b16 %v1178_v21, %v1164_v26  ;;  %893 = vmax.xlane.f32.xlu2 %v892_v2  ;;  %580 = vst.msk [vmem:[#allocation3] sm:$0xff] %vm575_vm8, %v1833_v53 }
 0x2e3   : > { %v1269_v1 = vsel %vm739_vm5, %v1268_v56, %v1267_v48  ;;  %v2432_v15 = vld [vmem:[#allocation2] sm:$0xff]  ;;  %581 = vst.msk [vmem:[#allocation3 + $0x8] sm:$0xff] %vm575_vm8, %v1833_v53 }
 0x2e4   : > { %582 = vst.msk [vmem:[#allocation3 + $0x10] sm:$0xff] %vm575_vm8, %v1833_v53  ;;  %v2461_v7 = vld [vmem:[#allocation2 + $0x8] sm:$0xff] }
 0x2e5   : > { %583 = vst.msk [vmem:[#allocation3 + $0x18] sm:$0xff] %vm575_vm8, %v1833_v53  ;;  %v2474_v6 = vld [vmem:[#allocation2 + $0x10] sm:$0xff] }
 0x2e6   : > { %v1226_v9 = vld [vmem:[#allocation1] sm:$0xf]  ;;  %585 = vst.msk [vmem:[#allocation4] sm:$0xff] %vm584_vm7, %v1833_v53 }
 0x2e7   : > { %v1243_v57 = vunpack.c.l.b16 %v1226_v9  ;;  %1346 = vst [vmem:[#allocation1] ss:$9 sm:$0xff] %v2186_v32  ;;  %v1080_v9 = vld [vmem:[#allocation2 + $0x18] sm:$0xff] }
 0x2e8   : > { %586 = vst.msk [vmem:[#allocation4 + $0x8] sm:$0xff] %vm584_vm7, %v1833_v53 }
 0x2e9   : > { %v1270_v40 = vrot.slane %v1243_v57, 2  ;;  %587 = vst.msk [vmem:[#allocation4 + $0x10] sm:$0xff] %vm584_vm7, %v1833_v53 }
 0x2eb   : > { %v1271_v13 = vsel %vm742_vm6, %v1270_v40, %v1269_v1 }
 0x2ec   : > { %v1272_v32 = vpack.c.b16 %v1271_v13, %v1257_v55 }
 0x2ee   : > { %v1277_v59 = vsel %vm584_vm7, %v1272_v32, 0  ;;  %v2452_v62 = vld [vmem:[#allocation1] sm:$0xf] }
 0x2ef   : > { %1286 = vmatpush.bf16.xpose.msra.mxu2 %v1277_v59  ;;  %1349 = vst [vmem:[#allocation1] ss:$9 sm:$0xff] %v2203_v0 }
 0x2f6   : > { %1714 = vmatmul.msk.bf16.vlgmr.msra.gmra.mxu2 %vm584_vm7, %v1179_v23  ;;  %v2466_v30 = vld [vmem:[#allocation1] sm:$0xf] }
 0x2f7   : > { %1352 = vst [vmem:[#allocation1] ss:$9 sm:$0xff] %v2214_v43  ;;  %v1395_v44 = vunpack.c.l.b16 %v2466_v30 }
 0x2fe   : > { %v1353_v17 = vld [vmem:[#allocation1] sm:$0xf] }
 0x2ff   : > { %1355 = vst [vmem:[#allocation1] ss:$9 sm:$0xff] %v2221_v45  ;;  %v1396_v10 = vunpack.c.l.b16 %v1353_v17 }
 0x306   : > { %v1356_v63 = vld [vmem:[#allocation1] sm:$0xf] }
 0x307   : > { %1358 = vst [vmem:[#allocation1] ss:$9 sm:$0xff] %v2227_v35 }
 0x30e   : > { %v1359_v45 = vld [vmem:[#allocation1] sm:$0xf] }
 0x30f   : > { %1361 = vst [vmem:[#allocation1] ss:$9 sm:$0xff] %v2233_v29 }
 0x316   : > { %v1362_v35 = vld [vmem:[#allocation1] sm:$0xf] }
 0x317   : > { %1364 = vst [vmem:[#allocation1] ss:$9 sm:$0xff] %v2239_v12  ;;  %v1399_v51 = vunpack.c.l.b16 %v1362_v35 }
 0x31e   : > { %v1365_v49 = vld [vmem:[#allocation1] sm:$0xf] }
 0x31f   : > { %1367 = vst [vmem:[#allocation1] ss:$9 sm:$0xff] %v2245_v54 }
 0x326   : > { %v1368_v1 = vld [vmem:[#allocation1] sm:$0xf] }
 0x327   : > { %1370 = vst [vmem:[#allocation1] ss:$9 sm:$0xff] %v2251_v50  ;;  %v1394_v50 = vunpack.c.l.b16 %v2452_v62  ;;  %v1401_v25 = vunpack.c.l.b16 %v1368_v1 }
 0x329   : > { %v1410_v32 = vrot.slane %v1394_v50, 1  ;;  %v1422_v17 = vrot.slane %v1401_v25, 2  ;;  %v2655_v25 = vld [vmem:[#allocation29_spill] sm:$0xff] }
 0x32b   : > { %v1411_v23 = vsel %vm724_vm0, %v1395_v44, %v1410_v32  ;;  %v2647_v44 = vld [vmem:[#allocation21_spill] sm:$0xff]  ;;  %v2650_v32 = vld [vmem:[#allocation26_spill] sm:$0xff] }
 0x32e   : > { %v1371_v29 = vld [vmem:[#allocation1] sm:$0xf] }
 0x32f   : > { %1373 = vst [vmem:[#allocation1] ss:$9 sm:$0xff] %v2257_v27  ;;  %v1402_v27 = vunpack.c.l.b16 %v1371_v29  ;;  %v1006_v29 = vunpack.c.l.b16 %v2208_v4 }
 0x331   : > { %v1424_v59 = vrot.slane %v1402_v27, 1 }
 0x336   : > { %v1374_v38 = vld [vmem:[#allocation1] sm:$0xf] }
 0x337   : > { %1376 = vst [vmem:[#allocation1] ss:$9 sm:$0xff] %v2263_v46  ;;  %v1403_v13 = vunpack.c.l.b16 %v1374_v38 }
 0x339   : > { %v1425_v62 = vsel %vm724_vm0, %v1403_v13, %v1424_v59  ;;  %v2648_v13 = vld [vmem:[#allocation22_spill] sm:$0xff]  ;;  %v2652_v59 = vld [vmem:[#allocation23_spill] sm:$0xff] }
 0x33c   : > { %v891_v20 = vpop.xlane.xlu2 %890 }
 0x33d   : > { %v2435_v22 = vmax.f32 %v2432_v15, %v891_v20 }
 0x33e   : > { %v1377_v24 = vld [vmem:[#allocation1] sm:$0xf] }
 0x33f   : > { %v897_v52 = vsub.f32 %v2432_v15, %v2435_v22  ;;  %1072 = vst.msk [vmem:[#allocation2] sm:$0xff] %vm575_vm8, %v2435_v22  ;;  %v1404_v46 = vunpack.c.l.b16 %v1377_v24  ;;  %v2643_v24 = vld [vmem:[#allocation17_spill] sm:$0xff]  ;;  %v1083_v15 = vld [vmem:[#allocation3 + $0x18] sm:$0xff] }
 0x340   : > { %1379 = vst [vmem:[#allocation1] ss:$9 sm:$0xff] %v2269_v41  ;;  %v1397_v41 = vunpack.c.l.b16 %v1356_v63 }
 0x347   : > { %v1380_v12 = vld [vmem:[#allocation1] sm:$0xf] }
 0x348   : > { %1382 = vst [vmem:[#allocation1] ss:$9 sm:$0xff] %v2275_v14  ;;  %v1405_v19 = vunpack.c.l.b16 %v1380_v12  ;;  %v1398_v14 = vunpack.c.l.b16 %v1359_v45  ;;  %v1007_v12 = vunpack.c.l.b16 %v2643_v24 }
 0x34a   : > { %v1416_v2 = vrot.slane %v1398_v14, 5 }
 0x34f   : > { %v1383_v55 = vld [vmem:[#allocation1] sm:$0xf] }
 0x350   : > { %1385 = vst [vmem:[#allocation1] ss:$9 sm:$0xff] %v2281_v47  ;;  %v1406_v36 = vunpack.c.l.b16 %v1383_v55  ;;  %v1412_v47 = vrot.slane %v1396_v10, 7  ;;  %v2644_v55 = vld [vmem:[#allocation18_spill] sm:$0xff]  ;;  %v2646_v10 = vld [vmem:[#allocation20_spill] sm:$0xff] }
 0x352   : > { %v1413_v20 = vsel %vm727_vm1, %v1412_v47, %v1411_v23  ;;  %v1430_v63 = vrot.slane %v1406_v36, 5  ;;  %v2649_v36 = vld [vmem:[#allocation25_spill] sm:$0xff]  ;;  %v1016_v47 = vunpack.c.l.b16 %v2650_v32  ;;  %v2654_v23 = vld [vmem:[#allocation28_spill] sm:$0xff] }
 0x353   : > { %v1015_v4 = vunpack.c.l.b16 %v2649_v36 }
 0x355   : > { %v894_v33 = vpop.xlane.xlu2 %893 }
 0x356   : > { %v2464_v56 = vmax.f32 %v2461_v7, %v894_v33  ;;  %v1426_v33 = vrot.slane %v1404_v46, 7  ;;  %v1010_v46 = vunpack.c.l.b16 %v2646_v10 }
 0x357   : > { %v1386_v40 = vld [vmem:[#allocation1] sm:$0xf] }
 0x358   : > { %v898_v0 = vsub.f32 %v2461_v7, %v2464_v56  ;;  %1073 = vst.msk [vmem:[#allocation2 + $0x8] sm:$0xff] %vm575_vm8, %v2464_v56  ;;  %v1407_v3 = vunpack.c.l.b16 %v1386_v40  ;;  %v1008_v40 = vunpack.c.l.b16 %v2644_v55  ;;  %v640_v7 = vld [vmem:[#allocation3 + $0x8] sm:$0xff] }
 0x359   : > { %1388 = vst [vmem:[#allocation1] ss:$9 sm:$0xff] %v2287_v8  ;;  %v1414_v8 = vrot.slane %v1397_v41, 6  ;;  %v1011_v41 = vunpack.c.l.b16 %v2647_v44 }
 0x35a   : > { %v1432_v45 = vrot.slane %v1407_v3, 4 }
 0x360   : > { %v1389_v54 = vld [vmem:[#allocation1] sm:$0xf] }
 0x361   : > { %1391 = vst [vmem:[#allocation1] ss:$9 sm:$0xff] %v2293_v18  ;;  %v1400_v18 = vunpack.c.l.b16 %v1365_v49  ;;  %v1408_v21 = vunpack.c.l.b16 %v1389_v54  ;;  %v2645_v54 = vld [vmem:[#allocation19_spill] sm:$0xff] }
 0x362   : > { %v1009_v50 = vunpack.c.l.b16 %v2645_v54 }
 0x363   : > { %v1420_v53 = vrot.slane %v1400_v18, 3  ;;  %v2653_v18 = vld [vmem:[#allocation24_spill] sm:$0xff] }
 0x368   : > { %v1392_v26 = vld [vmem:[#allocation1] sm:$0xf] }
 0x369   : > { %v1409_v5 = vunpack.c.l.b16 %v1392_v26  ;;  %v1013_v26 = vunpack.c.l.b16 %v2652_v59 }
 0x36b   : > { %v1436_v35 = vrot.slane %v1409_v5, 2  ;;  %v1019_v5 = vunpack.c.l.b16 %v2655_v25 }
 0x379   : > { %v2441_v61 = vpop.f32.mrf.mxu2 }
 0x37a   : > { %v1293_v37 = vsel %vm584_vm7, %v2441_v61, -inf }
 0x37b   : > { %1294 = vmax.xlane.f32.xlu0 %v1293_v37  ;;  %v1418_v37 = vrot.slane %v1399_v51, 4  ;;  %v2651_v51 = vld [vmem:[#allocation27_spill] sm:$0xff] }
 0x37c   : > { %v1017_v3 = vunpack.c.l.b16 %v2651_v51 }
 0x381   : > { %v2445_v28 = vpop.f32.mrf.mxu2 }
 0x382   : > { %v1296_v34 = vsel %vm584_vm7, %v2445_v28, -inf }
 0x383   : > { %1297 = vmax.xlane.f32.xlu0 %v1296_v34  ;;  %v1415_v34 = vsel %vm730_vm2, %v1414_v8, %v1413_v20  ;;  %v1022_v20 = vrot.slane %v1007_v12, 7 }
 0x384   : > { %v1417_v30 = vsel %vm733_vm3, %v1416_v2, %v1415_v34  ;;  %v1018_v2 = vunpack.c.l.b16 %v2654_v23  ;;  %v1026_v34 = vrot.slane %v1009_v50, 5 }
 0x397   : > { %905 = vperm.xlu0 %1765, %v2435_v22   ;;  %v639_v22 = vld [vmem:[#allocation3] sm:$0xff] }
 0x3ee   : > { %v1295_v48 = vpop.xlane.xlu0 %1294 }
 0x3ef   : > { %v2477_v42 = vmax.f32 %v2474_v6, %v1295_v48  ;;  %v1428_v48 = vrot.slane %v1405_v19, 6  ;;  %v1012_v19 = vunpack.c.l.b16 %v2648_v13 }
 0x3f1   : > { %v1301_v43 = vsub.f32 %v2474_v6, %v2477_v42  ;;  %1459 = vst.msk [vmem:[#allocation2 + $0x10] sm:$0xff] %vm575_vm8, %v2477_v42  ;;  %1309 = vperm.xlu1 %1764, %v2477_v42  }
 0x3f6   : > { %v1298_v31 = vpop.xlane.xlu0 %1297 }
 0x3f7   : > { %v1300_v60 = vmax.f32 %v1080_v9, %v1298_v31  ;;  %v1427_v31 = vsel %vm727_vm1, %v1426_v33, %v1425_v62  ;;  %v2657_v33 = vld [vmem:[#allocation31_spill] sm:$0xff] }
 0x3f9   : > { %v1302_v16 = vsub.f32 %v1080_v9, %v1300_v60  ;;  %1460 = vst.msk [vmem:[#allocation2 + $0x18] sm:$0xff] %vm575_vm8, %v1300_v60  ;;  %1314 = vperm.xlu1 %1764, %v1300_v60   ;;  %v1419_v9 = vsel %vm736_vm4, %v1418_v37, %v1417_v30  ;;  %v1434_v60 = vrot.slane %v1408_v21, 3  ;;  %v1014_v21 = vunpack.c.l.b16 %v2653_v18 }
 0x3fa   : > { %v1024_v37 = vrot.slane %v1008_v40, 6  ;;  %v1021_v30 = vunpack.c.l.b16 %v2657_v33  ;;  %v1082_v33 = vld [vmem:[#allocation3 + $0x10] sm:$0xff] }
 0x3fb   : > { %v1305_v57 = vmul.f32 1.442695, %v1302_v16  ;;  %v1421_v16 = vsel %vm739_vm5, %v1420_v53, %v1419_v9  ;;  %v2656_v53 = vld [vmem:[#allocation30_spill] sm:$0xff]  ;;  %v1036_v9 = vrot.slane %v1015_v4, 7 }
 0x3fc   : > { %v1423_v49 = vsel %vm742_vm6, %v1422_v17, %v1421_v16  ;;  %v1020_v62 = vunpack.c.l.b16 %v2656_v53  ;;  %v1028_v17 = vrot.slane %v1010_v46, 4  ;;  %v1032_v16 = vrot.slane %v1012_v19, 2 }
 0x3fd   : > { %1767 = vpow2.f32 %v1305_v57  ;;  %v1429_v57 = vsel %vm730_vm2, %v1428_v48, %v1427_v31  ;;  %v1030_v48 = vrot.slane %v1011_v41, 3  ;;  %v1038_v31 = vrot.slane %v1016_v47, 6 }
 0x3fe   : > { %v1431_v1 = vsel %vm733_vm3, %v1430_v63, %v1429_v57  ;;  %v1023_v63 = vsel %vm724_vm0, %v1022_v20, %v1006_v29  ;;  %v1042_v57 = vrot.slane %v1018_v2, 4  ;;  %v1046_v55 = vrot.slane %v1020_v62, 2 }
 0x3ff   : > { %v1433_v38 = vsel %vm736_vm4, %v1432_v45, %v1431_v1  ;;  %v1040_v45 = vrot.slane %v1017_v3, 5  ;;  %v1037_v1 = vsel %vm724_vm0, %v1036_v9, %v1014_v21  ;;  %v1048_v54 = vrot.slane %v1021_v30, 1 }
 0x400   : > { %v1435_v27 = vsel %vm739_vm5, %v1434_v60, %v1433_v38  ;;  %v1025_v60 = vsel %vm727_vm1, %v1024_v37, %v1023_v63  ;;  %v1044_v38 = vrot.slane %v1019_v5, 3  ;;  %v1039_v12 = vsel %vm727_vm1, %v1038_v31, %v1037_v1 }
 0x401   : > { %910 = vperm.xlu1 %1764, %v2464_v56   ;;  %v1437_v14 = vsel %vm742_vm6, %v1436_v35, %v1435_v27  ;;  %v1027_v35 = vsel %vm730_vm2, %v1026_v34, %v1025_v60  ;;  %v1041_v40 = vsel %vm730_vm2, %v1040_v45, %v1039_v12  ;;  %v1303_v34 = vmul.f32 1.442695, %v1301_v43 }
 0x402   : > { %v1438_v8 = vpack.c.b16 %v1437_v14, %v1423_v49  ;;  %v1034_v49 = vrot.slane %v1013_v26, 1  ;;  %v1029_v24 = vsel %vm733_vm3, %v1028_v17, %v1027_v35  ;;  %v1043_v27 = vsel %vm733_vm3, %v1042_v57, %v1041_v40  ;;  %v1086_v40 = vld [vmem:[#allocation4 + $0x18] sm:$0xff] }
 0x403   : > { %v2489_v11 = vpop.eup %1767  ;;  %v1031_v29 = vsel %vm736_vm4, %v1030_v48, %v1029_v24  ;;  %v1045_v46 = vsel %vm736_vm4, %v1044_v38, %v1043_v27  ;;  %v901_v63 = vmul.f32 1.442695, %v898_v0 }
 0x404   : > { %1340 = vperm.xlu0 %1765, %v2489_v11   ;;  %1450 = vmatpush.bf16.msra.mxu3 %v1438_v8  ;;  %v1033_v50 = vsel %vm739_vm5, %v1032_v16, %v1031_v29  ;;  %v1047_v44 = vsel %vm739_vm5, %v1046_v55, %v1045_v46 }
 0x405   : > { %v1035_v10 = vsel %vm742_vm6, %v1034_v49, %v1033_v50  ;;  %v1049_v19 = vsel %vm742_vm6, %v1048_v54, %v1047_v44  ;;  %v641_v50 = vld [vmem:[#allocation4] sm:$0xff] }
 0x406   : > { %v1050_v36 = vpack.c.b16 %v1049_v19, %v1035_v10 }
 0x408   : > { %1062 = vmatpush.bf16.msra.mxu1 %v1050_v36 }
 0x409   : > { %v906_v41 = vpop.permute.xlu0 %905 }
 0x40a   : > { %v913_v4 = vsub.f32 %v2370_v39, %v906_v41 }
 0x40c   : > { %v915_v47 = vmul.f32 1.442695, %v913_v4 }
 0x463   : > { %v1310_v13 = vpop.permute.xlu1 %1309 }
 0x464   : > { %v1317_v14 = vsub.f32 %v2441_v61, %v1310_v13 }
 0x466   : > { %v1319_v32 = vmul.f32 1.442695, %v1317_v14 }
 0x468   : > { %1769 = vpow2.f32 %v1319_v32 }
 0x469   : > { %1771 = vpow2.f32 %v915_v47 }
 0x46b   : > { %v1315_v51 = vpop.permute.xlu1 %1314 }
 0x46c   : > { %v1318_v3 = vsub.f32 %v2445_v28, %v1315_v51 }
 0x46e   : > { %v1770_v8 = vpop.eup %1769  ;;  %v1321_v59 = vmul.f32 1.442695, %v1318_v3 }
 0x46f   : > { %v1325_v26 = vsel %vm584_vm7, %v1770_v8, 0.0  ;;  %v1772_v21 = vpop.eup %1771 }
 0x470   : > { %1773 = vpow2.f32 %v1321_v59  ;;  %1326 = vadd.xlane.f32.xlu2 %v1325_v26  ;;  %v921_v2 = vsel %vm584_vm7, %v1772_v21, 0.0 }
 0x473   : > { %v911_v18 = vpop.permute.xlu1 %910 }
 0x474   : > { %v914_v61 = vsub.f32 %v2424_v58, %v911_v18  ;;  %v899_v58 = vmul.f32 1.442695, %v897_v52  ;;  %v1324_v52 = vmul.f32 %v2489_v11, %v1083_v15  ;;  %v1085_v11 = vld [vmem:[#allocation4 + $0x10] sm:$0xff] }
 0x476   : > { %v1774_v23 = vpop.eup %1773  ;;  %v917_v39 = vmul.f32 1.442695, %v914_v61  ;;  %v1341_v54 = vpop.permute.xlu0 %1340  ;;  %v642_v61 = vld [vmem:[#allocation4 + $0x8] sm:$0xff] }
 0x477   : > { %v1328_v25 = vsel %vm584_vm7, %v1774_v23, 0.0  ;;  %v1345_v5 = vpack.c.bf16 %v1774_v23, %v1770_v8  ;;  %v1344_v10 = vmul.f32 %v1341_v54, %v1086_v40 }
 0x478   : > { %1775 = vpow2.f32 %v917_v39  ;;  %922 = vadd.xlane.f32.xlu2 %v921_v2  ;;  %1329 = vadd.xlane.f32.xlu1 %v1328_v25 }
 0x479   : > { %1715 = vmatmul.msk.bf16.vlgmr.msra.gmra.mxu3 %vm584_vm7, %v1345_v5  ;;  %1777 = vpow2.f32 %v899_v58 }
 0x47a   : > { %1779 = vpow2.f32 %v1303_v34 }
 0x47b   : > { %1781 = vpow2.f32 %v901_v63 }
 0x47e   : > { %v1776_v28 = vpop.eup %1775 }
 0x47f   : > { %v924_v20 = vsel %vm584_vm7, %v1776_v28, 0.0  ;;  %v941_v37 = vpack.c.bf16 %v1776_v28, %v1772_v21  ;;  %v1778_v53 = vpop.eup %1777 }
 0x480   : > { %925 = vadd.xlane.f32.xlu2 %v924_v20  ;;  %v1780_v62 = vpop.eup %1779  ;;  %v919_v6 = vmul.f32 %v1778_v53, %v639_v22 }
 0x481   : > { %1713 = vmatmul.msk.bf16.vlgmr.msra.gmra.mxu1 %vm584_vm7, %v941_v37  ;;  %v1323_v30 = vmul.f32 %v1780_v62, %v1082_v33  ;;  %v1782_v60 = vpop.eup %1781 }
 0x482   : > { %v920_v56 = vmul.f32 %v1782_v60, %v640_v7 }
 0x491   : > { %931 = vperm.xlu1 %1764, %v1778_v53  }
 0x498   : > { %1335 = vperm.xlu2 %1766, %v1780_v62  }
 0x4e3   : > { %v1327_v17 = vpop.xlane.xlu2 %1326 }
 0x4e4   : > { %v1331_v48 = vadd.f32 %v1327_v17, %v1323_v30 }
 0x4e6   : > { %1461 = vst.msk [vmem:[#allocation3 + $0x10] sm:$0xff] %vm575_vm8, %v1331_v48 }
 0x4eb   : > { %v1330_v42 = vpop.xlane.xlu1 %1329  ;;  %v923_v43 = vpop.xlane.xlu2 %922 }
 0x4ec   : > { %v1332_v9 = vadd.f32 %v1330_v42, %v1324_v52  ;;  %v927_v31 = vadd.f32 %v923_v43, %v919_v6 }
 0x4ed   : > { %v1490_v45 = vld [vmem:[#allocation3 + $0x10] sm:$0xff] }
 0x4ee   : > { %1462 = vst.msk [vmem:[#allocation3 + $0x18] sm:$0xff] %vm575_vm8, %v1332_v9  ;;  %1783 = vrcp.f32 %v1490_v45 }
 0x4ef   : > { %1074 = vst.msk [vmem:[#allocation3] sm:$0xff] %vm575_vm8, %v927_v31 }
 0x4f3   : > { %v926_v0 = vpop.xlane.xlu2 %925 }
 0x4f4   : > { %v1784_v16 = vpop.eup %1783  ;;  %v928_v57 = vadd.f32 %v926_v0, %v920_v56 }
 0x4f5   : > { %1496 = vperm.xlu0 %1765, %v1784_v16   ;;  %v1491_v35 = vld [vmem:[#allocation3 + $0x18] sm:$0xff] }
 0x4f6   : > { %1075 = vst.msk [vmem:[#allocation3 + $0x8] sm:$0xff] %vm575_vm8, %v928_v57  ;;  %1785 = vrcp.f32 %v1491_v35  ;;  %v1470_v49 = vld [vmem:[#allocation3] sm:$0xff] }
 0x4f7   : > { %1787 = vrcp.f32 %v1470_v49 }
 0x4fb   : > { %v1336_v1 = vpop.permute.xlu2 %1335 }
 0x4fc   : > { %v1786_v38 = vpop.eup %1785  ;;  %v1343_v24 = vmul.f32 %v1336_v1, %v1085_v11  ;;  %v1452_v12 = vpop.f32.mrf.mxu3 }
 0x4fd   : > { %1501 = vperm.xlu2 %1766, %v1786_v38   ;;  %936 = vperm.xlu0 %1765, %v1782_v60   ;;  %v1471_v55 = vld [vmem:[#allocation3 + $0x8] sm:$0xff]  ;;  %v1788_v27 = vpop.eup %1787 }
 0x4fe   : > { %v1457_v29 = vadd.f32 %v1452_v12, %v1343_v24  ;;  %1789 = vrcp.f32 %v1471_v55  ;;  %v1064_v19 = vpop.f32.mrf.mxu1 }
 0x500   : > { %1463 = vst.msk [vmem:[#allocation4 + $0x10] sm:$0xff] %vm584_vm7, %v1457_v29 }
 0x503   : > { %v932_v46 = vpop.permute.xlu1 %931 }
 0x504   : > { %v1790_v44 = vpop.eup %1789  ;;  %v939_v41 = vmul.f32 %v932_v46, %v641_v50  ;;  %v1454_v13 = vpop.f32.mrf.mxu3 }
 0x505   : > { %v1458_v14 = vadd.f32 %v1454_v13, %v1344_v10  ;;  %1476 = vperm.xlu2 %1766, %v1788_v27   ;;  %1481 = vperm.xlu0 %1765, %v1790_v44  }
 0x506   : > { %v1069_v36 = vadd.f32 %v1064_v19, %v939_v41  ;;  %v1066_v25 = vpop.f32.mrf.mxu1 }
 0x507   : > { %1464 = vst.msk [vmem:[#allocation4 + $0x18] sm:$0xff] %vm584_vm7, %v1458_v14  ;;  %v1488_v3 = vld [vmem:[#allocation4 + $0x10] sm:$0xff] }
 0x508   : > { %1076 = vst.msk [vmem:[#allocation4] sm:$0xff] %vm584_vm7, %v1069_v36 }
 0x50e   : > { %v1489_v32 = vld [vmem:[#allocation4 + $0x18] sm:$0xff] }
 0x50f   : > { %v1468_v34 = vld [vmem:[#allocation4] sm:$0xff] }
 0x557   : > { %v1502_v4 = vpop.permute.xlu2 %1501 }
 0x558   : > { %v1505_v47 = vmul.f32 %v1502_v4, %v1489_v32 }
 0x55a   : > { %v1507_v8 = vpack.c.bf16 %v1505_v47, %v1505_v47 }
 0x55c   : > { %v1516_v18 = vunpack.c.l.b16 %v1507_v8 }
 0x55f   : > { %v1477_v20 = vpop.permute.xlu2 %1476 }
 0x560   : > { %v1484_v53 = vmul.f32 %v1477_v20, %v1468_v34 }
 0x562   : > { %v1486_v33 = vpack.c.bf16 %v1484_v53, %v1484_v53 }
 0x564   : > { %v1510_v17 = vunpack.c.l.b16 %v1486_v33 }
 0x567   : > { %v1497_v51 = vpop.permute.xlu0 %1496 }
 0x568   : > { %v1504_v59 = vmul.f32 %v1497_v51, %v1488_v3 }
 0x56a   : > { %v1506_v26 = vpack.c.bf16 %v1504_v59, %v1504_v59 }
 0x56c   : > { %v1515_v21 = vunpack.c.l.b16 %v1506_v26 }
 0x56e   : > { %v1517_v23 = vpack.c.b16 %v1516_v18, %v1515_v21 }
 0x56f   : > { %v937_v39 = vpop.permute.xlu0 %936 }
 0x570   : > { %v940_v2 = vmul.f32 %v937_v39, %v642_v61  ;;  %1518 = vrot.lane.b32.xlu2 %v1517_v23, %s1834_s27 }
 0x572   : > { %v1070_v5 = vadd.f32 %v1066_v25, %v940_v2 }
 0x574   : > { %1077 = vst.msk [vmem:[#allocation4 + $0x8] sm:$0xff] %vm584_vm7, %v1070_v5 }
 0x577   : > { %v1482_v37 = vpop.permute.xlu0 %1481 }
 0x57b   : > { %v1469_v28 = vld [vmem:[#allocation4 + $0x8] sm:$0xff] }
 0x57c   : > { %v1485_v58 = vmul.f32 %v1482_v37, %v1469_v28 }
 0x57e   : > { %v1487_v62 = vpack.c.bf16 %v1485_v58, %v1485_v58 }
 0x580   : > { %v1511_v30 = vunpack.c.l.b16 %v1487_v62 }
 0x582   : > { %v1512_v48 = vpack.c.b16 %v1511_v30, %v1510_v17 }
 0x5ca   : > { %v1519_v63 = vpop.permute.xlu2 %1518 }
 0x5cb   : > { %v1522_v15 = vsel %vm584_vm7, %v1512_v48, %v1519_v63 }
 0x5cc   : > { %v1524_v22 = vunpack.c.l.b16 %v1522_v15  ;;  %v1525_v52 = vunpack.c.h.b16 %v1522_v15 }
 0x5ce   : > { %v1526_v6 = vpack.c.b16 %v1524_v22, %v1524_v22  ;;  %v1527_v42 = vpack.c.b16 %v1525_v52, %v1525_v52 }
 0x5d0   : > { %1531 = vst.msk [vmem:[%s568_s4] sm:$0xf] %vm1530_vm9, %v1526_v6 }
 0x5d1   : > { %1532 = vst.msk [vmem:[%s568_s4 + $0x4] sm:$0xf] %vm1530_vm9, %v1527_v42 }
 0x5d2 PF: > { %s13_s16 = sadd.s32 1, %s1829_s16   ;;  %s2658_s12 = smov %s1817_s13 }
 0x5d3   : > { %p10_p10 = scmp.ge.s32.totalorder %s13_s16, 4   ;;  %s2659_s13 = smov %s1894_s21 }
 0x5d4   : > { %s2660_s14 = smov %s1825_s15  ;;  %s2661_s15 = smov %s2663_s17 }
 0x5d5   :  { %12 = sbr.rel (!%p10_p10) target bundleno = 3 (0x3), region = 217 }

// kernel: ft_sam_forward.21
= control target key start
LH: loop header
LB: loop body
LE: loop exit
PB: predicated region body
PF: predicated region fallthrough
CT: control target
= control target key end

     0   :  { %s1078_s15 = smov 0   ;;  %s1268_s0 = inlined_call_operand.vmem [shape: bf16[2,64,16], index: 0, kind: input, shape index: {}]   ;;  %s1269_s1 = inlined_call_operand.vmem [shape: bf16[9,16,16], index: 1, kind: input, shape index: {}]   ;;  %s1270_s2 = inlined_call_operand.vmem [shape: f32[1,16], index: 2, kind: input, shape index: {}]   ;;  %s1271_s3 = inlined_call_operand.vmem [shape: f32[1,16], index: 3, kind: input, shape index: {}]   ;;  %s1272_s4 = inlined_call_operand.vmem [shape: f32[2,32,16], index: 4, kind: output, shape index: {}]  }
   0x1 LB: > { %s904_s16 = sadd.s32 4294967295, %s1050_s15   ;;  %p908_p0 = scmp.ge.s32.totalorder %s1050_s15, 1  ;;  %s1050_s15 = sphi %s1078_s15, %s14_s15  }
   0x2   : > { %p162_p1 = scmp.lt.s32.totalorder %s1050_s15, 3 }
   0x4   : > { %p163_p2 = pnand %p908_p0, %p162_p1 }
   0x5   : > { %p188_p3 = scmp.lt.s32.totalorder (!%p163_p2), %s904_s16, 1 }
   0x6   : > { %166 = sbr.rel (%p163_p2) target bundleno = 541 (0x21d), region = 36 }
   0xb   : > { %v987_v0 = vld [vmem:[%s1269_s1] sm:$0xff]  ;;  %v988_v1 = vld [vmem:[%s1269_s1 + $0x8] sm:$0xff]  ;;  %v989_v2 = vld [vmem:[%s1269_s1 + $0x10] sm:$0xff]  ;;  %s1274_s16 = smov (!%p188_p3, %s904_s16), 1  ;;  %vm222_vm0 = vsmask.f32 4352 }
   0xc   : > { %1022 = vmatpush.bf16.msra.mxu1 %v987_v0  ;;  %269 = vmatpush.bf16.msra.mxu0 %v987_v0  ;;  %v990_v3 = vld [vmem:[%s1269_s1 + $0x18] sm:$0xff]  ;;  %v993_v4 = vld [vmem:[%s1269_s1 + $0x30] sm:$0xff]  ;;  %v991_v5 = vld [vmem:[%s1269_s1 + $0x20] sm:$0xff]  ;;  %s985_s29 = sshll.u32 %s1274_s16, 5  ;;  %vm255_vm1 = vcmask 130048  }
   0xd   : > { %377 = vmatpush.bf16.msra.mxu2 %v989_v2  ;;  %436 = vmatpush.bf16.msra.mxu3 %v990_v3  ;;  %s1112_s6 = scalar_lea.vmem %s1268_s0, %s985_s29  ;;  %vm339_vm2 = vsmask.f32 7424  ;;  %v992_v43 = vld [vmem:[%s1269_s1 + $0x28] sm:$0xff]  ;;  %v994_v49 = vld [vmem:[%s1269_s1 + $0x38] sm:$0xff]  ;;  %v995_v60 = vld [vmem:[%s1269_s1 + $0x40] sm:$0xff]  ;;  %s1253_s21 = scalar_lea.vmem %s1272_s4, %s985_s29 }
   0xe   : > { %v1115_v6 = vld [vmem:[%s1112_s6 + $0x8] sm:$0xff]   ;;  %v1118_v7 = vld [vmem:[%s1112_s6 + $0x10] sm:$0xff]   ;;  %v997_v8 = vld [vmem:[%s1112_s6] sm:$0xff]  }
   0xf   : > { %v1003_v9 = vunpack.c.h.b16 %v1115_v6  ;;  %v1006_v10 = vunpack.c.l.b16 %v1118_v7  ;;  %v232_v11 = vshrl.u32 %v1115_v6, 16  ;;  %v235_v12 = vshll.u32 %v1115_v6, 16  ;;  %v1021_v13 = vld [vmem:[%s1112_s6 + $0x4] sm:$0xff]   ;;  %v1014_v0 = vld [vmem:[%s1112_s6 + $0x18] sm:$0xff]  }
  0x10   : > { %309 = vmatpush.bf16.msrb.mxu1 %v988_v1  ;;  %482 = vmatpush.bf16.msrb.mxu0 %v991_v5  ;;  %v224_v14 = vshrl.u32 %v997_v8, 16  ;;  %v227_v15 = vshll.u32 %v997_v8, 16  ;;  %v1127_v16 = vunpack.c.h.b16 %v1118_v7  ;;  %v340_v23 = vshrl.u32 %v1021_v13, 16 }
  0x11   : > { %601 = vmatpush.bf16.msrb.mxu2 %v993_v4  ;;  %v221_v17 = vpack.c.b16 %v1006_v10, %v1006_v10  ;;  %v234_v18 = vrot.slane %v232_v11, 3  ;;  %v237_v19 = vrot.slane %v235_v12, 4  ;;  %v1133_v20 = vpack.c.b16 %v1006_v10, %v1003_v9  ;;  %645 = vmatpush.bf16.msrb.mxu3 %v994_v49 }
  0x12   : > { %v226_v21 = vrot.slane %v224_v14, 3  ;;  %v229_v22 = vrot.slane %v227_v15, 4  ;;  %v342_v24 = vshll.u32 %v1021_v13, 16  ;;  %v404_v32 = vrot.slane %v340_v23, 3 }
  0x13   : > { %v238_v25 = vor.u32 %v237_v19, %v234_v18  ;;  %v241_v26 = vshrl.u32 %v221_v17, 16  ;;  %v244_v27 = vshll.u32 %v221_v17, 16  ;;  %v346_v28 = vshll.u32 %v1133_v20, 16 }
  0x14   : > { %v230_v29 = vor.u32 %v229_v22, %v226_v21  ;;  %v344_v30 = vrot.slane %v342_v24, 1  ;;  %v350_v31 = vshrl.u32 %v1133_v20, 16  ;;  %v405_v36 = vrot.slane %v342_v24, 4 }
  0x15   : > { %v243_v33 = vrot.slane %v241_v26, 3  ;;  %v246_v34 = vrot.slane %v244_v27, 4  ;;  %v348_v35 = vrot.slane %v346_v28, 1  ;;  %v408_v40 = vrot.slane %v346_v28, 4 }
  0x16   : > { %v239_v37 = vsel %vm222_vm0, %v230_v29, %v238_v25  ;;  %v345_v38 = vor.u32 %v344_v30, %v340_v23  ;;  %v407_v39 = vrot.slane %v350_v31, 3  ;;  %v406_v42 = vor.u32 %v405_v36, %v404_v32 }
  0x17   : > { %v247_v41 = vor.u32 %v246_v34, %v243_v33  ;;  %917 = vmatmul.msk.bf16.vlgmr.msra.gmra.mxu0 %vm255_vm1, %v239_v37  ;;  %v338_v48 = vpack.c.b16 %v1127_v16, %v1127_v16  ;;  %v352_v54 = vor.u32 %v350_v31, %v348_v35  ;;  %v518_v59 = vshrl.u32 %v1118_v7, 16 }
  0x18   : > { %v349_v44 = vsel %vm339_vm2, %v345_v38, %v348_v35  ;;  %v409_v45 = vor.u32 %v408_v40, %v407_v39  ;;  %v514_v61 = vshll.u32 %v1118_v7, 16  ;;  %706 = vmatpush.bf16.msra.mxu0 %v995_v60  ;;  %v1010_v2 = vunpack.c.l.b16 %v1014_v0 }
  0x19   : > { %v248_v46 = vsel %vm222_vm0, %v238_v25, %v247_v41  ;;  %933 = vmatmul.msk.bf16.vlgmr.msra.gmra.mxu2 %vm255_vm1, %v349_v44  ;;  %v411_v50 = vshrl.u32 %v338_v48, 16  ;;  %v354_v51 = vshll.u32 %v338_v48, 16  ;;  %v572_v62 = vrot.slane %v518_v59, 3 }
  0x1a   : > { %918 = vmatmul.msk.bf16.vlgmr.msra.gmra.mxu1 %vm255_vm1, %v248_v46  ;;  %v410_v47 = vsel %vm222_vm0, %v406_v42, %v409_v45  ;;  %v573_v63 = vrot.slane %v514_v61, 4  ;;  %v511_v4 = vpack.c.b16 %v1010_v2, %v1010_v2  ;;  %v628_v8 = vpack.c.b16 %v1010_v2, %v1127_v16 }
  0x1b   : > { %941 = vmatmul.msk.bf16.vlgmr.msra.gmra.mxu3 %vm255_vm1, %v410_v47  ;;  %545 = vmatpush.bf16.msra.mxu1 %v992_v43  ;;  %v413_v52 = vrot.slane %v411_v50, 3  ;;  %v414_v53 = vrot.slane %v354_v51, 4  ;;  %v356_v55 = vrot.slane %v354_v51, 1  ;;  %v512_v15 = vrot.slane %v235_v12, 1 }
  0x1c   : > { %v574_v1 = vor.u32 %v573_v63, %v572_v62  ;;  %v576_v5 = vshrl.u32 %v511_v4, 16  ;;  %v522_v9 = vshll.u32 %v511_v4, 16  ;;  %v675_v10 = vshll.u32 %v628_v8, 16 }
  0x1d   : > { %v415_v56 = vor.u32 %v414_v53, %v413_v52  ;;  %v357_v57 = vsel %vm339_vm2, %v352_v54, %v356_v55  ;;  %v513_v18 = vor.u32 %v512_v15, %v232_v11  ;;  %v516_v19 = vrot.slane %v514_v61, 1 }
  0x1e   : > { %v575_v3 = vsel %vm222_vm0, %v238_v25, %v574_v1  ;;  %v579_v14 = vrot.slane %v522_v9, 4  ;;  %v1011_v22 = vunpack.c.h.b16 %v1014_v0  ;;  %v679_v12 = vshrl.u32 %v628_v8, 16 }
  0x1f   : > { %v416_v58 = vsel %vm222_vm0, %v409_v45, %v415_v56  ;;  %v520_v25 = vor.u32 %v518_v59, %v516_v19  ;;  %v524_v26 = vrot.slane %v522_v9, 1 }
  0x20   : > { %v674_v23 = vpack.c.b16 %v1011_v22, %v1011_v22 }
  0x21   : > { %v525_v28 = vsel %vm339_vm2, %v520_v25, %v524_v26 }
  0x27   : > { %949 = vmatmul.msk.bf16.vlgmr.msrb.gmra.mxu0 %vm255_vm1, %v1115_v6  ;;  %v683_v6 = vshll.u32 %v674_v23, 16 }
  0x29   : > { %934 = vmatmul.msk.bf16.gmra.mxu2 %vm255_vm1, %v357_v57  ;;  %v685_v24 = vrot.slane %v683_v6, 1 }
  0x2a   : > { %925 = vmatmul.msk.bf16.vlgmr.msrb.gmra.mxu1 %vm255_vm1, %v1021_v13  ;;  %v578_v13 = vrot.slane %v576_v5, 3 }
  0x2b   : > { %942 = vmatmul.msk.bf16.gmra.mxu3 %vm255_vm1, %v416_v58 }
  0x2c   : > { %v580_v17 = vor.u32 %v579_v14, %v578_v13 }
  0x2e   : > { %v581_v16 = vsel %vm222_vm0, %v574_v1, %v580_v17 }
  0x37   : > { %950 = vmatmul.msk.bf16.gmra.mxu0 %vm255_vm1, %v1118_v7  ;;  %v677_v7 = vrot.slane %v675_v10, 1 }
  0x39   : > { %965 = vmatmul.msk.bf16.vlgmr.msrb.gmra.mxu2 %vm255_vm1, %v575_v3  ;;  %v678_v21 = vsel %vm339_vm2, %v352_v54, %v677_v7  ;;  %v681_v11 = vor.u32 %v679_v12, %v677_v7 }
  0x3a   : > { %926 = vmatmul.msk.bf16.gmra.mxu1 %vm255_vm1, %v1133_v20 }
  0x3b   : > { %973 = vmatmul.msk.bf16.vlgmr.msrb.gmra.mxu3 %vm255_vm1, %v1133_v20  ;;  %v517_v20 = vsel %vm339_vm2, %v513_v18, %v516_v19  ;;  %v686_v27 = vsel %vm339_vm2, %v681_v11, %v685_v24 }
  0x47   : > { %981 = vmatmul.msk.bf16.vlgmr.msra.gmra.mxu0 %vm255_vm1, %v678_v21 }
  0x49   : > { %966 = vmatmul.msk.bf16.gmra.mxu2 %vm255_vm1, %v581_v16 }
  0x4a   : > { %957 = vmatmul.msk.bf16.vlgmr.msra.gmra.mxu1 %vm255_vm1, %v517_v20 }
  0x4b   : > { %974 = vmatmul.msk.bf16.gmra.mxu3 %vm255_vm1, %v628_v8 }
  0x57   : > { %982 = vmatmul.msk.bf16.gmra.mxu0 %vm255_vm1, %v686_v27 }
  0x5a   : > { %958 = vmatmul.msk.bf16.gmra.mxu1 %vm255_vm1, %v525_v28 }
  0x94   : > { %v271_v29 = vpop.f32.mrf.mxu0 }
  0x95   : > { %281 = vst.msk [vmem:[#allocation2] sm:$0xff] %vm255_vm1, %v271_v29 }
  0x97   : > { %v276_v30 = vpop.f32.mrf.mxu1 }
  0x98   : > { %283 = vst.msk [vmem:[#allocation2 + $0x10] sm:$0xff] %vm255_vm1, %v276_v30 }
  0x9c   : > { %v273_v31 = vpop.f32.mrf.mxu0  ;;  %v321_v33 = vld [vmem:[#allocation2] sm:$0xff]  ;;  %v379_v36 = vpop.f32.mrf.mxu2 }
  0x9d   : > { %282 = vst.msk [vmem:[#allocation2 + $0x8] sm:$0xff] %vm255_vm1, %v273_v31 }
  0x9e   : > { %v438_v42 = vpop.f32.mrf.mxu3 }
  0x9f   : > { %v278_v32 = vpop.f32.mrf.mxu1  ;;  %v323_v45 = vld [vmem:[#allocation2 + $0x10] sm:$0xff] }
  0xa0   : > { %284 = vst.msk [vmem:[#allocation2 + $0x18] sm:$0xff] %vm255_vm1, %v278_v32 }
  0xa4   : > { %v322_v37 = vld [vmem:[#allocation2 + $0x8] sm:$0xff]  ;;  %v381_v43 = vpop.f32.mrf.mxu2  ;;  %v484_v52 = vpop.f32.mrf.mxu0 }
  0xa6   : > { %v440_v51 = vpop.f32.mrf.mxu3 }
  0xa7   : > { %v311_v34 = vpop.f32.mrf.mxu1  ;;  %v324_v55 = vld [vmem:[#allocation2 + $0x18] sm:$0xff] }
  0xa8   : > { %v325_v35 = vadd.f32 %v321_v33, %v311_v34 }
  0xaa   : > { %329 = vst.msk [vmem:[#allocation2] sm:$0xff] %vm255_vm1, %v325_v35 }
  0xac   : > { %v384_v53 = vpop.f32.mrf.mxu2  ;;  %v486_v0 = vpop.f32.mrf.mxu0 }
  0xae   : > { %v443_v63 = vpop.f32.mrf.mxu3 }
  0xaf   : > { %v313_v38 = vpop.f32.mrf.mxu1 }
  0xb0   : > { %v326_v39 = vadd.f32 %v322_v37, %v313_v38 }
  0xb1   : > { %v389_v40 = vld [vmem:[#allocation2] sm:$0xff] }
  0xb2   : > { %v393_v41 = vadd.f32 %v389_v40, %v379_v36  ;;  %330 = vst.msk [vmem:[#allocation2 + $0x8] sm:$0xff] %vm255_vm1, %v326_v39 }
  0xb4   : > { %397 = vst.msk [vmem:[#allocation2] sm:$0xff] %vm255_vm1, %v393_v41  ;;  %v386_v1 = vpop.f32.mrf.mxu2  ;;  %v489_v7 = vpop.f32.mrf.mxu0 }
  0xb6   : > { %v445_v15 = vpop.f32.mrf.mxu3 }
  0xb7   : > { %v316_v44 = vpop.f32.mrf.mxu1 }
  0xb8   : > { %v327_v46 = vadd.f32 %v323_v45, %v316_v44 }
  0xb9   : > { %v390_v47 = vld [vmem:[#allocation2 + $0x8] sm:$0xff] }
  0xba   : > { %v394_v48 = vadd.f32 %v390_v47, %v381_v43  ;;  %331 = vst.msk [vmem:[#allocation2 + $0x10] sm:$0xff] %vm255_vm1, %v327_v46 }
  0xbb   : > { %v448_v49 = vld [vmem:[#allocation2] sm:$0xff] }
  0xbc   : > { %398 = vst.msk [vmem:[#allocation2 + $0x8] sm:$0xff] %vm255_vm1, %v394_v48  ;;  %v452_v50 = vadd.f32 %v448_v49, %v438_v42  ;;  %v603_v19 = vpop.f32.mrf.mxu2  ;;  %v491_v11 = vpop.f32.mrf.mxu0 }
  0xbe   : > { %456 = vst.msk [vmem:[#allocation2] sm:$0xff] %vm255_vm1, %v452_v50  ;;  %v647_v24 = vpop.f32.mrf.mxu3 }
  0xbf   : > { %v318_v54 = vpop.f32.mrf.mxu1 }
  0xc0   : > { %v328_v56 = vadd.f32 %v324_v55, %v318_v54 }
  0xc1   : > { %v391_v57 = vld [vmem:[#allocation2 + $0x10] sm:$0xff] }
  0xc2   : > { %v395_v58 = vadd.f32 %v391_v57, %v384_v53  ;;  %332 = vst.msk [vmem:[#allocation2 + $0x18] sm:$0xff] %vm255_vm1, %v328_v56 }
  0xc3   : > { %v449_v59 = vld [vmem:[#allocation2 + $0x8] sm:$0xff] }
  0xc4   : > { %399 = vst.msk [vmem:[#allocation2 + $0x10] sm:$0xff] %vm255_vm1, %v395_v58  ;;  %v453_v60 = vadd.f32 %v449_v59, %v440_v51  ;;  %v605_v27 = vpop.f32.mrf.mxu2  ;;  %v708_v36 = vpop.f32.mrf.mxu0 }
  0xc5   : > { %v494_v61 = vld [vmem:[#allocation2] sm:$0xff] }
  0xc6   : > { %457 = vst.msk [vmem:[#allocation2 + $0x8] sm:$0xff] %vm255_vm1, %v453_v60  ;;  %v498_v62 = vadd.f32 %v494_v61, %v484_v52  ;;  %v649_v35 = vpop.f32.mrf.mxu3 }
  0xc7   : > { %v547_v3 = vpop.f32.mrf.mxu1 }
  0xc8   : > { %502 = vst.msk [vmem:[#allocation2] sm:$0xff] %vm255_vm1, %v498_v62 }
  0xc9   : > { %v392_v2 = vld [vmem:[#allocation2 + $0x18] sm:$0xff] }
  0xca   : > { %v396_v4 = vadd.f32 %v392_v2, %v386_v1 }
  0xcb   : > { %v450_v5 = vld [vmem:[#allocation2 + $0x10] sm:$0xff] }
  0xcc   : > { %400 = vst.msk [vmem:[#allocation2 + $0x18] sm:$0xff] %vm255_vm1, %v396_v4  ;;  %v454_v8 = vadd.f32 %v450_v5, %v443_v63  ;;  %v608_v39 = vpop.f32.mrf.mxu2  ;;  %v710_v47 = vpop.f32.mrf.mxu0 }
  0xcd   : > { %v495_v9 = vld [vmem:[#allocation2 + $0x8] sm:$0xff] }
  0xce   : > { %458 = vst.msk [vmem:[#allocation2 + $0x10] sm:$0xff] %vm255_vm1, %v454_v8  ;;  %v499_v10 = vadd.f32 %v495_v9, %v486_v0  ;;  %v652_v50 = vpop.f32.mrf.mxu3 }
  0xcf   : > { %v557_v13 = vld [vmem:[#allocation2] sm:$0xff]  ;;  %v549_v18 = vpop.f32.mrf.mxu1 }
  0xd0   : > { %503 = vst.msk [vmem:[#allocation2 + $0x8] sm:$0xff] %vm255_vm1, %v499_v10  ;;  %v561_v14 = vadd.f32 %v557_v13, %v547_v3  ;;  %v1052_v13 = vmov 16.0  }
  0xd1   : > { %1034 = vrcp.f32 %v1052_v13 }
  0xd2   : > { %565 = vst.msk [vmem:[#allocation2] sm:$0xff] %vm255_vm1, %v561_v14 }
  0xd3   : > { %v451_v17 = vld [vmem:[#allocation2 + $0x18] sm:$0xff] }
  0xd4   : > { %v455_v21 = vadd.f32 %v451_v17, %v445_v15  ;;  %v610_v48 = vpop.f32.mrf.mxu2  ;;  %v713_v60 = vpop.f32.mrf.mxu0 }
  0xd5   : > { %v496_v22 = vld [vmem:[#allocation2 + $0x10] sm:$0xff] }
  0xd6   : > { %459 = vst.msk [vmem:[#allocation2 + $0x18] sm:$0xff] %vm255_vm1, %v455_v21  ;;  %v500_v16 = vadd.f32 %v496_v22, %v489_v7  ;;  %v654_v58 = vpop.f32.mrf.mxu3 }
  0xd7   : > { %v558_v20 = vld [vmem:[#allocation2 + $0x8] sm:$0xff]  ;;  %v552_v26 = vpop.f32.mrf.mxu1  ;;  %v1035_v14 = vpop.eup %1034 }
  0xd8   : > { %504 = vst.msk [vmem:[#allocation2 + $0x10] sm:$0xff] %vm255_vm1, %v500_v16  ;;  %v562_v23 = vadd.f32 %v558_v20, %v549_v18  ;;  %v749_v15 = vmul.f32 16.0, %v1035_v14  ;;  %vm753_vm3 = vweird.f32 %v1035_v14 }
  0xd9   : > { %v613_v12 = vld [vmem:[#allocation2] sm:$0xff] }
  0xda   : > { %566 = vst.msk [vmem:[#allocation2 + $0x8] sm:$0xff] %vm255_vm1, %v562_v23  ;;  %v617_v6 = vadd.f32 %v613_v12, %v603_v19  ;;  %v750_v7 = vsub.f32 1.0, %v749_v15 }
  0xdc   : > { %621 = vst.msk [vmem:[#allocation2] sm:$0xff] %vm255_vm1, %v617_v6  ;;  %v715_v2 = vpop.f32.mrf.mxu0  ;;  %v751_v17 = vmul.f32 %v1035_v14, %v750_v7 }
  0xdd   : > { %v497_v25 = vld [vmem:[#allocation2 + $0x18] sm:$0xff] }
  0xde   : > { %v501_v28 = vadd.f32 %v497_v25, %v491_v11  ;;  %v752_v18 = vadd.f32 %v1035_v14, %v751_v17 }
  0xdf   : > { %v559_v29 = vld [vmem:[#allocation2 + $0x10] sm:$0xff]  ;;  %v554_v37 = vpop.f32.mrf.mxu1 }
  0xe0   : > { %505 = vst.msk [vmem:[#allocation2 + $0x18] sm:$0xff] %vm255_vm1, %v501_v28  ;;  %v563_v30 = vadd.f32 %v559_v29, %v552_v26  ;;  %v754_v19 = vsel %vm753_vm3, %v1035_v14, %v752_v18 }
  0xe1   : > { %v614_v31 = vld [vmem:[#allocation2 + $0x8] sm:$0xff] }
  0xe2   : > { %567 = vst.msk [vmem:[#allocation2 + $0x10] sm:$0xff] %vm255_vm1, %v563_v30  ;;  %v618_v32 = vadd.f32 %v614_v31, %v605_v27 }
  0xe3   : > { %v657_v33 = vld [vmem:[#allocation2] sm:$0xff] }
  0xe4   : > { %622 = vst.msk [vmem:[#allocation2 + $0x8] sm:$0xff] %vm255_vm1, %v618_v32  ;;  %v661_v34 = vadd.f32 %v657_v33, %v647_v24 }
  0xe6   : > { %665 = vst.msk [vmem:[#allocation2] sm:$0xff] %vm255_vm1, %v661_v34 }
  0xe7   : > { %v560_v38 = vld [vmem:[#allocation2 + $0x18] sm:$0xff] }
  0xe8   : > { %v564_v40 = vadd.f32 %v560_v38, %v554_v37 }
  0xe9   : > { %v615_v41 = vld [vmem:[#allocation2 + $0x10] sm:$0xff] }
  0xea   : > { %568 = vst.msk [vmem:[#allocation2 + $0x18] sm:$0xff] %vm255_vm1, %v564_v40  ;;  %v619_v42 = vadd.f32 %v615_v41, %v608_v39 }
  0xeb   : > { %v658_v43 = vld [vmem:[#allocation2 + $0x8] sm:$0xff] }
  0xec   : > { %623 = vst.msk [vmem:[#allocation2 + $0x10] sm:$0xff] %vm255_vm1, %v619_v42  ;;  %v662_v44 = vadd.f32 %v658_v43, %v649_v35 }
  0xed   : > { %v718_v45 = vld [vmem:[#allocation2] sm:$0xff] }
  0xee   : > { %666 = vst.msk [vmem:[#allocation2 + $0x8] sm:$0xff] %vm255_vm1, %v662_v44  ;;  %v722_v46 = vadd.f32 %v718_v45, %v708_v36 }
  0xf0   : > { %726 = vst.msk [vmem:[#allocation2] sm:$0xff] %vm255_vm1, %v722_v46 }
  0xf1   : > { %v616_v49 = vld [vmem:[#allocation2 + $0x18] sm:$0xff] }
  0xf2   : > { %v620_v51 = vadd.f32 %v616_v49, %v610_v48 }
  0xf3   : > { %v659_v52 = vld [vmem:[#allocation2 + $0x10] sm:$0xff] }
  0xf4   : > { %624 = vst.msk [vmem:[#allocation2 + $0x18] sm:$0xff] %vm255_vm1, %v620_v51  ;;  %v663_v53 = vadd.f32 %v659_v52, %v652_v50 }
  0xf5   : > { %v719_v54 = vld [vmem:[#allocation2 + $0x8] sm:$0xff] }
  0xf6   : > { %667 = vst.msk [vmem:[#allocation2 + $0x10] sm:$0xff] %vm255_vm1, %v663_v53  ;;  %v723_v55 = vadd.f32 %v719_v54, %v710_v47  ;;  %v1032_v53 = vld [vmem:[%s1270_s2] ss:$0 sm:$0xff] }
  0xf7   : > { %v730_v56 = vld [vmem:[#allocation2] sm:$0xff] }
  0xf8   : > { %727 = vst.msk [vmem:[#allocation2 + $0x8] sm:$0xff] %vm255_vm1, %v723_v55  ;;  %v736_v57 = vsel %vm255_vm1, %v730_v56, 0.0 }
  0xf9   : > { %737 = vadd.xlane.f32.xlu0 %v736_v57 }
  0xfb   : > { %v660_v59 = vld [vmem:[#allocation2 + $0x18] sm:$0xff] }
  0xfc   : > { %v664_v61 = vadd.f32 %v660_v59, %v654_v58 }
  0xfd   : > { %v720_v62 = vld [vmem:[#allocation2 + $0x10] sm:$0xff] }
  0xfe   : > { %668 = vst.msk [vmem:[#allocation2 + $0x18] sm:$0xff] %vm255_vm1, %v664_v61  ;;  %v724_v63 = vadd.f32 %v720_v62, %v713_v60 }
  0xff   : > { %v731_v0 = vld [vmem:[#allocation2 + $0x8] sm:$0xff] }
 0x100   : > { %728 = vst.msk [vmem:[#allocation2 + $0x10] sm:$0xff] %vm255_vm1, %v724_v63  ;;  %v739_v1 = vsel %vm255_vm1, %v731_v0, 0.0 }
 0x101   : > { %740 = vadd.xlane.f32.xlu0 %v739_v1 }
 0x105   : > { %v721_v3 = vld [vmem:[#allocation2 + $0x18] sm:$0xff] }
 0x106   : > { %v725_v4 = vadd.f32 %v721_v3, %v715_v2 }
 0x107   : > { %v732_v5 = vld [vmem:[#allocation2 + $0x10] sm:$0xff] }
 0x108   : > { %729 = vst.msk [vmem:[#allocation2 + $0x18] sm:$0xff] %vm255_vm1, %v725_v4  ;;  %v742_v8 = vsel %vm255_vm1, %v732_v5, 0.0 }
 0x109   : > { %743 = vadd.xlane.f32.xlu1 %v742_v8 }
 0x10f   : > { %v733_v9 = vld [vmem:[#allocation2 + $0x18] sm:$0xff] }
 0x110   : > { %v745_v10 = vsel %vm255_vm1, %v733_v9, 0.0 }
 0x111   : > { %746 = vadd.xlane.f32.xlu1 %v745_v10 }
 0x16c   : > { %v738_v21 = vpop.xlane.xlu0 %737 }
 0x16d   : > { %v755_v22 = vmul.f32 %v754_v19, %v738_v21 }
 0x16f   : > { %v759_v16 = vsub.f32 %v730_v56, %v755_v22  ;;  %v1033_v56 = vld [vmem:[%s1271_s3] ss:$0 sm:$0xff] }
 0x171   : > { %v763_v20 = vmul.f32 %v759_v16, %v759_v16 }
 0x173   : > { %v767_v23 = vsel %vm255_vm1, %v763_v20, 0.0 }
 0x174   : > { %768 = vadd.xlane.f32.xlu2 %v767_v23  ;;  %v741_v12 = vpop.xlane.xlu0 %740 }
 0x175   : > { %v756_v6 = vmul.f32 %v754_v19, %v741_v12 }
 0x177   : > { %v760_v11 = vsub.f32 %v731_v0, %v756_v6 }
 0x179   : > { %v764_v24 = vmul.f32 %v760_v11, %v760_v11 }
 0x17b   : > { %v770_v25 = vsel %vm255_vm1, %v764_v24, 0.0 }
 0x17c   : > { %v744_v26 = vpop.xlane.xlu1 %743  ;;  %771 = vadd.xlane.f32.xlu2 %v770_v25 }
 0x17d   : > { %v757_v27 = vmul.f32 %v754_v19, %v744_v26 }
 0x17f   : > { %v1232_v28 = vsub.f32 %v732_v5, %v757_v27 }
 0x181   : > { %v765_v29 = vmul.f32 %v1232_v28, %v1232_v28 }
 0x183   : > { %v773_v30 = vsel %vm255_vm1, %v765_v29, 0.0 }
 0x184   : > { %v747_v31 = vpop.xlane.xlu1 %746  ;;  %774 = vadd.xlane.f32.xlu0 %v773_v30 }
 0x185   : > { %v758_v32 = vmul.f32 %v754_v19, %v747_v31 }
 0x187   : > { %v1237_v33 = vsub.f32 %v733_v9, %v758_v32 }
 0x189   : > { %v766_v34 = vmul.f32 %v1237_v33, %v1237_v33 }
 0x18b   : > { %v776_v35 = vsel %vm255_vm1, %v766_v34, 0.0 }
 0x18c   : > { %777 = vadd.xlane.f32.xlu1 %v776_v35 }
 0x1e7   : > { %v769_v36 = vpop.xlane.xlu2 %768 }
 0x1e8   : > { %v779_v37 = vmul.f32 %v769_v36, %v754_v19 }
 0x1ea   : > { %v783_v38 = vadd.f32 1e-06, %v779_v37 }
 0x1ec   : > { %1036 = vrsqrt.f32 %v783_v38  ;;  %vm793_vm5 = vweird.f32 %v783_v38 }
 0x1ef   : > { %v772_v39 = vpop.xlane.xlu2 %771 }
 0x1f0   : > { %v780_v40 = vmul.f32 %v772_v39, %v754_v19 }
 0x1f2   : > { %v1037_v41 = vpop.eup %1036  ;;  %v784_v42 = vadd.f32 1e-06, %v780_v40 }
 0x1f3   : > { %v788_v43 = vmul.f32 %v1037_v41, %v783_v38  ;;  %vm794_vm4 = vweird.f32 %v1037_v41 }
 0x1f4   : > { %1038 = vrsqrt.f32 %v784_v42  ;;  %vm795_vm6 = vmor %vm793_vm5, %vm794_vm4  ;;  %vm803_vm8 = vweird.f32 %v784_v42 }
 0x1f5   : > { %v789_v44 = vmul.f32 %v1037_v41, %v788_v43 }
 0x1f7   : > { %v790_v45 = vmul.f32 0.5, %v789_v44  ;;  %v775_v46 = vpop.xlane.xlu0 %774 }
 0x1f8   : > { %v781_v47 = vmul.f32 %v775_v46, %v754_v19 }
 0x1f9   : > { %v791_v48 = vsub.f32 1.5, %v790_v45 }
 0x1fa   : > { %v1039_v49 = vpop.eup %1038  ;;  %v785_v50 = vadd.f32 1e-06, %v781_v47 }
 0x1fb   : > { %v792_v51 = vmul.f32 %v1037_v41, %v791_v48  ;;  %v798_v52 = vmul.f32 %v1039_v49, %v784_v42  ;;  %vm804_vm7 = vweird.f32 %v1039_v49 }
 0x1fc   : > { %1040 = vrsqrt.f32 %v785_v50  ;;  %vm805_vm9 = vmor %vm803_vm8, %vm804_vm7  ;;  %vm813_vm11 = vweird.f32 %v785_v50 }
 0x1fd   : > { %v796_v54 = vsel %vm795_vm6, %v1037_v41, %v792_v51  ;;  %v799_v55 = vmul.f32 %v1039_v49, %v798_v52 }
 0x1fe   : > { %v827_v57 = vmul.f32 %v796_v54, %v759_v16 }
 0x1ff   : > { %v800_v58 = vmul.f32 0.5, %v799_v55  ;;  %v778_v59 = vpop.xlane.xlu1 %777 }
 0x200   : > { %v834_v60 = vmul.f32 %v1032_v53, %v827_v57  ;;  %v782_v61 = vmul.f32 %v778_v59, %v754_v19 }
 0x201   : > { %v801_v62 = vsub.f32 1.5, %v800_v58 }
 0x202   : > { %v1041_v63 = vpop.eup %1040  ;;  %v841_v0 = vadd.f32 %v1033_v56, %v834_v60  ;;  %v786_v1 = vadd.f32 1e-06, %v782_v61 }
 0x203   : > { %v802_v2 = vmul.f32 %v1039_v49, %v801_v62  ;;  %v808_v3 = vmul.f32 %v1041_v63, %v785_v50  ;;  %vm814_vm10 = vweird.f32 %v1041_v63 }
 0x204   : > { %845 = vst.msk [vmem:[%s1253_s21] sm:$0xff] %vm255_vm1, %v841_v0  ;;  %1042 = vrsqrt.f32 %v786_v1  ;;  %vm815_vm12 = vmor %vm813_vm11, %vm814_vm10  ;;  %vm823_vm14 = vweird.f32 %v786_v1 }
 0x205   : > { %v806_v4 = vsel %vm805_vm9, %v1039_v49, %v802_v2  ;;  %v809_v5 = vmul.f32 %v1041_v63, %v808_v3 }
 0x206   : > { %v828_v8 = vmul.f32 %v806_v4, %v760_v11 }
 0x207   : > { %v810_v9 = vmul.f32 0.5, %v809_v5 }
 0x208   : > { %v835_v10 = vmul.f32 %v1032_v53, %v828_v8 }
 0x209   : > { %v811_v13 = vsub.f32 1.5, %v810_v9 }
 0x20a   : > { %v1043_v14 = vpop.eup %1042  ;;  %v842_v15 = vadd.f32 %v1033_v56, %v835_v10 }
 0x20b   : > { %v812_v7 = vmul.f32 %v1041_v63, %v811_v13  ;;  %v818_v17 = vmul.f32 %v1043_v14, %v786_v1  ;;  %vm824_vm13 = vweird.f32 %v1043_v14 }
 0x20c   : > { %846 = vst.msk [vmem:[%s1253_s21 + $0x8] sm:$0xff] %vm255_vm1, %v842_v15  ;;  %vm825_vm15 = vmor %vm823_vm14, %vm824_vm13 }
 0x20d   : > { %v816_v18 = vsel %vm815_vm12, %v1041_v63, %v812_v7  ;;  %v819_v19 = vmul.f32 %v1043_v14, %v818_v17 }
 0x20e   : > { %v829_v21 = vmul.f32 %v816_v18, %v1232_v28 }
 0x20f   : > { %v820_v22 = vmul.f32 0.5, %v819_v19 }
 0x210   : > { %v836_v16 = vmul.f32 %v1032_v53, %v829_v21 }
 0x211   : > { %v821_v20 = vsub.f32 1.5, %v820_v22 }
 0x212   : > { %v843_v23 = vadd.f32 %v1033_v56, %v836_v16 }
 0x213   : > { %v822_v12 = vmul.f32 %v1043_v14, %v821_v20 }
 0x214   : > { %847 = vst.msk [vmem:[%s1253_s21 + $0x10] sm:$0xff] %vm255_vm1, %v843_v23 }
 0x215   : > { %v826_v6 = vsel %vm825_vm15, %v1043_v14, %v822_v12 }
 0x216   : > { %v830_v11 = vmul.f32 %v826_v6, %v1237_v33 }
 0x218   : > { %v837_v24 = vmul.f32 %v1032_v53, %v830_v11 }
 0x21a   : > { %v844_v25 = vadd.f32 %v1033_v56, %v837_v24 }
 0x21c   : > { %848 = vst.msk [vmem:[%s1253_s21 + $0x18] sm:$0xff] %vm255_vm1, %v844_v25 }
 0x21d PF: > { %s14_s15 = sadd.s32 1, %s1050_s15  }
 0x21e   : > { %p11_p4 = scmp.ge.s32.totalorder %s14_s15, 4  }
 0x220   :  { %13 = sbr.rel (!%p11_p4) target bundleno = 1 (0x1), region = 74 }

</bundles_post_ra>
